<compile_context>
chip_gen: v5e
topology: v5e:2x2
jax: 0.10.0
libtpu: 0.0.40
codegen_flags: <defaults>
</compile_context>

<pallas_src>
import functools

import jax
import jax.numpy as jnp
from jax.experimental import pallas as pl
from jax.experimental.pallas import tpu as pltpu

_K = 7            # spatial-attention kernel size (odd)
_P = _K // 2      # padding
_KK = _K * _K


def _cbam_kernel(x_ref, w1t_ref, w2_ref, wc_ref, bc_ref, masks_ref, o_ref,
                 flatpad_ref, *, H, W, BT):
    # x_ref      : (BT, C, HW) in caller dtype -- lane-dense view of BT batch elems
    # w1t_ref    : (C, hidden) -- Linear(C, hidden, bias=False).weight transposed
    # w2_ref     : (C, hidden) -- Linear(hidden, C, bias=False).weight
    # wc_ref     : SMEM (2*K*K,) f32 -- Conv2d(2, 1, K).weight[0] flat, order [c, i, j]
    # bc_ref     : SMEM (1,) f32     -- Conv2d bias
    # masks_ref  : (2*K, HW) f32 -- rows 0..K-1: row validity per di,
    #                               rows K..2K-1: col validity per dj
    # o_ref      : (BT, C, HW) in caller dtype
    # flatpad_ref: VMEM (2, HW + 2*pad) f32 scratch, pad = P*W + P
    C = x_ref.shape[1]
    hidden = w1t_ref.shape[1]
    HW = H * W
    pad = _P * W + _P
    inv_hw = 1.0 / float(HW)
    inv_c = 1.0 / float(C)

    w1t = w1t_ref[...].astype(jnp.float32)            # (C, hidden)
    w2 = w2_ref[...].astype(jnp.float32)              # (C, hidden)
    bias = bc_ref[0]
    wcs = [wc_ref[t] for t in range(2 * _KK)]         # 98 scalars from SMEM
    rm = [masks_ref[i:i + 1, :] for i in range(_K)]   # (1, HW) row-validity masks
    cm = [masks_ref[_K + j:_K + j + 1, :] for j in range(_K)]

    # Zero only the halo strips; the interior is fully overwritten every sample.
    # Re-done every grid step so the kernel is megacore-safe.
    flatpad_ref[:, 0:pad] = jnp.zeros((2, pad), jnp.float32)
    flatpad_ref[:, pad + HW:pad + HW + pad] = jnp.zeros((2, pad), jnp.float32)

    for b in range(BT):                                # static unroll over batch tile
        xf = x_ref[b].astype(jnp.float32)              # (C, HW)

        # ------------------- channel attention -------------------
        avg_c = jnp.sum(xf, axis=1, keepdims=True) * inv_hw        # (C, 1)
        max_c = jnp.max(xf, axis=1, keepdims=True)                 # (C, 1)
        col = jax.lax.broadcasted_iota(jnp.int32, (C, 2), 1)
        pooled = jnp.where(col == 0, avg_c, max_c)                 # (C, 2)

        if hidden == 1:
            # Tiny-MLP fast path: pure VPU (MXU is wasted on 1x2 tiles).
            hid = jnp.maximum(jnp.sum(w1t * pooled, axis=0, keepdims=True), 0.0)
            out2 = w2 * hid                                        # (C, 2)
        else:
            hid = jnp.maximum(
                jax.lax.dot_general(w1t, pooled, (((0,), (0,)), ((), ())),
                                    preferred_element_type=jnp.float32), 0.0)
            out2 = jnp.dot(w2, hid, preferred_element_type=jnp.float32)
        scale_c = jax.nn.sigmoid(jnp.sum(out2, axis=1, keepdims=True))   # (C, 1)

        # ------------------- spatial attention -------------------
        # y is only needed for the channel-wise pooling; it dies right after the
        # two reductions (the final product is recomputed at the store below).
        y = xf * scale_c
        avg_s = jnp.sum(y, axis=0, keepdims=True) * inv_c          # (1, HW)
        max_s = jnp.max(y, axis=0, keepdims=True)                  # (1, HW)
        row2 = jax.lax.broadcasted_iota(jnp.int32, (2, HW), 0)
        planes = jnp.where(row2 == 0, avg_s, max_s)                # (2, HW)

        # Stage the pooled planes once into the halo-padded flat scratch; each
        # conv tap is then one static lane-offset load, masked for validity.
        flatpad_ref[:, pad:pad + HW] = planes

        acc = jnp.zeros((1, HW), jnp.float32) + bias
        for di in range(_K):
            for dj in range(_K):
                off = pad + (di - _P) * W + (dj - _P)
                win = flatpad_ref[:, off:off + HW]                 # (2, HW)
                t = di * _K + dj
                tap = wcs[t] * win[0:1, :] + wcs[_KK + t] * win[1:2, :]
                acc = acc + tap * (rm[di] * cm[dj])
        sig = jax.nn.sigmoid(acc)                                  # (1, HW)

        # Recompute x*scale_c here instead of keeping y live across the conv.
        o_ref[b] = (x_ref[b].astype(jnp.float32) * scale_c * sig).astype(o_ref.dtype)


def _pick_batch_tile(B, C, HW, itemsize, budget_bytes=16 * 1024 * 1024):
    """Largest divisor of B whose double-buffered in+out blocks fit the budget."""
    bt = 1
    for cand in range(1, B + 1):
        if B % cand:
            continue
        if 4 * cand * C * HW * itemsize <= budget_bytes:
            bt = cand
    return bt


def cbam_forward(x, w1, w2, w_conv, b_conv):
    """CBAM forward for a 4-D NCHW input (fused channel + spatial attention).

    I/O stays in x.dtype (bf16 works); all math runs in f32 inside the kernel.
    """
    B, C, H, W = x.shape
    hidden = w1.shape[0]
    HW = H * W
    pad = _P * W + _P

    # Lane-dense layout plumbing (contiguous reshape, free on the XLA side).
    x_flat = x.reshape(B, C, HW)
    w1t = jnp.asarray(w1, jnp.float32).T                   # (C, hidden)
    w2f = jnp.asarray(w2, jnp.float32)                     # (C, hidden)
    w_flat = w_conv[0].reshape(-1).astype(jnp.float32)     # (2*K*K,), order [c, i, j]
    b_flat = b_conv.astype(jnp.float32)

    # Validity masks for the flat-domain 7x7 conv (tiny, computed once).
    pos = jnp.arange(HW, dtype=jnp.int32)
    hh, ww = pos // W, pos % W
    row_m = [((hh + di - _P >= 0) & (hh + di - _P < H)) for di in range(_K)]
    col_m = [((ww + dj - _P >= 0) & (ww + dj - _P < W)) for dj in range(_K)]
    masks = jnp.stack(row_m + col_m).astype(jnp.float32)   # (2*K, HW)

    itemsize = jnp.dtype(x_flat.dtype).itemsize
    BT = _pick_batch_tile(B, C, HW, itemsize)

    # Scoped-VMEM budget derived from the actual working set, capped below the
    # physical per-core VMEM with headroom (v7x: 64 MiB, v5e/v6e: 128 MiB).
    try:
        vmem_cap = int(pltpu.get_tpu_info().vmem_capacity_bytes)
    except Exception:
        vmem_cap = 64 * 1024 * 1024
    need = 4 * BT * C * HW * itemsize                  # double-buffered in + out
    need += 8 * C * HW * 4                             # in-kernel f32 temporaries
    need += (2 * _K * HW + 2 * (HW + 2 * pad) + 2 * C * hidden + 256) * 4
    need += 2 * 1024 * 1024                            # Mosaic internal scratch slack
    vmem_limit = int(min(max(need, 32 * 1024 * 1024), vmem_cap - 8 * 1024 * 1024))

    kernel = functools.partial(_cbam_kernel, H=H, W=W, BT=BT)
    out_flat = pl.pallas_call(
        kernel,
        out_shape=jax.ShapeDtypeStruct((B, C, HW), x_flat.dtype),
        grid=(B // BT,),
        in_specs=[
            pl.BlockSpec((BT, C, HW), lambda b: (b, 0, 0)),
            pl.BlockSpec((C, hidden), lambda b: (0, 0)),
            pl.BlockSpec((C, hidden), lambda b: (0, 0)),
            pl.BlockSpec(memory_space=pltpu.MemorySpace.SMEM),
            pl.BlockSpec(memory_space=pltpu.MemorySpace.SMEM),
            pl.BlockSpec((2 * _K, HW), lambda b: (0, 0)),
        ],
        out_specs=pl.BlockSpec((BT, C, HW), lambda b: (b, 0, 0)),
        scratch_shapes=[pltpu.VMEM((2, HW + 2 * pad), jnp.float32)],
        # Each block is fully read into VMEM before its result is written, so the
        # output can safely reuse x's HBM buffer (capacity, not bandwidth).
        input_output_aliases={0: 0},
        compiler_params=pltpu.CompilerParams(
            dimension_semantics=("parallel",),
            vmem_limit_bytes=vmem_limit),
    )(x_flat, w1t, w2f, w_flat, b_flat, masks)

    return out_flat.reshape(B, C, H, W)


def cbam_reference(x, w1, w2, w_conv, b_conv):
    """Pure-JAX reference matching the PyTorch CBAM forward (4-D path)."""
    B, C, H, W = x.shape
    avg = jnp.mean(x, axis=(2, 3))                 # (B, C)
    mx = jnp.max(x, axis=(2, 3))                   # (B, C)

    def mlp(v):
        return jnp.maximum(v @ w1.T, 0.0) @ w2.T

    scale = jax.nn.sigmoid(mlp(avg) + mlp(mx))
    y = x * scale[:, :, None, None]

    a = jnp.mean(y, axis=1)
    m = jnp.max(y, axis=1)
    inp = jnp.stack([a, m], axis=1)                # (B, 2, H, W)
    padded = jnp.pad(inp, ((0, 0), (0, 0), (_P, _P), (_P, _P)))
    out = jnp.zeros((B, H, W), jnp.float32) + b_conv[0]
    for c in range(2):
        for i in range(_K):
            for j in range(_K):
                out = out + w_conv[0, c, i, j] * padded[:, c, i:i + H, j:j + W]
    s = jax.nn.sigmoid(out)
    return y * s[:, None, :, :]


if __name__ == "__main__":
    key = jax.random.PRNGKey(0)
    kx, k1, k2, k3, k4 = jax.random.split(key, 5)

    B, C, H, W = 2, 4, 16, 16
    reduction_ratio = 16
    hidden = max(1, C // reduction_ratio)

    x = jax.random.normal(kx, (B, C, H, W), jnp.float32)
    # nn.Linear weights are (out_features, in_features), bias=False.
    w1 = jax.random.normal(k1, (hidden, C), jnp.float32) * 0.5
    w2 = jax.random.normal(k2, (C, hidden), jnp.float32) * 0.5
    # nn.Conv2d(2, 1, 7, padding=3): weight (1, 2, 7, 7), bias (1,).
    w_conv = jax.random.normal(k3, (1, 2, _K, _K), jnp.float32) * 0.1
    b_conv = jax.random.normal(k4, (1,), jnp.float32) * 0.1

    # Reference first (the pallas_call may alias x's buffer for its output).
    ref = cbam_reference(x, w1, w2, w_conv, b_conv)
    out = jax.block_until_ready(cbam_forward(x, w1, w2, w_conv, b_conv))

    assert out.shape == x.shape and out.dtype == x.dtype
    max_err = float(jnp.max(jnp.abs(out - ref)))
    assert jnp.allclose(out, ref, atol=1e-4, rtol=1e-4), max_err
    print("KERNEL_OK")
</pallas_src>

<mosaic_0001>
module attributes {stable_mosaic.version = 11 : i64} {
  func.func @_cbam_kernel(%arg0: i32, %arg1: memref<2x4x256xf32, #tpu.memory_space<vmem>>, %arg2: memref<4x1xf32, #tpu.memory_space<vmem>>, %arg3: memref<4x1xf32, #tpu.memory_space<vmem>>, %arg4: memref<98xf32, #tpu.memory_space<smem>>, %arg5: memref<1xf32, #tpu.memory_space<smem>>, %arg6: memref<14x256xf32, #tpu.memory_space<vmem>>, %arg7: memref<2x4x256xf32, #tpu.memory_space<vmem>>, %arg8: memref<2x358xf32, #tpu.memory_space<vmem>>) attributes {dimension_semantics = [#tpu.dimension_semantics<parallel>], iteration_bounds = array<i64: 1>, scalar_prefetch = 0 : i64, scratch_operands = 1 : i64, tpu.core_type = #tpu.core_type<tc>, window_params = [{transform_indices = @transform_0, window_bounds = array<i64: 2, 4, 256>}, {pipeline_mode = #tpu.pipeline_mode<synchronous>, transform_indices = @transform_1, window_bounds = array<i64: 4, 1>}, {pipeline_mode = #tpu.pipeline_mode<synchronous>, transform_indices = @transform_2, window_bounds = array<i64: 4, 1>}, {transform_indices = @transform_3, window_bounds = array<i64: 98>}, {transform_indices = @transform_4, window_bounds = array<i64: 1>}, {pipeline_mode = #tpu.pipeline_mode<synchronous>, transform_indices = @transform_5, window_bounds = array<i64: 14, 256>}, {transform_indices = @transform_6, window_bounds = array<i64: 2, 4, 256>}]} {
    %c0 = arith.constant 0 : index
    %c0_0 = arith.constant 0 : index
    %0 = vector.load %arg2[%c0, %c0_0] : memref<4x1xf32, #tpu.memory_space<vmem>>, vector<4x1xf32>
    %c0_1 = arith.constant 0 : index
    %c0_2 = arith.constant 0 : index
    %1 = vector.load %arg3[%c0_1, %c0_2] : memref<4x1xf32, #tpu.memory_space<vmem>>, vector<4x1xf32>
    %c0_3 = arith.constant 0 : index
    %2 = memref.load %arg5[%c0_3] : memref<1xf32, #tpu.memory_space<smem>>
    %c0_4 = arith.constant 0 : index
    %3 = memref.load %arg4[%c0_4] : memref<98xf32, #tpu.memory_space<smem>>
    %c1 = arith.constant 1 : index
    %4 = memref.load %arg4[%c1] : memref<98xf32, #tpu.memory_space<smem>>
    %c2 = arith.constant 2 : index
    %5 = memref.load %arg4[%c2] : memref<98xf32, #tpu.memory_space<smem>>
    %c3 = arith.constant 3 : index
    %6 = memref.load %arg4[%c3] : memref<98xf32, #tpu.memory_space<smem>>
    %c4 = arith.constant 4 : index
    %7 = memref.load %arg4[%c4] : memref<98xf32, #tpu.memory_space<smem>>
    %c5 = arith.constant 5 : index
    %8 = memref.load %arg4[%c5] : memref<98xf32, #tpu.memory_space<smem>>
    %c6 = arith.constant 6 : index
    %9 = memref.load %arg4[%c6] : memref<98xf32, #tpu.memory_space<smem>>
    %c7 = arith.constant 7 : index
    %10 = memref.load %arg4[%c7] : memref<98xf32, #tpu.memory_space<smem>>
    %c8 = arith.constant 8 : index
    %11 = memref.load %arg4[%c8] : memref<98xf32, #tpu.memory_space<smem>>
    %c9 = arith.constant 9 : index
    %12 = memref.load %arg4[%c9] : memref<98xf32, #tpu.memory_space<smem>>
    %c10 = arith.constant 10 : index
    %13 = memref.load %arg4[%c10] : memref<98xf32, #tpu.memory_space<smem>>
    %c11 = arith.constant 11 : index
    %14 = memref.load %arg4[%c11] : memref<98xf32, #tpu.memory_space<smem>>
    %c12 = arith.constant 12 : index
    %15 = memref.load %arg4[%c12] : memref<98xf32, #tpu.memory_space<smem>>
    %c13 = arith.constant 13 : index
    %16 = memref.load %arg4[%c13] : memref<98xf32, #tpu.memory_space<smem>>
    %c14 = arith.constant 14 : index
    %17 = memref.load %arg4[%c14] : memref<98xf32, #tpu.memory_space<smem>>
    %c15 = arith.constant 15 : index
    %18 = memref.load %arg4[%c15] : memref<98xf32, #tpu.memory_space<smem>>
    %c16 = arith.constant 16 : index
    %19 = memref.load %arg4[%c16] : memref<98xf32, #tpu.memory_space<smem>>
    %c17 = arith.constant 17 : index
    %20 = memref.load %arg4[%c17] : memref<98xf32, #tpu.memory_space<smem>>
    %c18 = arith.constant 18 : index
    %21 = memref.load %arg4[%c18] : memref<98xf32, #tpu.memory_space<smem>>
    %c19 = arith.constant 19 : index
    %22 = memref.load %arg4[%c19] : memref<98xf32, #tpu.memory_space<smem>>
    %c20 = arith.constant 20 : index
    %23 = memref.load %arg4[%c20] : memref<98xf32, #tpu.memory_space<smem>>
    %c21 = arith.constant 21 : index
    %24 = memref.load %arg4[%c21] : memref<98xf32, #tpu.memory_space<smem>>
    %c22 = arith.constant 22 : index
    %25 = memref.load %arg4[%c22] : memref<98xf32, #tpu.memory_space<smem>>
    %c23 = arith.constant 23 : index
    %26 = memref.load %arg4[%c23] : memref<98xf32, #tpu.memory_space<smem>>
    %c24 = arith.constant 24 : index
    %27 = memref.load %arg4[%c24] : memref<98xf32, #tpu.memory_space<smem>>
    %c25 = arith.constant 25 : index
    %28 = memref.load %arg4[%c25] : memref<98xf32, #tpu.memory_space<smem>>
    %c26 = arith.constant 26 : index
    %29 = memref.load %arg4[%c26] : memref<98xf32, #tpu.memory_space<smem>>
    %c27 = arith.constant 27 : index
    %30 = memref.load %arg4[%c27] : memref<98xf32, #tpu.memory_space<smem>>
    %c28 = arith.constant 28 : index
    %31 = memref.load %arg4[%c28] : memref<98xf32, #tpu.memory_space<smem>>
    %c29 = arith.constant 29 : index
    %32 = memref.load %arg4[%c29] : memref<98xf32, #tpu.memory_space<smem>>
    %c30 = arith.constant 30 : index
    %33 = memref.load %arg4[%c30] : memref<98xf32, #tpu.memory_space<smem>>
    %c31 = arith.constant 31 : index
    %34 = memref.load %arg4[%c31] : memref<98xf32, #tpu.memory_space<smem>>
    %c32 = arith.constant 32 : index
    %35 = memref.load %arg4[%c32] : memref<98xf32, #tpu.memory_space<smem>>
    %c33 = arith.constant 33 : index
    %36 = memref.load %arg4[%c33] : memref<98xf32, #tpu.memory_space<smem>>
    %c34 = arith.constant 34 : index
    %37 = memref.load %arg4[%c34] : memref<98xf32, #tpu.memory_space<smem>>
    %c35 = arith.constant 35 : index
    %38 = memref.load %arg4[%c35] : memref<98xf32, #tpu.memory_space<smem>>
    %c36 = arith.constant 36 : index
    %39 = memref.load %arg4[%c36] : memref<98xf32, #tpu.memory_space<smem>>
    %c37 = arith.constant 37 : index
    %40 = memref.load %arg4[%c37] : memref<98xf32, #tpu.memory_space<smem>>
    %c38 = arith.constant 38 : index
    %41 = memref.load %arg4[%c38] : memref<98xf32, #tpu.memory_space<smem>>
    %c39 = arith.constant 39 : index
    %42 = memref.load %arg4[%c39] : memref<98xf32, #tpu.memory_space<smem>>
    %c40 = arith.constant 40 : index
    %43 = memref.load %arg4[%c40] : memref<98xf32, #tpu.memory_space<smem>>
    %c41 = arith.constant 41 : index
    %44 = memref.load %arg4[%c41] : memref<98xf32, #tpu.memory_space<smem>>
    %c42 = arith.constant 42 : index
    %45 = memref.load %arg4[%c42] : memref<98xf32, #tpu.memory_space<smem>>
    %c43 = arith.constant 43 : index
    %46 = memref.load %arg4[%c43] : memref<98xf32, #tpu.memory_space<smem>>
    %c44 = arith.constant 44 : index
    %47 = memref.load %arg4[%c44] : memref<98xf32, #tpu.memory_space<smem>>
    %c45 = arith.constant 45 : index
    %48 = memref.load %arg4[%c45] : memref<98xf32, #tpu.memory_space<smem>>
    %c46 = arith.constant 46 : index
    %49 = memref.load %arg4[%c46] : memref<98xf32, #tpu.memory_space<smem>>
    %c47 = arith.constant 47 : index
    %50 = memref.load %arg4[%c47] : memref<98xf32, #tpu.memory_space<smem>>
    %c48 = arith.constant 48 : index
    %51 = memref.load %arg4[%c48] : memref<98xf32, #tpu.memory_space<smem>>
    %c49 = arith.constant 49 : index
    %52 = memref.load %arg4[%c49] : memref<98xf32, #tpu.memory_space<smem>>
    %c50 = arith.constant 50 : index
    %53 = memref.load %arg4[%c50] : memref<98xf32, #tpu.memory_space<smem>>
    %c51 = arith.constant 51 : index
    %54 = memref.load %arg4[%c51] : memref<98xf32, #tpu.memory_space<smem>>
    %c52 = arith.constant 52 : index
    %55 = memref.load %arg4[%c52] : memref<98xf32, #tpu.memory_space<smem>>
    %c53 = arith.constant 53 : index
    %56 = memref.load %arg4[%c53] : memref<98xf32, #tpu.memory_space<smem>>
    %c54 = arith.constant 54 : index
    %57 = memref.load %arg4[%c54] : memref<98xf32, #tpu.memory_space<smem>>
    %c55 = arith.constant 55 : index
    %58 = memref.load %arg4[%c55] : memref<98xf32, #tpu.memory_space<smem>>
    %c56 = arith.constant 56 : index
    %59 = memref.load %arg4[%c56] : memref<98xf32, #tpu.memory_space<smem>>
    %c57 = arith.constant 57 : index
    %60 = memref.load %arg4[%c57] : memref<98xf32, #tpu.memory_space<smem>>
    %c58 = arith.constant 58 : index
    %61 = memref.load %arg4[%c58] : memref<98xf32, #tpu.memory_space<smem>>
    %c59 = arith.constant 59 : index
    %62 = memref.load %arg4[%c59] : memref<98xf32, #tpu.memory_space<smem>>
    %c60 = arith.constant 60 : index
    %63 = memref.load %arg4[%c60] : memref<98xf32, #tpu.memory_space<smem>>
    %c61 = arith.constant 61 : index
    %64 = memref.load %arg4[%c61] : memref<98xf32, #tpu.memory_space<smem>>
    %c62 = arith.constant 62 : index
    %65 = memref.load %arg4[%c62] : memref<98xf32, #tpu.memory_space<smem>>
    %c63 = arith.constant 63 : index
    %66 = memref.load %arg4[%c63] : memref<98xf32, #tpu.memory_space<smem>>
    %c64 = arith.constant 64 : index
    %67 = memref.load %arg4[%c64] : memref<98xf32, #tpu.memory_space<smem>>
    %c65 = arith.constant 65 : index
    %68 = memref.load %arg4[%c65] : memref<98xf32, #tpu.memory_space<smem>>
    %c66 = arith.constant 66 : index
    %69 = memref.load %arg4[%c66] : memref<98xf32, #tpu.memory_space<smem>>
    %c67 = arith.constant 67 : index
    %70 = memref.load %arg4[%c67] : memref<98xf32, #tpu.memory_space<smem>>
    %c68 = arith.constant 68 : index
    %71 = memref.load %arg4[%c68] : memref<98xf32, #tpu.memory_space<smem>>
    %c69 = arith.constant 69 : index
    %72 = memref.load %arg4[%c69] : memref<98xf32, #tpu.memory_space<smem>>
    %c70 = arith.constant 70 : index
    %73 = memref.load %arg4[%c70] : memref<98xf32, #tpu.memory_space<smem>>
    %c71 = arith.constant 71 : index
    %74 = memref.load %arg4[%c71] : memref<98xf32, #tpu.memory_space<smem>>
    %c72 = arith.constant 72 : index
    %75 = memref.load %arg4[%c72] : memref<98xf32, #tpu.memory_space<smem>>
    %c73 = arith.constant 73 : index
    %76 = memref.load %arg4[%c73] : memref<98xf32, #tpu.memory_space<smem>>
    %c74 = arith.constant 74 : index
    %77 = memref.load %arg4[%c74] : memref<98xf32, #tpu.memory_space<smem>>
    %c75 = arith.constant 75 : index
    %78 = memref.load %arg4[%c75] : memref<98xf32, #tpu.memory_space<smem>>
    %c76 = arith.constant 76 : index
    %79 = memref.load %arg4[%c76] : memref<98xf32, #tpu.memory_space<smem>>
    %c77 = arith.constant 77 : index
    %80 = memref.load %arg4[%c77] : memref<98xf32, #tpu.memory_space<smem>>
    %c78 = arith.constant 78 : index
    %81 = memref.load %arg4[%c78] : memref<98xf32, #tpu.memory_space<smem>>
    %c79 = arith.constant 79 : index
    %82 = memref.load %arg4[%c79] : memref<98xf32, #tpu.memory_space<smem>>
    %c80 = arith.constant 80 : index
    %83 = memref.load %arg4[%c80] : memref<98xf32, #tpu.memory_space<smem>>
    %c81 = arith.constant 81 : index
    %84 = memref.load %arg4[%c81] : memref<98xf32, #tpu.memory_space<smem>>
    %c82 = arith.constant 82 : index
    %85 = memref.load %arg4[%c82] : memref<98xf32, #tpu.memory_space<smem>>
    %c83 = arith.constant 83 : index
    %86 = memref.load %arg4[%c83] : memref<98xf32, #tpu.memory_space<smem>>
    %c84 = arith.constant 84 : index
    %87 = memref.load %arg4[%c84] : memref<98xf32, #tpu.memory_space<smem>>
    %c85 = arith.constant 85 : index
    %88 = memref.load %arg4[%c85] : memref<98xf32, #tpu.memory_space<smem>>
    %c86 = arith.constant 86 : index
    %89 = memref.load %arg4[%c86] : memref<98xf32, #tpu.memory_space<smem>>
    %c87 = arith.constant 87 : index
    %90 = memref.load %arg4[%c87] : memref<98xf32, #tpu.memory_space<smem>>
    %c88 = arith.constant 88 : index
    %91 = memref.load %arg4[%c88] : memref<98xf32, #tpu.memory_space<smem>>
    %c89 = arith.constant 89 : index
    %92 = memref.load %arg4[%c89] : memref<98xf32, #tpu.memory_space<smem>>
    %c90 = arith.constant 90 : index
    %93 = memref.load %arg4[%c90] : memref<98xf32, #tpu.memory_space<smem>>
    %c91 = arith.constant 91 : index
    %94 = memref.load %arg4[%c91] : memref<98xf32, #tpu.memory_space<smem>>
    %c92 = arith.constant 92 : index
    %95 = memref.load %arg4[%c92] : memref<98xf32, #tpu.memory_space<smem>>
    %c93 = arith.constant 93 : index
    %96 = memref.load %arg4[%c93] : memref<98xf32, #tpu.memory_space<smem>>
    %c94 = arith.constant 94 : index
    %97 = memref.load %arg4[%c94] : memref<98xf32, #tpu.memory_space<smem>>
    %c95 = arith.constant 95 : index
    %98 = memref.load %arg4[%c95] : memref<98xf32, #tpu.memory_space<smem>>
    %c96 = arith.constant 96 : index
    %99 = memref.load %arg4[%c96] : memref<98xf32, #tpu.memory_space<smem>>
    %c97 = arith.constant 97 : index
    %100 = memref.load %arg4[%c97] : memref<98xf32, #tpu.memory_space<smem>>
    %c0_5 = arith.constant 0 : index
    %c0_6 = arith.constant 0 : index
    %101 = vector.load %arg6[%c0_5, %c0_6] : memref<14x256xf32, #tpu.memory_space<vmem>>, vector<1x256xf32>
    %c1_7 = arith.constant 1 : index
    %c0_8 = arith.constant 0 : index
    %102 = vector.load %arg6[%c1_7, %c0_8] : memref<14x256xf32, #tpu.memory_space<vmem>>, vector<1x256xf32>
    %c2_9 = arith.constant 2 : index
    %c0_10 = arith.constant 0 : index
    %103 = vector.load %arg6[%c2_9, %c0_10] : memref<14x256xf32, #tpu.memory_space<vmem>>, vector<1x256xf32>
    %c3_11 = arith.constant 3 : index
    %c0_12 = arith.constant 0 : index
    %104 = vector.load %arg6[%c3_11, %c0_12] : memref<14x256xf32, #tpu.memory_space<vmem>>, vector<1x256xf32>
    %c4_13 = arith.constant 4 : index
    %c0_14 = arith.constant 0 : index
    %105 = vector.load %arg6[%c4_13, %c0_14] : memref<14x256xf32, #tpu.memory_space<vmem>>, vector<1x256xf32>
    %c5_15 = arith.constant 5 : index
    %c0_16 = arith.constant 0 : index
    %106 = vector.load %arg6[%c5_15, %c0_16] : memref<14x256xf32, #tpu.memory_space<vmem>>, vector<1x256xf32>
    %c6_17 = arith.constant 6 : index
    %c0_18 = arith.constant 0 : index
    %107 = vector.load %arg6[%c6_17, %c0_18] : memref<14x256xf32, #tpu.memory_space<vmem>>, vector<1x256xf32>
    %c7_19 = arith.constant 7 : index
    %c0_20 = arith.constant 0 : index
    %108 = vector.load %arg6[%c7_19, %c0_20] : memref<14x256xf32, #tpu.memory_space<vmem>>, vector<1x256xf32>
    %c8_21 = arith.constant 8 : index
    %c0_22 = arith.constant 0 : index
    %109 = vector.load %arg6[%c8_21, %c0_22] : memref<14x256xf32, #tpu.memory_space<vmem>>, vector<1x256xf32>
    %c9_23 = arith.constant 9 : index
    %c0_24 = arith.constant 0 : index
    %110 = vector.load %arg6[%c9_23, %c0_24] : memref<14x256xf32, #tpu.memory_space<vmem>>, vector<1x256xf32>
    %c10_25 = arith.constant 10 : index
    %c0_26 = arith.constant 0 : index
    %111 = vector.load %arg6[%c10_25, %c0_26] : memref<14x256xf32, #tpu.memory_space<vmem>>, vector<1x256xf32>
    %c11_27 = arith.constant 11 : index
    %c0_28 = arith.constant 0 : index
    %112 = vector.load %arg6[%c11_27, %c0_28] : memref<14x256xf32, #tpu.memory_space<vmem>>, vector<1x256xf32>
    %c12_29 = arith.constant 12 : index
    %c0_30 = arith.constant 0 : index
    %113 = vector.load %arg6[%c12_29, %c0_30] : memref<14x256xf32, #tpu.memory_space<vmem>>, vector<1x256xf32>
    %c13_31 = arith.constant 13 : index
    %c0_32 = arith.constant 0 : index
    %114 = vector.load %arg6[%c13_31, %c0_32] : memref<14x256xf32, #tpu.memory_space<vmem>>, vector<1x256xf32>
    %cst = arith.constant 0.000000e+00 : f32
    %115 = vector.broadcast %cst : f32 to vector<2x51xf32>
    %c0_33 = arith.constant 0 : index
    %c0_34 = arith.constant 0 : index
    %116 = vector.load %arg8[%c0_33, %c0_34] : memref<2x358xf32, #tpu.memory_space<vmem>>, vector<2x51xf32>
    tpu.vector_store %arg8[%c0_33, %c0_34], %115 {strides = array<i32>} : memref<2x358xf32, #tpu.memory_space<vmem>>, vector<2x51xf32>,
    %cst_35 = arith.constant 0.000000e+00 : f32
    %117 = vector.broadcast %cst_35 : f32 to vector<2x51xf32>
    %c0_36 = arith.constant 0 : index
    %c307 = arith.constant 307 : index
    %118 = vector.load %arg8[%c0_36, %c307] : memref<2x358xf32, #tpu.memory_space<vmem>>, vector<2x51xf32>
    tpu.vector_store %arg8[%c0_36, %c307], %117 {strides = array<i32>} : memref<2x358xf32, #tpu.memory_space<vmem>>, vector<2x51xf32>,
    %c0_37 = arith.constant 0 : index
    %c0_38 = arith.constant 0 : index
    %c0_39 = arith.constant 0 : index
    %119 = vector.load %arg1[%c0_37, %c0_38, %c0_39] : memref<2x4x256xf32, #tpu.memory_space<vmem>>, vector<1x4x256xf32>
    %120 = vector.shape_cast %119 : vector<1x4x256xf32> to vector<4x256xf32>
    %cst_40 = arith.constant dense<0.000000e+00> : vector<4xf32>
    %121 = vector.multi_reduction <add>, %120, %cst_40 [1] : vector<4x256xf32> to vector<4xf32>
    %122 = vector.shape_cast %121 : vector<4xf32> to vector<4x1xf32>
    %cst_41 = arith.constant 3.906250e-03 : f32
    %123 = vector.broadcast %cst_41 : f32 to vector<4x1xf32>
    %124 = arith.mulf %122, %123 : vector<4x1xf32>
    %cst_42 = arith.constant dense<0xFF800000> : vector<4xf32>
    %125 = vector.multi_reduction <maximumf>, %120, %cst_42 [1] : vector<4x256xf32> to vector<4xf32>
    %126 = vector.shape_cast %125 : vector<4xf32> to vector<4x1xf32>
    %127 = tpu.iota {dimensions = array<i32: 1>} : vector<4x2xi32>
    %c0_i32 = arith.constant 0 : i32
    %128 = vector.broadcast %c0_i32 : i32 to vector<4x2xi32>
    %129 = arith.cmpi eq, %127, %128 : vector<4x2xi32>
    %130 = vector.shape_cast %124 : vector<4x1xf32> to vector<4x1xf32>
    %131 = vector.broadcast %130 : vector<4x1xf32> to vector<4x2xf32>
    %132 = vector.shape_cast %126 : vector<4x1xf32> to vector<4x1xf32>
    %133 = vector.broadcast %132 : vector<4x1xf32> to vector<4x2xf32>
    %134 = arith.select %129, %131, %133 : vector<4x2xi1>, vector<4x2xf32>
    %135 = vector.broadcast %0 : vector<4x1xf32> to vector<4x2xf32>
    %136 = arith.mulf %135, %134 : vector<4x2xf32>
    %cst_43 = arith.constant dense<0.000000e+00> : vector<2xf32>
    %137 = vector.multi_reduction <add>, %136, %cst_43 [0] : vector<4x2xf32> to vector<2xf32>
    %138 = vector.shape_cast %137 : vector<2xf32> to vector<1x2xf32>
    %cst_44 = arith.constant 0.000000e+00 : f32
    %139 = vector.broadcast %cst_44 : f32 to vector<1x2xf32>
    %140 = arith.maximumf %138, %139 : vector<1x2xf32>
    %141 = vector.broadcast %1 : vector<4x1xf32> to vector<4x2xf32>
    %142 = vector.broadcast %140 : vector<1x2xf32> to vector<4x2xf32>
    %143 = arith.mulf %141, %142 : vector<4x2xf32>
    %cst_45 = arith.constant dense<0.000000e+00> : vector<4xf32>
    %144 = vector.multi_reduction <add>, %143, %cst_45 [1] : vector<4x2xf32> to vector<4xf32>
    %145 = vector.shape_cast %144 : vector<4xf32> to vector<4x1xf32>
    %146 = arith.negf %145 : vector<4x1xf32>
    %147 = math.exp %146 : vector<4x1xf32>
    %cst_46 = arith.constant 1.000000e+00 : f32
    %148 = vector.broadcast %cst_46 : f32 to vector<4x1xf32>
    %149 = arith.addf %148, %147 : vector<4x1xf32>
    %150 = arith.divf %148, %149 : vector<4x1xf32>
    %151 = vector.broadcast %150 : vector<4x1xf32> to vector<4x256xf32>
    %152 = arith.mulf %120, %151 : vector<4x256xf32>
    %cst_47 = arith.constant dense<0.000000e+00> : vector<256xf32>
    %153 = vector.multi_reduction <add>, %152, %cst_47 [0] : vector<4x256xf32> to vector<256xf32>
    %154 = vector.shape_cast %153 : vector<256xf32> to vector<1x256xf32>
    %cst_48 = arith.constant 2.500000e-01 : f32
    %155 = vector.broadcast %cst_48 : f32 to vector<1x256xf32>
    %156 = arith.mulf %154, %155 : vector<1x256xf32>
    %cst_49 = arith.constant dense<0xFF800000> : vector<256xf32>
    %157 = vector.multi_reduction <maximumf>, %152, %cst_49 [0] : vector<4x256xf32> to vector<256xf32>
    %158 = vector.shape_cast %157 : vector<256xf32> to vector<1x256xf32>
    %159 = tpu.iota {dimensions = array<i32: 0>} : vector<2x256xi32>
    %c0_i32_50 = arith.constant 0 : i32
    %160 = vector.broadcast %c0_i32_50 : i32 to vector<2x256xi32>
    %161 = arith.cmpi eq, %159, %160 : vector<2x256xi32>
    %162 = vector.shape_cast %156 : vector<1x256xf32> to vector<1x256xf32>
    %163 = vector.broadcast %162 : vector<1x256xf32> to vector<2x256xf32>
    %164 = vector.shape_cast %158 : vector<1x256xf32> to vector<1x256xf32>
    %165 = vector.broadcast %164 : vector<1x256xf32> to vector<2x256xf32>
    %166 = arith.select %161, %163, %165 : vector<2x256xi1>, vector<2x256xf32>
    %c0_51 = arith.constant 0 : index
    %c51_52 = arith.constant 51 : index
    %167 = vector.load %arg8[%c0_51, %c51_52] : memref<2x358xf32, #tpu.memory_space<vmem>>, vector<2x256xf32>
    tpu.vector_store %arg8[%c0_51, %c51_52], %166 {strides = array<i32>} : memref<2x358xf32, #tpu.memory_space<vmem>>, vector<2x256xf32>,
    %cst_53 = arith.constant 0.000000e+00 : f32
    %168 = vector.broadcast %cst_53 : f32 to vector<1x256xf32>
    %169 = vector.broadcast %2 : f32 to vector<1x256xf32>
    %170 = arith.addf %168, %169 : vector<1x256xf32>
    %c0_54 = arith.constant 0 : index
    %c0_55 = arith.constant 0 : index
    %171 = vector.load %arg8[%c0_54, %c0_55] : memref<2x358xf32, #tpu.memory_space<vmem>>, vector<2x256xf32>
    %172 = vector.extract_strided_slice %171 {offsets = [0, 0], sizes = [1, 256], strides = [1, 1]} : vector<2x256xf32> to vector<1x256xf32>
    %173 = vector.broadcast %3 : f32 to vector<1x256xf32>
    %174 = arith.mulf %173, %172 : vector<1x256xf32>
    %175 = vector.extract_strided_slice %171 {offsets = [1, 0], sizes = [1, 256], strides = [1, 1]} : vector<2x256xf32> to vector<1x256xf32>
    %176 = vector.broadcast %52 : f32 to vector<1x256xf32>
    %177 = arith.mulf %176, %175 : vector<1x256xf32>
    %178 = arith.addf %174, %177 : vector<1x256xf32>
    %179 = arith.mulf %101, %108 : vector<1x256xf32>
    %180 = arith.mulf %178, %179 : vector<1x256xf32>
    %181 = arith.addf %170, %180 : vector<1x256xf32>
    %c0_56 = arith.constant 0 : index
    %c1_57 = arith.constant 1 : index
    %182 = vector.load %arg8[%c0_56, %c1_57] : memref<2x358xf32, #tpu.memory_space<vmem>>, vector<2x256xf32>
    %183 = vector.extract_strided_slice %182 {offsets = [0, 0], sizes = [1, 256], strides = [1, 1]} : vector<2x256xf32> to vector<1x256xf32>
    %184 = vector.broadcast %4 : f32 to vector<1x256xf32>
    %185 = arith.mulf %184, %183 : vector<1x256xf32>
    %186 = vector.extract_strided_slice %182 {offsets = [1, 0], sizes = [1, 256], strides = [1, 1]} : vector<2x256xf32> to vector<1x256xf32>
    %187 = vector.broadcast %53 : f32 to vector<1x256xf32>
    %188 = arith.mulf %187, %186 : vector<1x256xf32>
    %189 = arith.addf %185, %188 : vector<1x256xf32>
    %190 = arith.mulf %101, %109 : vector<1x256xf32>
    %191 = arith.mulf %189, %190 : vector<1x256xf32>
    %192 = arith.addf %181, %191 : vector<1x256xf32>
    %c0_58 = arith.constant 0 : index
    %c2_59 = arith.constant 2 : index
    %193 = vector.load %arg8[%c0_58, %c2_59] : memref<2x358xf32, #tpu.memory_space<vmem>>, vector<2x256xf32>
    %194 = vector.extract_strided_slice %193 {offsets = [0, 0], sizes = [1, 256], strides = [1, 1]} : vector<2x256xf32> to vector<1x256xf32>
    %195 = vector.broadcast %5 : f32 to vector<1x256xf32>
    %196 = arith.mulf %195, %194 : vector<1x256xf32>
    %197 = vector.extract_strided_slice %193 {offsets = [1, 0], sizes = [1, 256], strides = [1, 1]} : vector<2x256xf32> to vector<1x256xf32>
    %198 = vector.broadcast %54 : f32 to vector<1x256xf32>
    %199 = arith.mulf %198, %197 : vector<1x256xf32>
    %200 = arith.addf %196, %199 : vector<1x256xf32>
    %201 = arith.mulf %101, %110 : vector<1x256xf32>
    %202 = arith.mulf %200, %201 : vector<1x256xf32>
    %203 = arith.addf %192, %202 : vector<1x256xf32>
    %c0_60 = arith.constant 0 : index
    %c3_61 = arith.constant 3 : index
    %204 = vector.load %arg8[%c0_60, %c3_61] : memref<2x358xf32, #tpu.memory_space<vmem>>, vector<2x256xf32>
    %205 = vector.extract_strided_slice %204 {offsets = [0, 0], sizes = [1, 256], strides = [1, 1]} : vector<2x256xf32> to vector<1x256xf32>
    %206 = vector.broadcast %6 : f32 to vector<1x256xf32>
    %207 = arith.mulf %206, %205 : vector<1x256xf32>
    %208 = vector.extract_strided_slice %204 {offsets = [1, 0], sizes = [1, 256], strides = [1, 1]} : vector<2x256xf32> to vector<1x256xf32>
    %209 = vector.broadcast %55 : f32 to vector<1x256xf32>
    %210 = arith.mulf %209, %208 : vector<1x256xf32>
    %211 = arith.addf %207, %210 : vector<1x256xf32>
    %212 = arith.mulf %101, %111 : vector<1x256xf32>
    %213 = arith.mulf %211, %212 : vector<1x256xf32>
    %214 = arith.addf %203, %213 : vector<1x256xf32>
    %c0_62 = arith.constant 0 : index
    %c4_63 = arith.constant 4 : index
    %215 = vector.load %arg8[%c0_62, %c4_63] : memref<2x358xf32, #tpu.memory_space<vmem>>, vector<2x256xf32>
    %216 = vector.extract_strided_slice %215 {offsets = [0, 0], sizes = [1, 256], strides = [1, 1]} : vector<2x256xf32> to vector<1x256xf32>
    %217 = vector.broadcast %7 : f32 to vector<1x256xf32>
    %218 = arith.mulf %217, %216 : vector<1x256xf32>
    %219 = vector.extract_strided_slice %215 {offsets = [1, 0], sizes = [1, 256], strides = [1, 1]} : vector<2x256xf32> to vector<1x256xf32>
    %220 = vector.broadcast %56 : f32 to vector<1x256xf32>
    %221 = arith.mulf %220, %219 : vector<1x256xf32>
    %222 = arith.addf %218, %221 : vector<1x256xf32>
    %223 = arith.mulf %101, %112 : vector<1x256xf32>
    %224 = arith.mulf %222, %223 : vector<1x256xf32>
    %225 = arith.addf %214, %224 : vector<1x256xf32>
    %c0_64 = arith.constant 0 : index
    %c5_65 = arith.constant 5 : index
    %226 = vector.load %arg8[%c0_64, %c5_65] : memref<2x358xf32, #tpu.memory_space<vmem>>, vector<2x256xf32>
    %227 = vector.extract_strided_slice %226 {offsets = [0, 0], sizes = [1, 256], strides = [1, 1]} : vector<2x256xf32> to vector<1x256xf32>
    %228 = vector.broadcast %8 : f32 to vector<1x256xf32>
    %229 = arith.mulf %228, %227 : vector<1x256xf32>
    %230 = vector.extract_strided_slice %226 {offsets = [1, 0], sizes = [1, 256], strides = [1, 1]} : vector<2x256xf32> to vector<1x256xf32>
    %231 = vector.broadcast %57 : f32 to vector<1x256xf32>
    %232 = arith.mulf %231, %230 : vector<1x256xf32>
    %233 = arith.addf %229, %232 : vector<1x256xf32>
    %234 = arith.mulf %101, %113 : vector<1x256xf32>
    %235 = arith.mulf %233, %234 : vector<1x256xf32>
    %236 = arith.addf %225, %235 : vector<1x256xf32>
    %c0_66 = arith.constant 0 : index
    %c6_67 = arith.constant 6 : index
    %237 = vector.load %arg8[%c0_66, %c6_67] : memref<2x358xf32, #tpu.memory_space<vmem>>, vector<2x256xf32>
    %238 = vector.extract_strided_slice %237 {offsets = [0, 0], sizes = [1, 256], strides = [1, 1]} : vector<2x256xf32> to vector<1x256xf32>
    %239 = vector.broadcast %9 : f32 to vector<1x256xf32>
    %240 = arith.mulf %239, %238 : vector<1x256xf32>
    %241 = vector.extract_strided_slice %237 {offsets = [1, 0], sizes = [1, 256], strides = [1, 1]} : vector<2x256xf32> to vector<1x256xf32>
    %242 = vector.broadcast %58 : f32 to vector<1x256xf32>
    %243 = arith.mulf %242, %241 : vector<1x256xf32>
    %244 = arith.addf %240, %243 : vector<1x256xf32>
    %245 = arith.mulf %101, %114 : vector<1x256xf32>
    %246 = arith.mulf %244, %245 : vector<1x256xf32>
    %247 = arith.addf %236, %246 : vector<1x256xf32>
    %c0_68 = arith.constant 0 : index
    %c16_69 = arith.constant 16 : index
    %248 = vector.load %arg8[%c0_68, %c16_69] : memref<2x358xf32, #tpu.memory_space<vmem>>, vector<2x256xf32>
    %249 = vector.extract_strided_slice %248 {offsets = [0, 0], sizes = [1, 256], strides = [1, 1]} : vector<2x256xf32> to vector<1x256xf32>
    %250 = vector.broadcast %10 : f32 to vector<1x256xf32>
    %251 = arith.mulf %250, %249 : vector<1x256xf32>
    %252 = vector.extract_strided_slice %248 {offsets = [1, 0], sizes = [1, 256], strides = [1, 1]} : vector<2x256xf32> to vector<1x256xf32>
    %253 = vector.broadcast %59 : f32 to vector<1x256xf32>
    %254 = arith.mulf %253, %252 : vector<1x256xf32>
    %255 = arith.addf %251, %254 : vector<1x256xf32>
    %256 = arith.mulf %102, %108 : vector<1x256xf32>
    %257 = arith.mulf %255, %256 : vector<1x256xf32>
    %258 = arith.addf %247, %257 : vector<1x256xf32>
    %c0_70 = arith.constant 0 : index
    %c17_71 = arith.constant 17 : index
    %259 = vector.load %arg8[%c0_70, %c17_71] : memref<2x358xf32, #tpu.memory_space<vmem>>, vector<2x256xf32>
    %260 = vector.extract_strided_slice %259 {offsets = [0, 0], sizes = [1, 256], strides = [1, 1]} : vector<2x256xf32> to vector<1x256xf32>
    %261 = vector.broadcast %11 : f32 to vector<1x256xf32>
    %262 = arith.mulf %261, %260 : vector<1x256xf32>
    %263 = vector.extract_strided_slice %259 {offsets = [1, 0], sizes = [1, 256], strides = [1, 1]} : vector<2x256xf32> to vector<1x256xf32>
    %264 = vector.broadcast %60 : f32 to vector<1x256xf32>
    %265 = arith.mulf %264, %263 : vector<1x256xf32>
    %266 = arith.addf %262, %265 : vector<1x256xf32>
    %267 = arith.mulf %102, %109 : vector<1x256xf32>
    %268 = arith.mulf %266, %267 : vector<1x256xf32>
    %269 = arith.addf %258, %268 : vector<1x256xf32>
    %c0_72 = arith.constant 0 : index
    %c18_73 = arith.constant 18 : index
    %270 = vector.load %arg8[%c0_72, %c18_73] : memref<2x358xf32, #tpu.memory_space<vmem>>, vector<2x256xf32>
    %271 = vector.extract_strided_slice %270 {offsets = [0, 0], sizes = [1, 256], strides = [1, 1]} : vector<2x256xf32> to vector<1x256xf32>
    %272 = vector.broadcast %12 : f32 to vector<1x256xf32>
    %273 = arith.mulf %272, %271 : vector<1x256xf32>
    %274 = vector.extract_strided_slice %270 {offsets = [1, 0], sizes = [1, 256], strides = [1, 1]} : vector<2x256xf32> to vector<1x256xf32>
    %275 = vector.broadcast %61 : f32 to vector<1x256xf32>
    %276 = arith.mulf %275, %274 : vector<1x256xf32>
    %277 = arith.addf %273, %276 : vector<1x256xf32>
    %278 = arith.mulf %102, %110 : vector<1x256xf32>
    %279 = arith.mulf %277, %278 : vector<1x256xf32>
    %280 = arith.addf %269, %279 : vector<1x256xf32>
    %c0_74 = arith.constant 0 : index
    %c19_75 = arith.constant 19 : index
    %281 = vector.load %arg8[%c0_74, %c19_75] : memref<2x358xf32, #tpu.memory_space<vmem>>, vector<2x256xf32>
    %282 = vector.extract_strided_slice %281 {offsets = [0, 0], sizes = [1, 256], strides = [1, 1]} : vector<2x256xf32> to vector<1x256xf32>
    %283 = vector.broadcast %13 : f32 to vector<1x256xf32>
    %284 = arith.mulf %283, %282 : vector<1x256xf32>
    %285 = vector.extract_strided_slice %281 {offsets = [1, 0], sizes = [1, 256], strides = [1, 1]} : vector<2x256xf32> to vector<1x256xf32>
    %286 = vector.broadcast %62 : f32 to vector<1x256xf32>
    %287 = arith.mulf %286, %285 : vector<1x256xf32>
    %288 = arith.addf %284, %287 : vector<1x256xf32>
    %289 = arith.mulf %102, %111 : vector<1x256xf32>
    %290 = arith.mulf %288, %289 : vector<1x256xf32>
    %291 = arith.addf %280, %290 : vector<1x256xf32>
    %c0_76 = arith.constant 0 : index
    %c20_77 = arith.constant 20 : index
    %292 = vector.load %arg8[%c0_76, %c20_77] : memref<2x358xf32, #tpu.memory_space<vmem>>, vector<2x256xf32>
    %293 = vector.extract_strided_slice %292 {offsets = [0, 0], sizes = [1, 256], strides = [1, 1]} : vector<2x256xf32> to vector<1x256xf32>
    %294 = vector.broadcast %14 : f32 to vector<1x256xf32>
    %295 = arith.mulf %294, %293 : vector<1x256xf32>
    %296 = vector.extract_strided_slice %292 {offsets = [1, 0], sizes = [1, 256], strides = [1, 1]} : vector<2x256xf32> to vector<1x256xf32>
    %297 = vector.broadcast %63 : f32 to vector<1x256xf32>
    %298 = arith.mulf %297, %296 : vector<1x256xf32>
    %299 = arith.addf %295, %298 : vector<1x256xf32>
    %300 = arith.mulf %102, %112 : vector<1x256xf32>
    %301 = arith.mulf %299, %300 : vector<1x256xf32>
    %302 = arith.addf %291, %301 : vector<1x256xf32>
    %c0_78 = arith.constant 0 : index
    %c21_79 = arith.constant 21 : index
    %303 = vector.load %arg8[%c0_78, %c21_79] : memref<2x358xf32, #tpu.memory_space<vmem>>, vector<2x256xf32>
    %304 = vector.extract_strided_slice %303 {offsets = [0, 0], sizes = [1, 256], strides = [1, 1]} : vector<2x256xf32> to vector<1x256xf32>
    %305 = vector.broadcast %15 : f32 to vector<1x256xf32>
    %306 = arith.mulf %305, %304 : vector<1x256xf32>
    %307 = vector.extract_strided_slice %303 {offsets = [1, 0], sizes = [1, 256], strides = [1, 1]} : vector<2x256xf32> to vector<1x256xf32>
    %308 = vector.broadcast %64 : f32 to vector<1x256xf32>
    %309 = arith.mulf %308, %307 : vector<1x256xf32>
    %310 = arith.addf %306, %309 : vector<1x256xf32>
    %311 = arith.mulf %102, %113 : vector<1x256xf32>
    %312 = arith.mulf %310, %311 : vector<1x256xf32>
    %313 = arith.addf %302, %312 : vector<1x256xf32>
    %c0_80 = arith.constant 0 : index
    %c22_81 = arith.constant 22 : index
    %314 = vector.load %arg8[%c0_80, %c22_81] : memref<2x358xf32, #tpu.memory_space<vmem>>, vector<2x256xf32>
    %315 = vector.extract_strided_slice %314 {offsets = [0, 0], sizes = [1, 256], strides = [1, 1]} : vector<2x256xf32> to vector<1x256xf32>
    %316 = vector.broadcast %16 : f32 to vector<1x256xf32>
    %317 = arith.mulf %316, %315 : vector<1x256xf32>
    %318 = vector.extract_strided_slice %314 {offsets = [1, 0], sizes = [1, 256], strides = [1, 1]} : vector<2x256xf32> to vector<1x256xf32>
    %319 = vector.broadcast %65 : f32 to vector<1x256xf32>
    %320 = arith.mulf %319, %318 : vector<1x256xf32>
    %321 = arith.addf %317, %320 : vector<1x256xf32>
    %322 = arith.mulf %102, %114 : vector<1x256xf32>
    %323 = arith.mulf %321, %322 : vector<1x256xf32>
    %324 = arith.addf %313, %323 : vector<1x256xf32>
    %c0_82 = arith.constant 0 : index
    %c32_83 = arith.constant 32 : index
    %325 = vector.load %arg8[%c0_82, %c32_83] : memref<2x358xf32, #tpu.memory_space<vmem>>, vector<2x256xf32>
    %326 = vector.extract_strided_slice %325 {offsets = [0, 0], sizes = [1, 256], strides = [1, 1]} : vector<2x256xf32> to vector<1x256xf32>
    %327 = vector.broadcast %17 : f32 to vector<1x256xf32>
    %328 = arith.mulf %327, %326 : vector<1x256xf32>
    %329 = vector.extract_strided_slice %325 {offsets = [1, 0], sizes = [1, 256], strides = [1, 1]} : vector<2x256xf32> to vector<1x256xf32>
    %330 = vector.broadcast %66 : f32 to vector<1x256xf32>
    %331 = arith.mulf %330, %329 : vector<1x256xf32>
    %332 = arith.addf %328, %331 : vector<1x256xf32>
    %333 = arith.mulf %103, %108 : vector<1x256xf32>
    %334 = arith.mulf %332, %333 : vector<1x256xf32>
    %335 = arith.addf %324, %334 : vector<1x256xf32>
    %c0_84 = arith.constant 0 : index
    %c33_85 = arith.constant 33 : index
    %336 = vector.load %arg8[%c0_84, %c33_85] : memref<2x358xf32, #tpu.memory_space<vmem>>, vector<2x256xf32>
    %337 = vector.extract_strided_slice %336 {offsets = [0, 0], sizes = [1, 256], strides = [1, 1]} : vector<2x256xf32> to vector<1x256xf32>
    %338 = vector.broadcast %18 : f32 to vector<1x256xf32>
    %339 = arith.mulf %338, %337 : vector<1x256xf32>
    %340 = vector.extract_strided_slice %336 {offsets = [1, 0], sizes = [1, 256], strides = [1, 1]} : vector<2x256xf32> to vector<1x256xf32>
    %341 = vector.broadcast %67 : f32 to vector<1x256xf32>
    %342 = arith.mulf %341, %340 : vector<1x256xf32>
    %343 = arith.addf %339, %342 : vector<1x256xf32>
    %344 = arith.mulf %103, %109 : vector<1x256xf32>
    %345 = arith.mulf %343, %344 : vector<1x256xf32>
    %346 = arith.addf %335, %345 : vector<1x256xf32>
    %c0_86 = arith.constant 0 : index
    %c34_87 = arith.constant 34 : index
    %347 = vector.load %arg8[%c0_86, %c34_87] : memref<2x358xf32, #tpu.memory_space<vmem>>, vector<2x256xf32>
    %348 = vector.extract_strided_slice %347 {offsets = [0, 0], sizes = [1, 256], strides = [1, 1]} : vector<2x256xf32> to vector<1x256xf32>
    %349 = vector.broadcast %19 : f32 to vector<1x256xf32>
    %350 = arith.mulf %349, %348 : vector<1x256xf32>
    %351 = vector.extract_strided_slice %347 {offsets = [1, 0], sizes = [1, 256], strides = [1, 1]} : vector<2x256xf32> to vector<1x256xf32>
    %352 = vector.broadcast %68 : f32 to vector<1x256xf32>
    %353 = arith.mulf %352, %351 : vector<1x256xf32>
    %354 = arith.addf %350, %353 : vector<1x256xf32>
    %355 = arith.mulf %103, %110 : vector<1x256xf32>
    %356 = arith.mulf %354, %355 : vector<1x256xf32>
    %357 = arith.addf %346, %356 : vector<1x256xf32>
    %c0_88 = arith.constant 0 : index
    %c35_89 = arith.constant 35 : index
    %358 = vector.load %arg8[%c0_88, %c35_89] : memref<2x358xf32, #tpu.memory_space<vmem>>, vector<2x256xf32>
    %359 = vector.extract_strided_slice %358 {offsets = [0, 0], sizes = [1, 256], strides = [1, 1]} : vector<2x256xf32> to vector<1x256xf32>
    %360 = vector.broadcast %20 : f32 to vector<1x256xf32>
    %361 = arith.mulf %360, %359 : vector<1x256xf32>
    %362 = vector.extract_strided_slice %358 {offsets = [1, 0], sizes = [1, 256], strides = [1, 1]} : vector<2x256xf32> to vector<1x256xf32>
    %363 = vector.broadcast %69 : f32 to vector<1x256xf32>
    %364 = arith.mulf %363, %362 : vector<1x256xf32>
    %365 = arith.addf %361, %364 : vector<1x256xf32>
    %366 = arith.mulf %103, %111 : vector<1x256xf32>
    %367 = arith.mulf %365, %366 : vector<1x256xf32>
    %368 = arith.addf %357, %367 : vector<1x256xf32>
    %c0_90 = arith.constant 0 : index
    %c36_91 = arith.constant 36 : index
    %369 = vector.load %arg8[%c0_90, %c36_91] : memref<2x358xf32, #tpu.memory_space<vmem>>, vector<2x256xf32>
    %370 = vector.extract_strided_slice %369 {offsets = [0, 0], sizes = [1, 256], strides = [1, 1]} : vector<2x256xf32> to vector<1x256xf32>
    %371 = vector.broadcast %21 : f32 to vector<1x256xf32>
    %372 = arith.mulf %371, %370 : vector<1x256xf32>
    %373 = vector.extract_strided_slice %369 {offsets = [1, 0], sizes = [1, 256], strides = [1, 1]} : vector<2x256xf32> to vector<1x256xf32>
    %374 = vector.broadcast %70 : f32 to vector<1x256xf32>
    %375 = arith.mulf %374, %373 : vector<1x256xf32>
    %376 = arith.addf %372, %375 : vector<1x256xf32>
    %377 = arith.mulf %103, %112 : vector<1x256xf32>
    %378 = arith.mulf %376, %377 : vector<1x256xf32>
    %379 = arith.addf %368, %378 : vector<1x256xf32>
    %c0_92 = arith.constant 0 : index
    %c37_93 = arith.constant 37 : index
    %380 = vector.load %arg8[%c0_92, %c37_93] : memref<2x358xf32, #tpu.memory_space<vmem>>, vector<2x256xf32>
    %381 = vector.extract_strided_slice %380 {offsets = [0, 0], sizes = [1, 256], strides = [1, 1]} : vector<2x256xf32> to vector<1x256xf32>
    %382 = vector.broadcast %22 : f32 to vector<1x256xf32>
    %383 = arith.mulf %382, %381 : vector<1x256xf32>
    %384 = vector.extract_strided_slice %380 {offsets = [1, 0], sizes = [1, 256], strides = [1, 1]} : vector<2x256xf32> to vector<1x256xf32>
    %385 = vector.broadcast %71 : f32 to vector<1x256xf32>
    %386 = arith.mulf %385, %384 : vector<1x256xf32>
    %387 = arith.addf %383, %386 : vector<1x256xf32>
    %388 = arith.mulf %103, %113 : vector<1x256xf32>
    %389 = arith.mulf %387, %388 : vector<1x256xf32>
    %390 = arith.addf %379, %389 : vector<1x256xf32>
    %c0_94 = arith.constant 0 : index
    %c38_95 = arith.constant 38 : index
    %391 = vector.load %arg8[%c0_94, %c38_95] : memref<2x358xf32, #tpu.memory_space<vmem>>, vector<2x256xf32>
    %392 = vector.extract_strided_slice %391 {offsets = [0, 0], sizes = [1, 256], strides = [1, 1]} : vector<2x256xf32> to vector<1x256xf32>
    %393 = vector.broadcast %23 : f32 to vector<1x256xf32>
    %394 = arith.mulf %393, %392 : vector<1x256xf32>
    %395 = vector.extract_strided_slice %391 {offsets = [1, 0], sizes = [1, 256], strides = [1, 1]} : vector<2x256xf32> to vector<1x256xf32>
    %396 = vector.broadcast %72 : f32 to vector<1x256xf32>
    %397 = arith.mulf %396, %395 : vector<1x256xf32>
    %398 = arith.addf %394, %397 : vector<1x256xf32>
    %399 = arith.mulf %103, %114 : vector<1x256xf32>
    %400 = arith.mulf %398, %399 : vector<1x256xf32>
    %401 = arith.addf %390, %400 : vector<1x256xf32>
    %c0_96 = arith.constant 0 : index
    %c48_97 = arith.constant 48 : index
    %402 = vector.load %arg8[%c0_96, %c48_97] : memref<2x358xf32, #tpu.memory_space<vmem>>, vector<2x256xf32>
    %403 = vector.extract_strided_slice %402 {offsets = [0, 0], sizes = [1, 256], strides = [1, 1]} : vector<2x256xf32> to vector<1x256xf32>
    %404 = vector.broadcast %24 : f32 to vector<1x256xf32>
    %405 = arith.mulf %404, %403 : vector<1x256xf32>
    %406 = vector.extract_strided_slice %402 {offsets = [1, 0], sizes = [1, 256], strides = [1, 1]} : vector<2x256xf32> to vector<1x256xf32>
    %407 = vector.broadcast %73 : f32 to vector<1x256xf32>
    %408 = arith.mulf %407, %406 : vector<1x256xf32>
    %409 = arith.addf %405, %408 : vector<1x256xf32>
    %410 = arith.mulf %104, %108 : vector<1x256xf32>
    %411 = arith.mulf %409, %410 : vector<1x256xf32>
    %412 = arith.addf %401, %411 : vector<1x256xf32>
    %c0_98 = arith.constant 0 : index
    %c49_99 = arith.constant 49 : index
    %413 = vector.load %arg8[%c0_98, %c49_99] : memref<2x358xf32, #tpu.memory_space<vmem>>, vector<2x256xf32>
    %414 = vector.extract_strided_slice %413 {offsets = [0, 0], sizes = [1, 256], strides = [1, 1]} : vector<2x256xf32> to vector<1x256xf32>
    %415 = vector.broadcast %25 : f32 to vector<1x256xf32>
    %416 = arith.mulf %415, %414 : vector<1x256xf32>
    %417 = vector.extract_strided_slice %413 {offsets = [1, 0], sizes = [1, 256], strides = [1, 1]} : vector<2x256xf32> to vector<1x256xf32>
    %418 = vector.broadcast %74 : f32 to vector<1x256xf32>
    %419 = arith.mulf %418, %417 : vector<1x256xf32>
    %420 = arith.addf %416, %419 : vector<1x256xf32>
    %421 = arith.mulf %104, %109 : vector<1x256xf32>
    %422 = arith.mulf %420, %421 : vector<1x256xf32>
    %423 = arith.addf %412, %422 : vector<1x256xf32>
    %c0_100 = arith.constant 0 : index
    %c50_101 = arith.constant 50 : index
    %424 = vector.load %arg8[%c0_100, %c50_101] : memref<2x358xf32, #tpu.memory_space<vmem>>, vector<2x256xf32>
    %425 = vector.extract_strided_slice %424 {offsets = [0, 0], sizes = [1, 256], strides = [1, 1]} : vector<2x256xf32> to vector<1x256xf32>
    %426 = vector.broadcast %26 : f32 to vector<1x256xf32>
    %427 = arith.mulf %426, %425 : vector<1x256xf32>
    %428 = vector.extract_strided_slice %424 {offsets = [1, 0], sizes = [1, 256], strides = [1, 1]} : vector<2x256xf32> to vector<1x256xf32>
    %429 = vector.broadcast %75 : f32 to vector<1x256xf32>
    %430 = arith.mulf %429, %428 : vector<1x256xf32>
    %431 = arith.addf %427, %430 : vector<1x256xf32>
    %432 = arith.mulf %104, %110 : vector<1x256xf32>
    %433 = arith.mulf %431, %432 : vector<1x256xf32>
    %434 = arith.addf %423, %433 : vector<1x256xf32>
    %c0_102 = arith.constant 0 : index
    %c51_103 = arith.constant 51 : index
    %435 = vector.load %arg8[%c0_102, %c51_103] : memref<2x358xf32, #tpu.memory_space<vmem>>, vector<2x256xf32>
    %436 = vector.extract_strided_slice %435 {offsets = [0, 0], sizes = [1, 256], strides = [1, 1]} : vector<2x256xf32> to vector<1x256xf32>
    %437 = vector.broadcast %27 : f32 to vector<1x256xf32>
    %438 = arith.mulf %437, %436 : vector<1x256xf32>
    %439 = vector.extract_strided_slice %435 {offsets = [1, 0], sizes = [1, 256], strides = [1, 1]} : vector<2x256xf32> to vector<1x256xf32>
    %440 = vector.broadcast %76 : f32 to vector<1x256xf32>
    %441 = arith.mulf %440, %439 : vector<1x256xf32>
    %442 = arith.addf %438, %441 : vector<1x256xf32>
    %443 = arith.mulf %104, %111 : vector<1x256xf32>
    %444 = arith.mulf %442, %443 : vector<1x256xf32>
    %445 = arith.addf %434, %444 : vector<1x256xf32>
    %c0_104 = arith.constant 0 : index
    %c52_105 = arith.constant 52 : index
    %446 = vector.load %arg8[%c0_104, %c52_105] : memref<2x358xf32, #tpu.memory_space<vmem>>, vector<2x256xf32>
    %447 = vector.extract_strided_slice %446 {offsets = [0, 0], sizes = [1, 256], strides = [1, 1]} : vector<2x256xf32> to vector<1x256xf32>
    %448 = vector.broadcast %28 : f32 to vector<1x256xf32>
    %449 = arith.mulf %448, %447 : vector<1x256xf32>
    %450 = vector.extract_strided_slice %446 {offsets = [1, 0], sizes = [1, 256], strides = [1, 1]} : vector<2x256xf32> to vector<1x256xf32>
    %451 = vector.broadcast %77 : f32 to vector<1x256xf32>
    %452 = arith.mulf %451, %450 : vector<1x256xf32>
    %453 = arith.addf %449, %452 : vector<1x256xf32>
    %454 = arith.mulf %104, %112 : vector<1x256xf32>
    %455 = arith.mulf %453, %454 : vector<1x256xf32>
    %456 = arith.addf %445, %455 : vector<1x256xf32>
    %c0_106 = arith.constant 0 : index
    %c53_107 = arith.constant 53 : index
    %457 = vector.load %arg8[%c0_106, %c53_107] : memref<2x358xf32, #tpu.memory_space<vmem>>, vector<2x256xf32>
    %458 = vector.extract_strided_slice %457 {offsets = [0, 0], sizes = [1, 256], strides = [1, 1]} : vector<2x256xf32> to vector<1x256xf32>
    %459 = vector.broadcast %29 : f32 to vector<1x256xf32>
    %460 = arith.mulf %459, %458 : vector<1x256xf32>
    %461 = vector.extract_strided_slice %457 {offsets = [1, 0], sizes = [1, 256], strides = [1, 1]} : vector<2x256xf32> to vector<1x256xf32>
    %462 = vector.broadcast %78 : f32 to vector<1x256xf32>
    %463 = arith.mulf %462, %461 : vector<1x256xf32>
    %464 = arith.addf %460, %463 : vector<1x256xf32>
    %465 = arith.mulf %104, %113 : vector<1x256xf32>
    %466 = arith.mulf %464, %465 : vector<1x256xf32>
    %467 = arith.addf %456, %466 : vector<1x256xf32>
    %c0_108 = arith.constant 0 : index
    %c54_109 = arith.constant 54 : index
    %468 = vector.load %arg8[%c0_108, %c54_109] : memref<2x358xf32, #tpu.memory_space<vmem>>, vector<2x256xf32>
    %469 = vector.extract_strided_slice %468 {offsets = [0, 0], sizes = [1, 256], strides = [1, 1]} : vector<2x256xf32> to vector<1x256xf32>
    %470 = vector.broadcast %30 : f32 to vector<1x256xf32>
    %471 = arith.mulf %470, %469 : vector<1x256xf32>
    %472 = vector.extract_strided_slice %468 {offsets = [1, 0], sizes = [1, 256], strides = [1, 1]} : vector<2x256xf32> to vector<1x256xf32>
    %473 = vector.broadcast %79 : f32 to vector<1x256xf32>
    %474 = arith.mulf %473, %472 : vector<1x256xf32>
    %475 = arith.addf %471, %474 : vector<1x256xf32>
    %476 = arith.mulf %104, %114 : vector<1x256xf32>
    %477 = arith.mulf %475, %476 : vector<1x256xf32>
    %478 = arith.addf %467, %477 : vector<1x256xf32>
    %c0_110 = arith.constant 0 : index
    %c64_111 = arith.constant 64 : index
    %479 = vector.load %arg8[%c0_110, %c64_111] : memref<2x358xf32, #tpu.memory_space<vmem>>, vector<2x256xf32>
    %480 = vector.extract_strided_slice %479 {offsets = [0, 0], sizes = [1, 256], strides = [1, 1]} : vector<2x256xf32> to vector<1x256xf32>
    %481 = vector.broadcast %31 : f32 to vector<1x256xf32>
    %482 = arith.mulf %481, %480 : vector<1x256xf32>
    %483 = vector.extract_strided_slice %479 {offsets = [1, 0], sizes = [1, 256], strides = [1, 1]} : vector<2x256xf32> to vector<1x256xf32>
    %484 = vector.broadcast %80 : f32 to vector<1x256xf32>
    %485 = arith.mulf %484, %483 : vector<1x256xf32>
    %486 = arith.addf %482, %485 : vector<1x256xf32>
    %487 = arith.mulf %105, %108 : vector<1x256xf32>
    %488 = arith.mulf %486, %487 : vector<1x256xf32>
    %489 = arith.addf %478, %488 : vector<1x256xf32>
    %c0_112 = arith.constant 0 : index
    %c65_113 = arith.constant 65 : index
    %490 = vector.load %arg8[%c0_112, %c65_113] : memref<2x358xf32, #tpu.memory_space<vmem>>, vector<2x256xf32>
    %491 = vector.extract_strided_slice %490 {offsets = [0, 0], sizes = [1, 256], strides = [1, 1]} : vector<2x256xf32> to vector<1x256xf32>
    %492 = vector.broadcast %32 : f32 to vector<1x256xf32>
    %493 = arith.mulf %492, %491 : vector<1x256xf32>
    %494 = vector.extract_strided_slice %490 {offsets = [1, 0], sizes = [1, 256], strides = [1, 1]} : vector<2x256xf32> to vector<1x256xf32>
    %495 = vector.broadcast %81 : f32 to vector<1x256xf32>
    %496 = arith.mulf %495, %494 : vector<1x256xf32>
    %497 = arith.addf %493, %496 : vector<1x256xf32>
    %498 = arith.mulf %105, %109 : vector<1x256xf32>
    %499 = arith.mulf %497, %498 : vector<1x256xf32>
    %500 = arith.addf %489, %499 : vector<1x256xf32>
    %c0_114 = arith.constant 0 : index
    %c66_115 = arith.constant 66 : index
    %501 = vector.load %arg8[%c0_114, %c66_115] : memref<2x358xf32, #tpu.memory_space<vmem>>, vector<2x256xf32>
    %502 = vector.extract_strided_slice %501 {offsets = [0, 0], sizes = [1, 256], strides = [1, 1]} : vector<2x256xf32> to vector<1x256xf32>
    %503 = vector.broadcast %33 : f32 to vector<1x256xf32>
    %504 = arith.mulf %503, %502 : vector<1x256xf32>
    %505 = vector.extract_strided_slice %501 {offsets = [1, 0], sizes = [1, 256], strides = [1, 1]} : vector<2x256xf32> to vector<1x256xf32>
    %506 = vector.broadcast %82 : f32 to vector<1x256xf32>
    %507 = arith.mulf %506, %505 : vector<1x256xf32>
    %508 = arith.addf %504, %507 : vector<1x256xf32>
    %509 = arith.mulf %105, %110 : vector<1x256xf32>
    %510 = arith.mulf %508, %509 : vector<1x256xf32>
    %511 = arith.addf %500, %510 : vector<1x256xf32>
    %c0_116 = arith.constant 0 : index
    %c67_117 = arith.constant 67 : index
    %512 = vector.load %arg8[%c0_116, %c67_117] : memref<2x358xf32, #tpu.memory_space<vmem>>, vector<2x256xf32>
    %513 = vector.extract_strided_slice %512 {offsets = [0, 0], sizes = [1, 256], strides = [1, 1]} : vector<2x256xf32> to vector<1x256xf32>
    %514 = vector.broadcast %34 : f32 to vector<1x256xf32>
    %515 = arith.mulf %514, %513 : vector<1x256xf32>
    %516 = vector.extract_strided_slice %512 {offsets = [1, 0], sizes = [1, 256], strides = [1, 1]} : vector<2x256xf32> to vector<1x256xf32>
    %517 = vector.broadcast %83 : f32 to vector<1x256xf32>
    %518 = arith.mulf %517, %516 : vector<1x256xf32>
    %519 = arith.addf %515, %518 : vector<1x256xf32>
    %520 = arith.mulf %105, %111 : vector<1x256xf32>
    %521 = arith.mulf %519, %520 : vector<1x256xf32>
    %522 = arith.addf %511, %521 : vector<1x256xf32>
    %c0_118 = arith.constant 0 : index
    %c68_119 = arith.constant 68 : index
    %523 = vector.load %arg8[%c0_118, %c68_119] : memref<2x358xf32, #tpu.memory_space<vmem>>, vector<2x256xf32>
    %524 = vector.extract_strided_slice %523 {offsets = [0, 0], sizes = [1, 256], strides = [1, 1]} : vector<2x256xf32> to vector<1x256xf32>
    %525 = vector.broadcast %35 : f32 to vector<1x256xf32>
    %526 = arith.mulf %525, %524 : vector<1x256xf32>
    %527 = vector.extract_strided_slice %523 {offsets = [1, 0], sizes = [1, 256], strides = [1, 1]} : vector<2x256xf32> to vector<1x256xf32>
    %528 = vector.broadcast %84 : f32 to vector<1x256xf32>
    %529 = arith.mulf %528, %527 : vector<1x256xf32>
    %530 = arith.addf %526, %529 : vector<1x256xf32>
    %531 = arith.mulf %105, %112 : vector<1x256xf32>
    %532 = arith.mulf %530, %531 : vector<1x256xf32>
    %533 = arith.addf %522, %532 : vector<1x256xf32>
    %c0_120 = arith.constant 0 : index
    %c69_121 = arith.constant 69 : index
    %534 = vector.load %arg8[%c0_120, %c69_121] : memref<2x358xf32, #tpu.memory_space<vmem>>, vector<2x256xf32>
    %535 = vector.extract_strided_slice %534 {offsets = [0, 0], sizes = [1, 256], strides = [1, 1]} : vector<2x256xf32> to vector<1x256xf32>
    %536 = vector.broadcast %36 : f32 to vector<1x256xf32>
    %537 = arith.mulf %536, %535 : vector<1x256xf32>
    %538 = vector.extract_strided_slice %534 {offsets = [1, 0], sizes = [1, 256], strides = [1, 1]} : vector<2x256xf32> to vector<1x256xf32>
    %539 = vector.broadcast %85 : f32 to vector<1x256xf32>
    %540 = arith.mulf %539, %538 : vector<1x256xf32>
    %541 = arith.addf %537, %540 : vector<1x256xf32>
    %542 = arith.mulf %105, %113 : vector<1x256xf32>
    %543 = arith.mulf %541, %542 : vector<1x256xf32>
    %544 = arith.addf %533, %543 : vector<1x256xf32>
    %c0_122 = arith.constant 0 : index
    %c70_123 = arith.constant 70 : index
    %545 = vector.load %arg8[%c0_122, %c70_123] : memref<2x358xf32, #tpu.memory_space<vmem>>, vector<2x256xf32>
    %546 = vector.extract_strided_slice %545 {offsets = [0, 0], sizes = [1, 256], strides = [1, 1]} : vector<2x256xf32> to vector<1x256xf32>
    %547 = vector.broadcast %37 : f32 to vector<1x256xf32>
    %548 = arith.mulf %547, %546 : vector<1x256xf32>
    %549 = vector.extract_strided_slice %545 {offsets = [1, 0], sizes = [1, 256], strides = [1, 1]} : vector<2x256xf32> to vector<1x256xf32>
    %550 = vector.broadcast %86 : f32 to vector<1x256xf32>
    %551 = arith.mulf %550, %549 : vector<1x256xf32>
    %552 = arith.addf %548, %551 : vector<1x256xf32>
    %553 = arith.mulf %105, %114 : vector<1x256xf32>
    %554 = arith.mulf %552, %553 : vector<1x256xf32>
    %555 = arith.addf %544, %554 : vector<1x256xf32>
    %c0_124 = arith.constant 0 : index
    %c80_125 = arith.constant 80 : index
    %556 = vector.load %arg8[%c0_124, %c80_125] : memref<2x358xf32, #tpu.memory_space<vmem>>, vector<2x256xf32>
    %557 = vector.extract_strided_slice %556 {offsets = [0, 0], sizes = [1, 256], strides = [1, 1]} : vector<2x256xf32> to vector<1x256xf32>
    %558 = vector.broadcast %38 : f32 to vector<1x256xf32>
    %559 = arith.mulf %558, %557 : vector<1x256xf32>
    %560 = vector.extract_strided_slice %556 {offsets = [1, 0], sizes = [1, 256], strides = [1, 1]} : vector<2x256xf32> to vector<1x256xf32>
    %561 = vector.broadcast %87 : f32 to vector<1x256xf32>
    %562 = arith.mulf %561, %560 : vector<1x256xf32>
    %563 = arith.addf %559, %562 : vector<1x256xf32>
    %564 = arith.mulf %106, %108 : vector<1x256xf32>
    %565 = arith.mulf %563, %564 : vector<1x256xf32>
    %566 = arith.addf %555, %565 : vector<1x256xf32>
    %c0_126 = arith.constant 0 : index
    %c81_127 = arith.constant 81 : index
    %567 = vector.load %arg8[%c0_126, %c81_127] : memref<2x358xf32, #tpu.memory_space<vmem>>, vector<2x256xf32>
    %568 = vector.extract_strided_slice %567 {offsets = [0, 0], sizes = [1, 256], strides = [1, 1]} : vector<2x256xf32> to vector<1x256xf32>
    %569 = vector.broadcast %39 : f32 to vector<1x256xf32>
    %570 = arith.mulf %569, %568 : vector<1x256xf32>
    %571 = vector.extract_strided_slice %567 {offsets = [1, 0], sizes = [1, 256], strides = [1, 1]} : vector<2x256xf32> to vector<1x256xf32>
    %572 = vector.broadcast %88 : f32 to vector<1x256xf32>
    %573 = arith.mulf %572, %571 : vector<1x256xf32>
    %574 = arith.addf %570, %573 : vector<1x256xf32>
    %575 = arith.mulf %106, %109 : vector<1x256xf32>
    %576 = arith.mulf %574, %575 : vector<1x256xf32>
    %577 = arith.addf %566, %576 : vector<1x256xf32>
    %c0_128 = arith.constant 0 : index
    %c82_129 = arith.constant 82 : index
    %578 = vector.load %arg8[%c0_128, %c82_129] : memref<2x358xf32, #tpu.memory_space<vmem>>, vector<2x256xf32>
    %579 = vector.extract_strided_slice %578 {offsets = [0, 0], sizes = [1, 256], strides = [1, 1]} : vector<2x256xf32> to vector<1x256xf32>
    %580 = vector.broadcast %40 : f32 to vector<1x256xf32>
    %581 = arith.mulf %580, %579 : vector<1x256xf32>
    %582 = vector.extract_strided_slice %578 {offsets = [1, 0], sizes = [1, 256], strides = [1, 1]} : vector<2x256xf32> to vector<1x256xf32>
    %583 = vector.broadcast %89 : f32 to vector<1x256xf32>
    %584 = arith.mulf %583, %582 : vector<1x256xf32>
    %585 = arith.addf %581, %584 : vector<1x256xf32>
    %586 = arith.mulf %106, %110 : vector<1x256xf32>
    %587 = arith.mulf %585, %586 : vector<1x256xf32>
    %588 = arith.addf %577, %587 : vector<1x256xf32>
    %c0_130 = arith.constant 0 : index
    %c83_131 = arith.constant 83 : index
    %589 = vector.load %arg8[%c0_130, %c83_131] : memref<2x358xf32, #tpu.memory_space<vmem>>, vector<2x256xf32>
    %590 = vector.extract_strided_slice %589 {offsets = [0, 0], sizes = [1, 256], strides = [1, 1]} : vector<2x256xf32> to vector<1x256xf32>
    %591 = vector.broadcast %41 : f32 to vector<1x256xf32>
    %592 = arith.mulf %591, %590 : vector<1x256xf32>
    %593 = vector.extract_strided_slice %589 {offsets = [1, 0], sizes = [1, 256], strides = [1, 1]} : vector<2x256xf32> to vector<1x256xf32>
    %594 = vector.broadcast %90 : f32 to vector<1x256xf32>
    %595 = arith.mulf %594, %593 : vector<1x256xf32>
    %596 = arith.addf %592, %595 : vector<1x256xf32>
    %597 = arith.mulf %106, %111 : vector<1x256xf32>
    %598 = arith.mulf %596, %597 : vector<1x256xf32>
    %599 = arith.addf %588, %598 : vector<1x256xf32>
    %c0_132 = arith.constant 0 : index
    %c84_133 = arith.constant 84 : index
    %600 = vector.load %arg8[%c0_132, %c84_133] : memref<2x358xf32, #tpu.memory_space<vmem>>, vector<2x256xf32>
    %601 = vector.extract_strided_slice %600 {offsets = [0, 0], sizes = [1, 256], strides = [1, 1]} : vector<2x256xf32> to vector<1x256xf32>
    %602 = vector.broadcast %42 : f32 to vector<1x256xf32>
    %603 = arith.mulf %602, %601 : vector<1x256xf32>
    %604 = vector.extract_strided_slice %600 {offsets = [1, 0], sizes = [1, 256], strides = [1, 1]} : vector<2x256xf32> to vector<1x256xf32>
    %605 = vector.broadcast %91 : f32 to vector<1x256xf32>
    %606 = arith.mulf %605, %604 : vector<1x256xf32>
    %607 = arith.addf %603, %606 : vector<1x256xf32>
    %608 = arith.mulf %106, %112 : vector<1x256xf32>
    %609 = arith.mulf %607, %608 : vector<1x256xf32>
    %610 = arith.addf %599, %609 : vector<1x256xf32>
    %c0_134 = arith.constant 0 : index
    %c85_135 = arith.constant 85 : index
    %611 = vector.load %arg8[%c0_134, %c85_135] : memref<2x358xf32, #tpu.memory_space<vmem>>, vector<2x256xf32>
    %612 = vector.extract_strided_slice %611 {offsets = [0, 0], sizes = [1, 256], strides = [1, 1]} : vector<2x256xf32> to vector<1x256xf32>
    %613 = vector.broadcast %43 : f32 to vector<1x256xf32>
    %614 = arith.mulf %613, %612 : vector<1x256xf32>
    %615 = vector.extract_strided_slice %611 {offsets = [1, 0], sizes = [1, 256], strides = [1, 1]} : vector<2x256xf32> to vector<1x256xf32>
    %616 = vector.broadcast %92 : f32 to vector<1x256xf32>
    %617 = arith.mulf %616, %615 : vector<1x256xf32>
    %618 = arith.addf %614, %617 : vector<1x256xf32>
    %619 = arith.mulf %106, %113 : vector<1x256xf32>
    %620 = arith.mulf %618, %619 : vector<1x256xf32>
    %621 = arith.addf %610, %620 : vector<1x256xf32>
    %c0_136 = arith.constant 0 : index
    %c86_137 = arith.constant 86 : index
    %622 = vector.load %arg8[%c0_136, %c86_137] : memref<2x358xf32, #tpu.memory_space<vmem>>, vector<2x256xf32>
    %623 = vector.extract_strided_slice %622 {offsets = [0, 0], sizes = [1, 256], strides = [1, 1]} : vector<2x256xf32> to vector<1x256xf32>
    %624 = vector.broadcast %44 : f32 to vector<1x256xf32>
    %625 = arith.mulf %624, %623 : vector<1x256xf32>
    %626 = vector.extract_strided_slice %622 {offsets = [1, 0], sizes = [1, 256], strides = [1, 1]} : vector<2x256xf32> to vector<1x256xf32>
    %627 = vector.broadcast %93 : f32 to vector<1x256xf32>
    %628 = arith.mulf %627, %626 : vector<1x256xf32>
    %629 = arith.addf %625, %628 : vector<1x256xf32>
    %630 = arith.mulf %106, %114 : vector<1x256xf32>
    %631 = arith.mulf %629, %630 : vector<1x256xf32>
    %632 = arith.addf %621, %631 : vector<1x256xf32>
    %c0_138 = arith.constant 0 : index
    %c96_139 = arith.constant 96 : index
    %633 = vector.load %arg8[%c0_138, %c96_139] : memref<2x358xf32, #tpu.memory_space<vmem>>, vector<2x256xf32>
    %634 = vector.extract_strided_slice %633 {offsets = [0, 0], sizes = [1, 256], strides = [1, 1]} : vector<2x256xf32> to vector<1x256xf32>
    %635 = vector.broadcast %45 : f32 to vector<1x256xf32>
    %636 = arith.mulf %635, %634 : vector<1x256xf32>
    %637 = vector.extract_strided_slice %633 {offsets = [1, 0], sizes = [1, 256], strides = [1, 1]} : vector<2x256xf32> to vector<1x256xf32>
    %638 = vector.broadcast %94 : f32 to vector<1x256xf32>
    %639 = arith.mulf %638, %637 : vector<1x256xf32>
    %640 = arith.addf %636, %639 : vector<1x256xf32>
    %641 = arith.mulf %107, %108 : vector<1x256xf32>
    %642 = arith.mulf %640, %641 : vector<1x256xf32>
    %643 = arith.addf %632, %642 : vector<1x256xf32>
    %c0_140 = arith.constant 0 : index
    %c97_141 = arith.constant 97 : index
    %644 = vector.load %arg8[%c0_140, %c97_141] : memref<2x358xf32, #tpu.memory_space<vmem>>, vector<2x256xf32>
    %645 = vector.extract_strided_slice %644 {offsets = [0, 0], sizes = [1, 256], strides = [1, 1]} : vector<2x256xf32> to vector<1x256xf32>
    %646 = vector.broadcast %46 : f32 to vector<1x256xf32>
    %647 = arith.mulf %646, %645 : vector<1x256xf32>
    %648 = vector.extract_strided_slice %644 {offsets = [1, 0], sizes = [1, 256], strides = [1, 1]} : vector<2x256xf32> to vector<1x256xf32>
    %649 = vector.broadcast %95 : f32 to vector<1x256xf32>
    %650 = arith.mulf %649, %648 : vector<1x256xf32>
    %651 = arith.addf %647, %650 : vector<1x256xf32>
    %652 = arith.mulf %107, %109 : vector<1x256xf32>
    %653 = arith.mulf %651, %652 : vector<1x256xf32>
    %654 = arith.addf %643, %653 : vector<1x256xf32>
    %c0_142 = arith.constant 0 : index
    %c98 = arith.constant 98 : index
    %655 = vector.load %arg8[%c0_142, %c98] : memref<2x358xf32, #tpu.memory_space<vmem>>, vector<2x256xf32>
    %656 = vector.extract_strided_slice %655 {offsets = [0, 0], sizes = [1, 256], strides = [1, 1]} : vector<2x256xf32> to vector<1x256xf32>
    %657 = vector.broadcast %47 : f32 to vector<1x256xf32>
    %658 = arith.mulf %657, %656 : vector<1x256xf32>
    %659 = vector.extract_strided_slice %655 {offsets = [1, 0], sizes = [1, 256], strides = [1, 1]} : vector<2x256xf32> to vector<1x256xf32>
    %660 = vector.broadcast %96 : f32 to vector<1x256xf32>
    %661 = arith.mulf %660, %659 : vector<1x256xf32>
    %662 = arith.addf %658, %661 : vector<1x256xf32>
    %663 = arith.mulf %107, %110 : vector<1x256xf32>
    %664 = arith.mulf %662, %663 : vector<1x256xf32>
    %665 = arith.addf %654, %664 : vector<1x256xf32>
    %c0_143 = arith.constant 0 : index
    %c99 = arith.constant 99 : index
    %666 = vector.load %arg8[%c0_143, %c99] : memref<2x358xf32, #tpu.memory_space<vmem>>, vector<2x256xf32>
    %667 = vector.extract_strided_slice %666 {offsets = [0, 0], sizes = [1, 256], strides = [1, 1]} : vector<2x256xf32> to vector<1x256xf32>
    %668 = vector.broadcast %48 : f32 to vector<1x256xf32>
    %669 = arith.mulf %668, %667 : vector<1x256xf32>
    %670 = vector.extract_strided_slice %666 {offsets = [1, 0], sizes = [1, 256], strides = [1, 1]} : vector<2x256xf32> to vector<1x256xf32>
    %671 = vector.broadcast %97 : f32 to vector<1x256xf32>
    %672 = arith.mulf %671, %670 : vector<1x256xf32>
    %673 = arith.addf %669, %672 : vector<1x256xf32>
    %674 = arith.mulf %107, %111 : vector<1x256xf32>
    %675 = arith.mulf %673, %674 : vector<1x256xf32>
    %676 = arith.addf %665, %675 : vector<1x256xf32>
    %c0_144 = arith.constant 0 : index
    %c100 = arith.constant 100 : index
    %677 = vector.load %arg8[%c0_144, %c100] : memref<2x358xf32, #tpu.memory_space<vmem>>, vector<2x256xf32>
    %678 = vector.extract_strided_slice %677 {offsets = [0, 0], sizes = [1, 256], strides = [1, 1]} : vector<2x256xf32> to vector<1x256xf32>
    %679 = vector.broadcast %49 : f32 to vector<1x256xf32>
    %680 = arith.mulf %679, %678 : vector<1x256xf32>
    %681 = vector.extract_strided_slice %677 {offsets = [1, 0], sizes = [1, 256], strides = [1, 1]} : vector<2x256xf32> to vector<1x256xf32>
    %682 = vector.broadcast %98 : f32 to vector<1x256xf32>
    %683 = arith.mulf %682, %681 : vector<1x256xf32>
    %684 = arith.addf %680, %683 : vector<1x256xf32>
    %685 = arith.mulf %107, %112 : vector<1x256xf32>
    %686 = arith.mulf %684, %685 : vector<1x256xf32>
    %687 = arith.addf %676, %686 : vector<1x256xf32>
    %c0_145 = arith.constant 0 : index
    %c101 = arith.constant 101 : index
    %688 = vector.load %arg8[%c0_145, %c101] : memref<2x358xf32, #tpu.memory_space<vmem>>, vector<2x256xf32>
    %689 = vector.extract_strided_slice %688 {offsets = [0, 0], sizes = [1, 256], strides = [1, 1]} : vector<2x256xf32> to vector<1x256xf32>
    %690 = vector.broadcast %50 : f32 to vector<1x256xf32>
    %691 = arith.mulf %690, %689 : vector<1x256xf32>
    %692 = vector.extract_strided_slice %688 {offsets = [1, 0], sizes = [1, 256], strides = [1, 1]} : vector<2x256xf32> to vector<1x256xf32>
    %693 = vector.broadcast %99 : f32 to vector<1x256xf32>
    %694 = arith.mulf %693, %692 : vector<1x256xf32>
    %695 = arith.addf %691, %694 : vector<1x256xf32>
    %696 = arith.mulf %107, %113 : vector<1x256xf32>
    %697 = arith.mulf %695, %696 : vector<1x256xf32>
    %698 = arith.addf %687, %697 : vector<1x256xf32>
    %c0_146 = arith.constant 0 : index
    %c102 = arith.constant 102 : index
    %699 = vector.load %arg8[%c0_146, %c102] : memref<2x358xf32, #tpu.memory_space<vmem>>, vector<2x256xf32>
    %700 = vector.extract_strided_slice %699 {offsets = [0, 0], sizes = [1, 256], strides = [1, 1]} : vector<2x256xf32> to vector<1x256xf32>
    %701 = vector.broadcast %51 : f32 to vector<1x256xf32>
    %702 = arith.mulf %701, %700 : vector<1x256xf32>
    %703 = vector.extract_strided_slice %699 {offsets = [1, 0], sizes = [1, 256], strides = [1, 1]} : vector<2x256xf32> to vector<1x256xf32>
    %704 = vector.broadcast %100 : f32 to vector<1x256xf32>
    %705 = arith.mulf %704, %703 : vector<1x256xf32>
    %706 = arith.addf %702, %705 : vector<1x256xf32>
    %707 = arith.mulf %107, %114 : vector<1x256xf32>
    %708 = arith.mulf %706, %707 : vector<1x256xf32>
    %709 = arith.addf %698, %708 : vector<1x256xf32>
    %710 = arith.negf %709 : vector<1x256xf32>
    %711 = math.exp %710 : vector<1x256xf32>
    %cst_147 = arith.constant 1.000000e+00 : f32
    %712 = vector.broadcast %cst_147 : f32 to vector<1x256xf32>
    %713 = arith.addf %712, %711 : vector<1x256xf32>
    %714 = arith.divf %712, %713 : vector<1x256xf32>
    %c0_148 = arith.constant 0 : index
    %c0_149 = arith.constant 0 : index
    %c0_150 = arith.constant 0 : index
    %715 = vector.load %arg1[%c0_148, %c0_149, %c0_150] : memref<2x4x256xf32, #tpu.memory_space<vmem>>, vector<1x4x256xf32>
    %716 = vector.shape_cast %715 : vector<1x4x256xf32> to vector<4x256xf32>
    %717 = vector.broadcast %150 : vector<4x1xf32> to vector<4x256xf32>
    %718 = arith.mulf %716, %717 : vector<4x256xf32>
    %719 = vector.broadcast %714 : vector<1x256xf32> to vector<4x256xf32>
    %720 = arith.mulf %718, %719 : vector<4x256xf32>
    %c0_151 = arith.constant 0 : index
    %c0_152 = arith.constant 0 : index
    %c0_153 = arith.constant 0 : index
    %721 = vector.load %arg7[%c0_151, %c0_152, %c0_153] : memref<2x4x256xf32, #tpu.memory_space<vmem>>, vector<1x4x256xf32>
    %722 = vector.shape_cast %721 : vector<1x4x256xf32> to vector<4x256xf32>
    %723 = vector.shape_cast %720 : vector<4x256xf32> to vector<1x4x256xf32>
    tpu.vector_store %arg7[%c0_151, %c0_152, %c0_153], %723 {strides = array<i32>} : memref<2x4x256xf32, #tpu.memory_space<vmem>>, vector<1x4x256xf32>,
    %c1_154 = arith.constant 1 : index
    %c0_155 = arith.constant 0 : index
    %c0_156 = arith.constant 0 : index
    %724 = vector.load %arg1[%c1_154, %c0_155, %c0_156] : memref<2x4x256xf32, #tpu.memory_space<vmem>>, vector<1x4x256xf32>
    %725 = vector.shape_cast %724 : vector<1x4x256xf32> to vector<4x256xf32>
    %cst_157 = arith.constant dense<0.000000e+00> : vector<4xf32>
    %726 = vector.multi_reduction <add>, %725, %cst_157 [1] : vector<4x256xf32> to vector<4xf32>
    %727 = vector.shape_cast %726 : vector<4xf32> to vector<4x1xf32>
    %cst_158 = arith.constant 3.906250e-03 : f32
    %728 = vector.broadcast %cst_158 : f32 to vector<4x1xf32>
    %729 = arith.mulf %727, %728 : vector<4x1xf32>
    %cst_159 = arith.constant dense<0xFF800000> : vector<4xf32>
    %730 = vector.multi_reduction <maximumf>, %725, %cst_159 [1] : vector<4x256xf32> to vector<4xf32>
    %731 = vector.shape_cast %730 : vector<4xf32> to vector<4x1xf32>
    %732 = tpu.iota {dimensions = array<i32: 1>} : vector<4x2xi32>
    %c0_i32_160 = arith.constant 0 : i32
    %733 = vector.broadcast %c0_i32_160 : i32 to vector<4x2xi32>
    %734 = arith.cmpi eq, %732, %733 : vector<4x2xi32>
    %735 = vector.shape_cast %729 : vector<4x1xf32> to vector<4x1xf32>
    %736 = vector.broadcast %735 : vector<4x1xf32> to vector<4x2xf32>
    %737 = vector.shape_cast %731 : vector<4x1xf32> to vector<4x1xf32>
    %738 = vector.broadcast %737 : vector<4x1xf32> to vector<4x2xf32>
    %739 = arith.select %734, %736, %738 : vector<4x2xi1>, vector<4x2xf32>
    %740 = vector.broadcast %0 : vector<4x1xf32> to vector<4x2xf32>
    %741 = arith.mulf %740, %739 : vector<4x2xf32>
    %cst_161 = arith.constant dense<0.000000e+00> : vector<2xf32>
    %742 = vector.multi_reduction <add>, %741, %cst_161 [0] : vector<4x2xf32> to vector<2xf32>
    %743 = vector.shape_cast %742 : vector<2xf32> to vector<1x2xf32>
    %cst_162 = arith.constant 0.000000e+00 : f32
    %744 = vector.broadcast %cst_162 : f32 to vector<1x2xf32>
    %745 = arith.maximumf %743, %744 : vector<1x2xf32>
    %746 = vector.broadcast %1 : vector<4x1xf32> to vector<4x2xf32>
    %747 = vector.broadcast %745 : vector<1x2xf32> to vector<4x2xf32>
    %748 = arith.mulf %746, %747 : vector<4x2xf32>
    %cst_163 = arith.constant dense<0.000000e+00> : vector<4xf32>
    %749 = vector.multi_reduction <add>, %748, %cst_163 [1] : vector<4x2xf32> to vector<4xf32>
    %750 = vector.shape_cast %749 : vector<4xf32> to vector<4x1xf32>
    %751 = arith.negf %750 : vector<4x1xf32>
    %752 = math.exp %751 : vector<4x1xf32>
    %cst_164 = arith.constant 1.000000e+00 : f32
    %753 = vector.broadcast %cst_164 : f32 to vector<4x1xf32>
    %754 = arith.addf %753, %752 : vector<4x1xf32>
    %755 = arith.divf %753, %754 : vector<4x1xf32>
    %756 = vector.broadcast %755 : vector<4x1xf32> to vector<4x256xf32>
    %757 = arith.mulf %725, %756 : vector<4x256xf32>
    %cst_165 = arith.constant dense<0.000000e+00> : vector<256xf32>
    %758 = vector.multi_reduction <add>, %757, %cst_165 [0] : vector<4x256xf32> to vector<256xf32>
    %759 = vector.shape_cast %758 : vector<256xf32> to vector<1x256xf32>
    %cst_166 = arith.constant 2.500000e-01 : f32
    %760 = vector.broadcast %cst_166 : f32 to vector<1x256xf32>
    %761 = arith.mulf %759, %760 : vector<1x256xf32>
    %cst_167 = arith.constant dense<0xFF800000> : vector<256xf32>
    %762 = vector.multi_reduction <maximumf>, %757, %cst_167 [0] : vector<4x256xf32> to vector<256xf32>
    %763 = vector.shape_cast %762 : vector<256xf32> to vector<1x256xf32>
    %764 = tpu.iota {dimensions = array<i32: 0>} : vector<2x256xi32>
    %c0_i32_168 = arith.constant 0 : i32
    %765 = vector.broadcast %c0_i32_168 : i32 to vector<2x256xi32>
    %766 = arith.cmpi eq, %764, %765 : vector<2x256xi32>
    %767 = vector.shape_cast %761 : vector<1x256xf32> to vector<1x256xf32>
    %768 = vector.broadcast %767 : vector<1x256xf32> to vector<2x256xf32>
    %769 = vector.shape_cast %763 : vector<1x256xf32> to vector<1x256xf32>
    %770 = vector.broadcast %769 : vector<1x256xf32> to vector<2x256xf32>
    %771 = arith.select %766, %768, %770 : vector<2x256xi1>, vector<2x256xf32>
    %c0_169 = arith.constant 0 : index
    %c51_170 = arith.constant 51 : index
    %772 = vector.load %arg8[%c0_169, %c51_170] : memref<2x358xf32, #tpu.memory_space<vmem>>, vector<2x256xf32>
    tpu.vector_store %arg8[%c0_169, %c51_170], %771 {strides = array<i32>} : memref<2x358xf32, #tpu.memory_space<vmem>>, vector<2x256xf32>,
    %cst_171 = arith.constant 0.000000e+00 : f32
    %773 = vector.broadcast %cst_171 : f32 to vector<1x256xf32>
    %774 = vector.broadcast %2 : f32 to vector<1x256xf32>
    %775 = arith.addf %773, %774 : vector<1x256xf32>
    %c0_172 = arith.constant 0 : index
    %c0_173 = arith.constant 0 : index
    %776 = vector.load %arg8[%c0_172, %c0_173] : memref<2x358xf32, #tpu.memory_space<vmem>>, vector<2x256xf32>
    %777 = vector.extract_strided_slice %776 {offsets = [0, 0], sizes = [1, 256], strides = [1, 1]} : vector<2x256xf32> to vector<1x256xf32>
    %778 = vector.broadcast %3 : f32 to vector<1x256xf32>
    %779 = arith.mulf %778, %777 : vector<1x256xf32>
    %780 = vector.extract_strided_slice %776 {offsets = [1, 0], sizes = [1, 256], strides = [1, 1]} : vector<2x256xf32> to vector<1x256xf32>
    %781 = vector.broadcast %52 : f32 to vector<1x256xf32>
    %782 = arith.mulf %781, %780 : vector<1x256xf32>
    %783 = arith.addf %779, %782 : vector<1x256xf32>
    %784 = arith.mulf %101, %108 : vector<1x256xf32>
    %785 = arith.mulf %783, %784 : vector<1x256xf32>
    %786 = arith.addf %775, %785 : vector<1x256xf32>
    %c0_174 = arith.constant 0 : index
    %c1_175 = arith.constant 1 : index
    %787 = vector.load %arg8[%c0_174, %c1_175] : memref<2x358xf32, #tpu.memory_space<vmem>>, vector<2x256xf32>
    %788 = vector.extract_strided_slice %787 {offsets = [0, 0], sizes = [1, 256], strides = [1, 1]} : vector<2x256xf32> to vector<1x256xf32>
    %789 = vector.broadcast %4 : f32 to vector<1x256xf32>
    %790 = arith.mulf %789, %788 : vector<1x256xf32>
    %791 = vector.extract_strided_slice %787 {offsets = [1, 0], sizes = [1, 256], strides = [1, 1]} : vector<2x256xf32> to vector<1x256xf32>
    %792 = vector.broadcast %53 : f32 to vector<1x256xf32>
    %793 = arith.mulf %792, %791 : vector<1x256xf32>
    %794 = arith.addf %790, %793 : vector<1x256xf32>
    %795 = arith.mulf %101, %109 : vector<1x256xf32>
    %796 = arith.mulf %794, %795 : vector<1x256xf32>
    %797 = arith.addf %786, %796 : vector<1x256xf32>
    %c0_176 = arith.constant 0 : index
    %c2_177 = arith.constant 2 : index
    %798 = vector.load %arg8[%c0_176, %c2_177] : memref<2x358xf32, #tpu.memory_space<vmem>>, vector<2x256xf32>
    %799 = vector.extract_strided_slice %798 {offsets = [0, 0], sizes = [1, 256], strides = [1, 1]} : vector<2x256xf32> to vector<1x256xf32>
    %800 = vector.broadcast %5 : f32 to vector<1x256xf32>
    %801 = arith.mulf %800, %799 : vector<1x256xf32>
    %802 = vector.extract_strided_slice %798 {offsets = [1, 0], sizes = [1, 256], strides = [1, 1]} : vector<2x256xf32> to vector<1x256xf32>
    %803 = vector.broadcast %54 : f32 to vector<1x256xf32>
    %804 = arith.mulf %803, %802 : vector<1x256xf32>
    %805 = arith.addf %801, %804 : vector<1x256xf32>
    %806 = arith.mulf %101, %110 : vector<1x256xf32>
    %807 = arith.mulf %805, %806 : vector<1x256xf32>
    %808 = arith.addf %797, %807 : vector<1x256xf32>
    %c0_178 = arith.constant 0 : index
    %c3_179 = arith.constant 3 : index
    %809 = vector.load %arg8[%c0_178, %c3_179] : memref<2x358xf32, #tpu.memory_space<vmem>>, vector<2x256xf32>
    %810 = vector.extract_strided_slice %809 {offsets = [0, 0], sizes = [1, 256], strides = [1, 1]} : vector<2x256xf32> to vector<1x256xf32>
    %811 = vector.broadcast %6 : f32 to vector<1x256xf32>
    %812 = arith.mulf %811, %810 : vector<1x256xf32>
    %813 = vector.extract_strided_slice %809 {offsets = [1, 0], sizes = [1, 256], strides = [1, 1]} : vector<2x256xf32> to vector<1x256xf32>
    %814 = vector.broadcast %55 : f32 to vector<1x256xf32>
    %815 = arith.mulf %814, %813 : vector<1x256xf32>
    %816 = arith.addf %812, %815 : vector<1x256xf32>
    %817 = arith.mulf %101, %111 : vector<1x256xf32>
    %818 = arith.mulf %816, %817 : vector<1x256xf32>
    %819 = arith.addf %808, %818 : vector<1x256xf32>
    %c0_180 = arith.constant 0 : index
    %c4_181 = arith.constant 4 : index
    %820 = vector.load %arg8[%c0_180, %c4_181] : memref<2x358xf32, #tpu.memory_space<vmem>>, vector<2x256xf32>
    %821 = vector.extract_strided_slice %820 {offsets = [0, 0], sizes = [1, 256], strides = [1, 1]} : vector<2x256xf32> to vector<1x256xf32>
    %822 = vector.broadcast %7 : f32 to vector<1x256xf32>
    %823 = arith.mulf %822, %821 : vector<1x256xf32>
    %824 = vector.extract_strided_slice %820 {offsets = [1, 0], sizes = [1, 256], strides = [1, 1]} : vector<2x256xf32> to vector<1x256xf32>
    %825 = vector.broadcast %56 : f32 to vector<1x256xf32>
    %826 = arith.mulf %825, %824 : vector<1x256xf32>
    %827 = arith.addf %823, %826 : vector<1x256xf32>
    %828 = arith.mulf %101, %112 : vector<1x256xf32>
    %829 = arith.mulf %827, %828 : vector<1x256xf32>
    %830 = arith.addf %819, %829 : vector<1x256xf32>
    %c0_182 = arith.constant 0 : index
    %c5_183 = arith.constant 5 : index
    %831 = vector.load %arg8[%c0_182, %c5_183] : memref<2x358xf32, #tpu.memory_space<vmem>>, vector<2x256xf32>
    %832 = vector.extract_strided_slice %831 {offsets = [0, 0], sizes = [1, 256], strides = [1, 1]} : vector<2x256xf32> to vector<1x256xf32>
    %833 = vector.broadcast %8 : f32 to vector<1x256xf32>
    %834 = arith.mulf %833, %832 : vector<1x256xf32>
    %835 = vector.extract_strided_slice %831 {offsets = [1, 0], sizes = [1, 256], strides = [1, 1]} : vector<2x256xf32> to vector<1x256xf32>
    %836 = vector.broadcast %57 : f32 to vector<1x256xf32>
    %837 = arith.mulf %836, %835 : vector<1x256xf32>
    %838 = arith.addf %834, %837 : vector<1x256xf32>
    %839 = arith.mulf %101, %113 : vector<1x256xf32>
    %840 = arith.mulf %838, %839 : vector<1x256xf32>
    %841 = arith.addf %830, %840 : vector<1x256xf32>
    %c0_184 = arith.constant 0 : index
    %c6_185 = arith.constant 6 : index
    %842 = vector.load %arg8[%c0_184, %c6_185] : memref<2x358xf32, #tpu.memory_space<vmem>>, vector<2x256xf32>
    %843 = vector.extract_strided_slice %842 {offsets = [0, 0], sizes = [1, 256], strides = [1, 1]} : vector<2x256xf32> to vector<1x256xf32>
    %844 = vector.broadcast %9 : f32 to vector<1x256xf32>
    %845 = arith.mulf %844, %843 : vector<1x256xf32>
    %846 = vector.extract_strided_slice %842 {offsets = [1, 0], sizes = [1, 256], strides = [1, 1]} : vector<2x256xf32> to vector<1x256xf32>
    %847 = vector.broadcast %58 : f32 to vector<1x256xf32>
    %848 = arith.mulf %847, %846 : vector<1x256xf32>
    %849 = arith.addf %845, %848 : vector<1x256xf32>
    %850 = arith.mulf %101, %114 : vector<1x256xf32>
    %851 = arith.mulf %849, %850 : vector<1x256xf32>
    %852 = arith.addf %841, %851 : vector<1x256xf32>
    %c0_186 = arith.constant 0 : index
    %c16_187 = arith.constant 16 : index
    %853 = vector.load %arg8[%c0_186, %c16_187] : memref<2x358xf32, #tpu.memory_space<vmem>>, vector<2x256xf32>
    %854 = vector.extract_strided_slice %853 {offsets = [0, 0], sizes = [1, 256], strides = [1, 1]} : vector<2x256xf32> to vector<1x256xf32>
    %855 = vector.broadcast %10 : f32 to vector<1x256xf32>
    %856 = arith.mulf %855, %854 : vector<1x256xf32>
    %857 = vector.extract_strided_slice %853 {offsets = [1, 0], sizes = [1, 256], strides = [1, 1]} : vector<2x256xf32> to vector<1x256xf32>
    %858 = vector.broadcast %59 : f32 to vector<1x256xf32>
    %859 = arith.mulf %858, %857 : vector<1x256xf32>
    %860 = arith.addf %856, %859 : vector<1x256xf32>
    %861 = arith.mulf %102, %108 : vector<1x256xf32>
    %862 = arith.mulf %860, %861 : vector<1x256xf32>
    %863 = arith.addf %852, %862 : vector<1x256xf32>
    %c0_188 = arith.constant 0 : index
    %c17_189 = arith.constant 17 : index
    %864 = vector.load %arg8[%c0_188, %c17_189] : memref<2x358xf32, #tpu.memory_space<vmem>>, vector<2x256xf32>
    %865 = vector.extract_strided_slice %864 {offsets = [0, 0], sizes = [1, 256], strides = [1, 1]} : vector<2x256xf32> to vector<1x256xf32>
    %866 = vector.broadcast %11 : f32 to vector<1x256xf32>
    %867 = arith.mulf %866, %865 : vector<1x256xf32>
    %868 = vector.extract_strided_slice %864 {offsets = [1, 0], sizes = [1, 256], strides = [1, 1]} : vector<2x256xf32> to vector<1x256xf32>
    %869 = vector.broadcast %60 : f32 to vector<1x256xf32>
    %870 = arith.mulf %869, %868 : vector<1x256xf32>
    %871 = arith.addf %867, %870 : vector<1x256xf32>
    %872 = arith.mulf %102, %109 : vector<1x256xf32>
    %873 = arith.mulf %871, %872 : vector<1x256xf32>
    %874 = arith.addf %863, %873 : vector<1x256xf32>
    %c0_190 = arith.constant 0 : index
    %c18_191 = arith.constant 18 : index
    %875 = vector.load %arg8[%c0_190, %c18_191] : memref<2x358xf32, #tpu.memory_space<vmem>>, vector<2x256xf32>
    %876 = vector.extract_strided_slice %875 {offsets = [0, 0], sizes = [1, 256], strides = [1, 1]} : vector<2x256xf32> to vector<1x256xf32>
    %877 = vector.broadcast %12 : f32 to vector<1x256xf32>
    %878 = arith.mulf %877, %876 : vector<1x256xf32>
    %879 = vector.extract_strided_slice %875 {offsets = [1, 0], sizes = [1, 256], strides = [1, 1]} : vector<2x256xf32> to vector<1x256xf32>
    %880 = vector.broadcast %61 : f32 to vector<1x256xf32>
    %881 = arith.mulf %880, %879 : vector<1x256xf32>
    %882 = arith.addf %878, %881 : vector<1x256xf32>
    %883 = arith.mulf %102, %110 : vector<1x256xf32>
    %884 = arith.mulf %882, %883 : vector<1x256xf32>
    %885 = arith.addf %874, %884 : vector<1x256xf32>
    %c0_192 = arith.constant 0 : index
    %c19_193 = arith.constant 19 : index
    %886 = vector.load %arg8[%c0_192, %c19_193] : memref<2x358xf32, #tpu.memory_space<vmem>>, vector<2x256xf32>
    %887 = vector.extract_strided_slice %886 {offsets = [0, 0], sizes = [1, 256], strides = [1, 1]} : vector<2x256xf32> to vector<1x256xf32>
    %888 = vector.broadcast %13 : f32 to vector<1x256xf32>
    %889 = arith.mulf %888, %887 : vector<1x256xf32>
    %890 = vector.extract_strided_slice %886 {offsets = [1, 0], sizes = [1, 256], strides = [1, 1]} : vector<2x256xf32> to vector<1x256xf32>
    %891 = vector.broadcast %62 : f32 to vector<1x256xf32>
    %892 = arith.mulf %891, %890 : vector<1x256xf32>
    %893 = arith.addf %889, %892 : vector<1x256xf32>
    %894 = arith.mulf %102, %111 : vector<1x256xf32>
    %895 = arith.mulf %893, %894 : vector<1x256xf32>
    %896 = arith.addf %885, %895 : vector<1x256xf32>
    %c0_194 = arith.constant 0 : index
    %c20_195 = arith.constant 20 : index
    %897 = vector.load %arg8[%c0_194, %c20_195] : memref<2x358xf32, #tpu.memory_space<vmem>>, vector<2x256xf32>
    %898 = vector.extract_strided_slice %897 {offsets = [0, 0], sizes = [1, 256], strides = [1, 1]} : vector<2x256xf32> to vector<1x256xf32>
    %899 = vector.broadcast %14 : f32 to vector<1x256xf32>
    %900 = arith.mulf %899, %898 : vector<1x256xf32>
    %901 = vector.extract_strided_slice %897 {offsets = [1, 0], sizes = [1, 256], strides = [1, 1]} : vector<2x256xf32> to vector<1x256xf32>
    %902 = vector.broadcast %63 : f32 to vector<1x256xf32>
    %903 = arith.mulf %902, %901 : vector<1x256xf32>
    %904 = arith.addf %900, %903 : vector<1x256xf32>
    %905 = arith.mulf %102, %112 : vector<1x256xf32>
    %906 = arith.mulf %904, %905 : vector<1x256xf32>
    %907 = arith.addf %896, %906 : vector<1x256xf32>
    %c0_196 = arith.constant 0 : index
    %c21_197 = arith.constant 21 : index
    %908 = vector.load %arg8[%c0_196, %c21_197] : memref<2x358xf32, #tpu.memory_space<vmem>>, vector<2x256xf32>
    %909 = vector.extract_strided_slice %908 {offsets = [0, 0], sizes = [1, 256], strides = [1, 1]} : vector<2x256xf32> to vector<1x256xf32>
    %910 = vector.broadcast %15 : f32 to vector<1x256xf32>
    %911 = arith.mulf %910, %909 : vector<1x256xf32>
    %912 = vector.extract_strided_slice %908 {offsets = [1, 0], sizes = [1, 256], strides = [1, 1]} : vector<2x256xf32> to vector<1x256xf32>
    %913 = vector.broadcast %64 : f32 to vector<1x256xf32>
    %914 = arith.mulf %913, %912 : vector<1x256xf32>
    %915 = arith.addf %911, %914 : vector<1x256xf32>
    %916 = arith.mulf %102, %113 : vector<1x256xf32>
    %917 = arith.mulf %915, %916 : vector<1x256xf32>
    %918 = arith.addf %907, %917 : vector<1x256xf32>
    %c0_198 = arith.constant 0 : index
    %c22_199 = arith.constant 22 : index
    %919 = vector.load %arg8[%c0_198, %c22_199] : memref<2x358xf32, #tpu.memory_space<vmem>>, vector<2x256xf32>
    %920 = vector.extract_strided_slice %919 {offsets = [0, 0], sizes = [1, 256], strides = [1, 1]} : vector<2x256xf32> to vector<1x256xf32>
    %921 = vector.broadcast %16 : f32 to vector<1x256xf32>
    %922 = arith.mulf %921, %920 : vector<1x256xf32>
    %923 = vector.extract_strided_slice %919 {offsets = [1, 0], sizes = [1, 256], strides = [1, 1]} : vector<2x256xf32> to vector<1x256xf32>
    %924 = vector.broadcast %65 : f32 to vector<1x256xf32>
    %925 = arith.mulf %924, %923 : vector<1x256xf32>
    %926 = arith.addf %922, %925 : vector<1x256xf32>
    %927 = arith.mulf %102, %114 : vector<1x256xf32>
    %928 = arith.mulf %926, %927 : vector<1x256xf32>
    %929 = arith.addf %918, %928 : vector<1x256xf32>
    %c0_200 = arith.constant 0 : index
    %c32_201 = arith.constant 32 : index
    %930 = vector.load %arg8[%c0_200, %c32_201] : memref<2x358xf32, #tpu.memory_space<vmem>>, vector<2x256xf32>
    %931 = vector.extract_strided_slice %930 {offsets = [0, 0], sizes = [1, 256], strides = [1, 1]} : vector<2x256xf32> to vector<1x256xf32>
    %932 = vector.broadcast %17 : f32 to vector<1x256xf32>
    %933 = arith.mulf %932, %931 : vector<1x256xf32>
    %934 = vector.extract_strided_slice %930 {offsets = [1, 0], sizes = [1, 256], strides = [1, 1]} : vector<2x256xf32> to vector<1x256xf32>
    %935 = vector.broadcast %66 : f32 to vector<1x256xf32>
    %936 = arith.mulf %935, %934 : vector<1x256xf32>
    %937 = arith.addf %933, %936 : vector<1x256xf32>
    %938 = arith.mulf %103, %108 : vector<1x256xf32>
    %939 = arith.mulf %937, %938 : vector<1x256xf32>
    %940 = arith.addf %929, %939 : vector<1x256xf32>
    %c0_202 = arith.constant 0 : index
    %c33_203 = arith.constant 33 : index
    %941 = vector.load %arg8[%c0_202, %c33_203] : memref<2x358xf32, #tpu.memory_space<vmem>>, vector<2x256xf32>
    %942 = vector.extract_strided_slice %941 {offsets = [0, 0], sizes = [1, 256], strides = [1, 1]} : vector<2x256xf32> to vector<1x256xf32>
    %943 = vector.broadcast %18 : f32 to vector<1x256xf32>
    %944 = arith.mulf %943, %942 : vector<1x256xf32>
    %945 = vector.extract_strided_slice %941 {offsets = [1, 0], sizes = [1, 256], strides = [1, 1]} : vector<2x256xf32> to vector<1x256xf32>
    %946 = vector.broadcast %67 : f32 to vector<1x256xf32>
    %947 = arith.mulf %946, %945 : vector<1x256xf32>
    %948 = arith.addf %944, %947 : vector<1x256xf32>
    %949 = arith.mulf %103, %109 : vector<1x256xf32>
    %950 = arith.mulf %948, %949 : vector<1x256xf32>
    %951 = arith.addf %940, %950 : vector<1x256xf32>
    %c0_204 = arith.constant 0 : index
    %c34_205 = arith.constant 34 : index
    %952 = vector.load %arg8[%c0_204, %c34_205] : memref<2x358xf32, #tpu.memory_space<vmem>>, vector<2x256xf32>
    %953 = vector.extract_strided_slice %952 {offsets = [0, 0], sizes = [1, 256], strides = [1, 1]} : vector<2x256xf32> to vector<1x256xf32>
    %954 = vector.broadcast %19 : f32 to vector<1x256xf32>
    %955 = arith.mulf %954, %953 : vector<1x256xf32>
    %956 = vector.extract_strided_slice %952 {offsets = [1, 0], sizes = [1, 256], strides = [1, 1]} : vector<2x256xf32> to vector<1x256xf32>
    %957 = vector.broadcast %68 : f32 to vector<1x256xf32>
    %958 = arith.mulf %957, %956 : vector<1x256xf32>
    %959 = arith.addf %955, %958 : vector<1x256xf32>
    %960 = arith.mulf %103, %110 : vector<1x256xf32>
    %961 = arith.mulf %959, %960 : vector<1x256xf32>
    %962 = arith.addf %951, %961 : vector<1x256xf32>
    %c0_206 = arith.constant 0 : index
    %c35_207 = arith.constant 35 : index
    %963 = vector.load %arg8[%c0_206, %c35_207] : memref<2x358xf32, #tpu.memory_space<vmem>>, vector<2x256xf32>
    %964 = vector.extract_strided_slice %963 {offsets = [0, 0], sizes = [1, 256], strides = [1, 1]} : vector<2x256xf32> to vector<1x256xf32>
    %965 = vector.broadcast %20 : f32 to vector<1x256xf32>
    %966 = arith.mulf %965, %964 : vector<1x256xf32>
    %967 = vector.extract_strided_slice %963 {offsets = [1, 0], sizes = [1, 256], strides = [1, 1]} : vector<2x256xf32> to vector<1x256xf32>
    %968 = vector.broadcast %69 : f32 to vector<1x256xf32>
    %969 = arith.mulf %968, %967 : vector<1x256xf32>
    %970 = arith.addf %966, %969 : vector<1x256xf32>
    %971 = arith.mulf %103, %111 : vector<1x256xf32>
    %972 = arith.mulf %970, %971 : vector<1x256xf32>
    %973 = arith.addf %962, %972 : vector<1x256xf32>
    %c0_208 = arith.constant 0 : index
    %c36_209 = arith.constant 36 : index
    %974 = vector.load %arg8[%c0_208, %c36_209] : memref<2x358xf32, #tpu.memory_space<vmem>>, vector<2x256xf32>
    %975 = vector.extract_strided_slice %974 {offsets = [0, 0], sizes = [1, 256], strides = [1, 1]} : vector<2x256xf32> to vector<1x256xf32>
    %976 = vector.broadcast %21 : f32 to vector<1x256xf32>
    %977 = arith.mulf %976, %975 : vector<1x256xf32>
    %978 = vector.extract_strided_slice %974 {offsets = [1, 0], sizes = [1, 256], strides = [1, 1]} : vector<2x256xf32> to vector<1x256xf32>
    %979 = vector.broadcast %70 : f32 to vector<1x256xf32>
    %980 = arith.mulf %979, %978 : vector<1x256xf32>
    %981 = arith.addf %977, %980 : vector<1x256xf32>
    %982 = arith.mulf %103, %112 : vector<1x256xf32>
    %983 = arith.mulf %981, %982 : vector<1x256xf32>
    %984 = arith.addf %973, %983 : vector<1x256xf32>
    %c0_210 = arith.constant 0 : index
    %c37_211 = arith.constant 37 : index
    %985 = vector.load %arg8[%c0_210, %c37_211] : memref<2x358xf32, #tpu.memory_space<vmem>>, vector<2x256xf32>
    %986 = vector.extract_strided_slice %985 {offsets = [0, 0], sizes = [1, 256], strides = [1, 1]} : vector<2x256xf32> to vector<1x256xf32>
    %987 = vector.broadcast %22 : f32 to vector<1x256xf32>
    %988 = arith.mulf %987, %986 : vector<1x256xf32>
    %989 = vector.extract_strided_slice %985 {offsets = [1, 0], sizes = [1, 256], strides = [1, 1]} : vector<2x256xf32> to vector<1x256xf32>
    %990 = vector.broadcast %71 : f32 to vector<1x256xf32>
    %991 = arith.mulf %990, %989 : vector<1x256xf32>
    %992 = arith.addf %988, %991 : vector<1x256xf32>
    %993 = arith.mulf %103, %113 : vector<1x256xf32>
    %994 = arith.mulf %992, %993 : vector<1x256xf32>
    %995 = arith.addf %984, %994 : vector<1x256xf32>
    %c0_212 = arith.constant 0 : index
    %c38_213 = arith.constant 38 : index
    %996 = vector.load %arg8[%c0_212, %c38_213] : memref<2x358xf32, #tpu.memory_space<vmem>>, vector<2x256xf32>
    %997 = vector.extract_strided_slice %996 {offsets = [0, 0], sizes = [1, 256], strides = [1, 1]} : vector<2x256xf32> to vector<1x256xf32>
    %998 = vector.broadcast %23 : f32 to vector<1x256xf32>
    %999 = arith.mulf %998, %997 : vector<1x256xf32>
    %1000 = vector.extract_strided_slice %996 {offsets = [1, 0], sizes = [1, 256], strides = [1, 1]} : vector<2x256xf32> to vector<1x256xf32>
    %1001 = vector.broadcast %72 : f32 to vector<1x256xf32>
    %1002 = arith.mulf %1001, %1000 : vector<1x256xf32>
    %1003 = arith.addf %999, %1002 : vector<1x256xf32>
    %1004 = arith.mulf %103, %114 : vector<1x256xf32>
    %1005 = arith.mulf %1003, %1004 : vector<1x256xf32>
    %1006 = arith.addf %995, %1005 : vector<1x256xf32>
    %c0_214 = arith.constant 0 : index
    %c48_215 = arith.constant 48 : index
    %1007 = vector.load %arg8[%c0_214, %c48_215] : memref<2x358xf32, #tpu.memory_space<vmem>>, vector<2x256xf32>
    %1008 = vector.extract_strided_slice %1007 {offsets = [0, 0], sizes = [1, 256], strides = [1, 1]} : vector<2x256xf32> to vector<1x256xf32>
    %1009 = vector.broadcast %24 : f32 to vector<1x256xf32>
    %1010 = arith.mulf %1009, %1008 : vector<1x256xf32>
    %1011 = vector.extract_strided_slice %1007 {offsets = [1, 0], sizes = [1, 256], strides = [1, 1]} : vector<2x256xf32> to vector<1x256xf32>
    %1012 = vector.broadcast %73 : f32 to vector<1x256xf32>
    %1013 = arith.mulf %1012, %1011 : vector<1x256xf32>
    %1014 = arith.addf %1010, %1013 : vector<1x256xf32>
    %1015 = arith.mulf %104, %108 : vector<1x256xf32>
    %1016 = arith.mulf %1014, %1015 : vector<1x256xf32>
    %1017 = arith.addf %1006, %1016 : vector<1x256xf32>
    %c0_216 = arith.constant 0 : index
    %c49_217 = arith.constant 49 : index
    %1018 = vector.load %arg8[%c0_216, %c49_217] : memref<2x358xf32, #tpu.memory_space<vmem>>, vector<2x256xf32>
    %1019 = vector.extract_strided_slice %1018 {offsets = [0, 0], sizes = [1, 256], strides = [1, 1]} : vector<2x256xf32> to vector<1x256xf32>
    %1020 = vector.broadcast %25 : f32 to vector<1x256xf32>
    %1021 = arith.mulf %1020, %1019 : vector<1x256xf32>
    %1022 = vector.extract_strided_slice %1018 {offsets = [1, 0], sizes = [1, 256], strides = [1, 1]} : vector<2x256xf32> to vector<1x256xf32>
    %1023 = vector.broadcast %74 : f32 to vector<1x256xf32>
    %1024 = arith.mulf %1023, %1022 : vector<1x256xf32>
    %1025 = arith.addf %1021, %1024 : vector<1x256xf32>
    %1026 = arith.mulf %104, %109 : vector<1x256xf32>
    %1027 = arith.mulf %1025, %1026 : vector<1x256xf32>
    %1028 = arith.addf %1017, %1027 : vector<1x256xf32>
    %c0_218 = arith.constant 0 : index
    %c50_219 = arith.constant 50 : index
    %1029 = vector.load %arg8[%c0_218, %c50_219] : memref<2x358xf32, #tpu.memory_space<vmem>>, vector<2x256xf32>
    %1030 = vector.extract_strided_slice %1029 {offsets = [0, 0], sizes = [1, 256], strides = [1, 1]} : vector<2x256xf32> to vector<1x256xf32>
    %1031 = vector.broadcast %26 : f32 to vector<1x256xf32>
    %1032 = arith.mulf %1031, %1030 : vector<1x256xf32>
    %1033 = vector.extract_strided_slice %1029 {offsets = [1, 0], sizes = [1, 256], strides = [1, 1]} : vector<2x256xf32> to vector<1x256xf32>
    %1034 = vector.broadcast %75 : f32 to vector<1x256xf32>
    %1035 = arith.mulf %1034, %1033 : vector<1x256xf32>
    %1036 = arith.addf %1032, %1035 : vector<1x256xf32>
    %1037 = arith.mulf %104, %110 : vector<1x256xf32>
    %1038 = arith.mulf %1036, %1037 : vector<1x256xf32>
    %1039 = arith.addf %1028, %1038 : vector<1x256xf32>
    %c0_220 = arith.constant 0 : index
    %c51_221 = arith.constant 51 : index
    %1040 = vector.load %arg8[%c0_220, %c51_221] : memref<2x358xf32, #tpu.memory_space<vmem>>, vector<2x256xf32>
    %1041 = vector.extract_strided_slice %1040 {offsets = [0, 0], sizes = [1, 256], strides = [1, 1]} : vector<2x256xf32> to vector<1x256xf32>
    %1042 = vector.broadcast %27 : f32 to vector<1x256xf32>
    %1043 = arith.mulf %1042, %1041 : vector<1x256xf32>
    %1044 = vector.extract_strided_slice %1040 {offsets = [1, 0], sizes = [1, 256], strides = [1, 1]} : vector<2x256xf32> to vector<1x256xf32>
    %1045 = vector.broadcast %76 : f32 to vector<1x256xf32>
    %1046 = arith.mulf %1045, %1044 : vector<1x256xf32>
    %1047 = arith.addf %1043, %1046 : vector<1x256xf32>
    %1048 = arith.mulf %104, %111 : vector<1x256xf32>
    %1049 = arith.mulf %1047, %1048 : vector<1x256xf32>
    %1050 = arith.addf %1039, %1049 : vector<1x256xf32>
    %c0_222 = arith.constant 0 : index
    %c52_223 = arith.constant 52 : index
    %1051 = vector.load %arg8[%c0_222, %c52_223] : memref<2x358xf32, #tpu.memory_space<vmem>>, vector<2x256xf32>
    %1052 = vector.extract_strided_slice %1051 {offsets = [0, 0], sizes = [1, 256], strides = [1, 1]} : vector<2x256xf32> to vector<1x256xf32>
    %1053 = vector.broadcast %28 : f32 to vector<1x256xf32>
    %1054 = arith.mulf %1053, %1052 : vector<1x256xf32>
    %1055 = vector.extract_strided_slice %1051 {offsets = [1, 0], sizes = [1, 256], strides = [1, 1]} : vector<2x256xf32> to vector<1x256xf32>
    %1056 = vector.broadcast %77 : f32 to vector<1x256xf32>
    %1057 = arith.mulf %1056, %1055 : vector<1x256xf32>
    %1058 = arith.addf %1054, %1057 : vector<1x256xf32>
    %1059 = arith.mulf %104, %112 : vector<1x256xf32>
    %1060 = arith.mulf %1058, %1059 : vector<1x256xf32>
    %1061 = arith.addf %1050, %1060 : vector<1x256xf32>
    %c0_224 = arith.constant 0 : index
    %c53_225 = arith.constant 53 : index
    %1062 = vector.load %arg8[%c0_224, %c53_225] : memref<2x358xf32, #tpu.memory_space<vmem>>, vector<2x256xf32>
    %1063 = vector.extract_strided_slice %1062 {offsets = [0, 0], sizes = [1, 256], strides = [1, 1]} : vector<2x256xf32> to vector<1x256xf32>
    %1064 = vector.broadcast %29 : f32 to vector<1x256xf32>
    %1065 = arith.mulf %1064, %1063 : vector<1x256xf32>
    %1066 = vector.extract_strided_slice %1062 {offsets = [1, 0], sizes = [1, 256], strides = [1, 1]} : vector<2x256xf32> to vector<1x256xf32>
    %1067 = vector.broadcast %78 : f32 to vector<1x256xf32>
    %1068 = arith.mulf %1067, %1066 : vector<1x256xf32>
    %1069 = arith.addf %1065, %1068 : vector<1x256xf32>
    %1070 = arith.mulf %104, %113 : vector<1x256xf32>
    %1071 = arith.mulf %1069, %1070 : vector<1x256xf32>
    %1072 = arith.addf %1061, %1071 : vector<1x256xf32>
    %c0_226 = arith.constant 0 : index
    %c54_227 = arith.constant 54 : index
    %1073 = vector.load %arg8[%c0_226, %c54_227] : memref<2x358xf32, #tpu.memory_space<vmem>>, vector<2x256xf32>
    %1074 = vector.extract_strided_slice %1073 {offsets = [0, 0], sizes = [1, 256], strides = [1, 1]} : vector<2x256xf32> to vector<1x256xf32>
    %1075 = vector.broadcast %30 : f32 to vector<1x256xf32>
    %1076 = arith.mulf %1075, %1074 : vector<1x256xf32>
    %1077 = vector.extract_strided_slice %1073 {offsets = [1, 0], sizes = [1, 256], strides = [1, 1]} : vector<2x256xf32> to vector<1x256xf32>
    %1078 = vector.broadcast %79 : f32 to vector<1x256xf32>
    %1079 = arith.mulf %1078, %1077 : vector<1x256xf32>
    %1080 = arith.addf %1076, %1079 : vector<1x256xf32>
    %1081 = arith.mulf %104, %114 : vector<1x256xf32>
    %1082 = arith.mulf %1080, %1081 : vector<1x256xf32>
    %1083 = arith.addf %1072, %1082 : vector<1x256xf32>
    %c0_228 = arith.constant 0 : index
    %c64_229 = arith.constant 64 : index
    %1084 = vector.load %arg8[%c0_228, %c64_229] : memref<2x358xf32, #tpu.memory_space<vmem>>, vector<2x256xf32>
    %1085 = vector.extract_strided_slice %1084 {offsets = [0, 0], sizes = [1, 256], strides = [1, 1]} : vector<2x256xf32> to vector<1x256xf32>
    %1086 = vector.broadcast %31 : f32 to vector<1x256xf32>
    %1087 = arith.mulf %1086, %1085 : vector<1x256xf32>
    %1088 = vector.extract_strided_slice %1084 {offsets = [1, 0], sizes = [1, 256], strides = [1, 1]} : vector<2x256xf32> to vector<1x256xf32>
    %1089 = vector.broadcast %80 : f32 to vector<1x256xf32>
    %1090 = arith.mulf %1089, %1088 : vector<1x256xf32>
    %1091 = arith.addf %1087, %1090 : vector<1x256xf32>
    %1092 = arith.mulf %105, %108 : vector<1x256xf32>
    %1093 = arith.mulf %1091, %1092 : vector<1x256xf32>
    %1094 = arith.addf %1083, %1093 : vector<1x256xf32>
    %c0_230 = arith.constant 0 : index
    %c65_231 = arith.constant 65 : index
    %1095 = vector.load %arg8[%c0_230, %c65_231] : memref<2x358xf32, #tpu.memory_space<vmem>>, vector<2x256xf32>
    %1096 = vector.extract_strided_slice %1095 {offsets = [0, 0], sizes = [1, 256], strides = [1, 1]} : vector<2x256xf32> to vector<1x256xf32>
    %1097 = vector.broadcast %32 : f32 to vector<1x256xf32>
    %1098 = arith.mulf %1097, %1096 : vector<1x256xf32>
    %1099 = vector.extract_strided_slice %1095 {offsets = [1, 0], sizes = [1, 256], strides = [1, 1]} : vector<2x256xf32> to vector<1x256xf32>
    %1100 = vector.broadcast %81 : f32 to vector<1x256xf32>
    %1101 = arith.mulf %1100, %1099 : vector<1x256xf32>
    %1102 = arith.addf %1098, %1101 : vector<1x256xf32>
    %1103 = arith.mulf %105, %109 : vector<1x256xf32>
    %1104 = arith.mulf %1102, %1103 : vector<1x256xf32>
    %1105 = arith.addf %1094, %1104 : vector<1x256xf32>
    %c0_232 = arith.constant 0 : index
    %c66_233 = arith.constant 66 : index
    %1106 = vector.load %arg8[%c0_232, %c66_233] : memref<2x358xf32, #tpu.memory_space<vmem>>, vector<2x256xf32>
    %1107 = vector.extract_strided_slice %1106 {offsets = [0, 0], sizes = [1, 256], strides = [1, 1]} : vector<2x256xf32> to vector<1x256xf32>
    %1108 = vector.broadcast %33 : f32 to vector<1x256xf32>
    %1109 = arith.mulf %1108, %1107 : vector<1x256xf32>
    %1110 = vector.extract_strided_slice %1106 {offsets = [1, 0], sizes = [1, 256], strides = [1, 1]} : vector<2x256xf32> to vector<1x256xf32>
    %1111 = vector.broadcast %82 : f32 to vector<1x256xf32>
    %1112 = arith.mulf %1111, %1110 : vector<1x256xf32>
    %1113 = arith.addf %1109, %1112 : vector<1x256xf32>
    %1114 = arith.mulf %105, %110 : vector<1x256xf32>
    %1115 = arith.mulf %1113, %1114 : vector<1x256xf32>
    %1116 = arith.addf %1105, %1115 : vector<1x256xf32>
    %c0_234 = arith.constant 0 : index
    %c67_235 = arith.constant 67 : index
    %1117 = vector.load %arg8[%c0_234, %c67_235] : memref<2x358xf32, #tpu.memory_space<vmem>>, vector<2x256xf32>
    %1118 = vector.extract_strided_slice %1117 {offsets = [0, 0], sizes = [1, 256], strides = [1, 1]} : vector<2x256xf32> to vector<1x256xf32>
    %1119 = vector.broadcast %34 : f32 to vector<1x256xf32>
    %1120 = arith.mulf %1119, %1118 : vector<1x256xf32>
    %1121 = vector.extract_strided_slice %1117 {offsets = [1, 0], sizes = [1, 256], strides = [1, 1]} : vector<2x256xf32> to vector<1x256xf32>
    %1122 = vector.broadcast %83 : f32 to vector<1x256xf32>
    %1123 = arith.mulf %1122, %1121 : vector<1x256xf32>
    %1124 = arith.addf %1120, %1123 : vector<1x256xf32>
    %1125 = arith.mulf %105, %111 : vector<1x256xf32>
    %1126 = arith.mulf %1124, %1125 : vector<1x256xf32>
    %1127 = arith.addf %1116, %1126 : vector<1x256xf32>
    %c0_236 = arith.constant 0 : index
    %c68_237 = arith.constant 68 : index
    %1128 = vector.load %arg8[%c0_236, %c68_237] : memref<2x358xf32, #tpu.memory_space<vmem>>, vector<2x256xf32>
    %1129 = vector.extract_strided_slice %1128 {offsets = [0, 0], sizes = [1, 256], strides = [1, 1]} : vector<2x256xf32> to vector<1x256xf32>
    %1130 = vector.broadcast %35 : f32 to vector<1x256xf32>
    %1131 = arith.mulf %1130, %1129 : vector<1x256xf32>
    %1132 = vector.extract_strided_slice %1128 {offsets = [1, 0], sizes = [1, 256], strides = [1, 1]} : vector<2x256xf32> to vector<1x256xf32>
    %1133 = vector.broadcast %84 : f32 to vector<1x256xf32>
    %1134 = arith.mulf %1133, %1132 : vector<1x256xf32>
    %1135 = arith.addf %1131, %1134 : vector<1x256xf32>
    %1136 = arith.mulf %105, %112 : vector<1x256xf32>
    %1137 = arith.mulf %1135, %1136 : vector<1x256xf32>
    %1138 = arith.addf %1127, %1137 : vector<1x256xf32>
    %c0_238 = arith.constant 0 : index
    %c69_239 = arith.constant 69 : index
    %1139 = vector.load %arg8[%c0_238, %c69_239] : memref<2x358xf32, #tpu.memory_space<vmem>>, vector<2x256xf32>
    %1140 = vector.extract_strided_slice %1139 {offsets = [0, 0], sizes = [1, 256], strides = [1, 1]} : vector<2x256xf32> to vector<1x256xf32>
    %1141 = vector.broadcast %36 : f32 to vector<1x256xf32>
    %1142 = arith.mulf %1141, %1140 : vector<1x256xf32>
    %1143 = vector.extract_strided_slice %1139 {offsets = [1, 0], sizes = [1, 256], strides = [1, 1]} : vector<2x256xf32> to vector<1x256xf32>
    %1144 = vector.broadcast %85 : f32 to vector<1x256xf32>
    %1145 = arith.mulf %1144, %1143 : vector<1x256xf32>
    %1146 = arith.addf %1142, %1145 : vector<1x256xf32>
    %1147 = arith.mulf %105, %113 : vector<1x256xf32>
    %1148 = arith.mulf %1146, %1147 : vector<1x256xf32>
    %1149 = arith.addf %1138, %1148 : vector<1x256xf32>
    %c0_240 = arith.constant 0 : index
    %c70_241 = arith.constant 70 : index
    %1150 = vector.load %arg8[%c0_240, %c70_241] : memref<2x358xf32, #tpu.memory_space<vmem>>, vector<2x256xf32>
    %1151 = vector.extract_strided_slice %1150 {offsets = [0, 0], sizes = [1, 256], strides = [1, 1]} : vector<2x256xf32> to vector<1x256xf32>
    %1152 = vector.broadcast %37 : f32 to vector<1x256xf32>
    %1153 = arith.mulf %1152, %1151 : vector<1x256xf32>
    %1154 = vector.extract_strided_slice %1150 {offsets = [1, 0], sizes = [1, 256], strides = [1, 1]} : vector<2x256xf32> to vector<1x256xf32>
    %1155 = vector.broadcast %86 : f32 to vector<1x256xf32>
    %1156 = arith.mulf %1155, %1154 : vector<1x256xf32>
    %1157 = arith.addf %1153, %1156 : vector<1x256xf32>
    %1158 = arith.mulf %105, %114 : vector<1x256xf32>
    %1159 = arith.mulf %1157, %1158 : vector<1x256xf32>
    %1160 = arith.addf %1149, %1159 : vector<1x256xf32>
    %c0_242 = arith.constant 0 : index
    %c80_243 = arith.constant 80 : index
    %1161 = vector.load %arg8[%c0_242, %c80_243] : memref<2x358xf32, #tpu.memory_space<vmem>>, vector<2x256xf32>
    %1162 = vector.extract_strided_slice %1161 {offsets = [0, 0], sizes = [1, 256], strides = [1, 1]} : vector<2x256xf32> to vector<1x256xf32>
    %1163 = vector.broadcast %38 : f32 to vector<1x256xf32>
    %1164 = arith.mulf %1163, %1162 : vector<1x256xf32>
    %1165 = vector.extract_strided_slice %1161 {offsets = [1, 0], sizes = [1, 256], strides = [1, 1]} : vector<2x256xf32> to vector<1x256xf32>
    %1166 = vector.broadcast %87 : f32 to vector<1x256xf32>
    %1167 = arith.mulf %1166, %1165 : vector<1x256xf32>
    %1168 = arith.addf %1164, %1167 : vector<1x256xf32>
    %1169 = arith.mulf %106, %108 : vector<1x256xf32>
    %1170 = arith.mulf %1168, %1169 : vector<1x256xf32>
    %1171 = arith.addf %1160, %1170 : vector<1x256xf32>
    %c0_244 = arith.constant 0 : index
    %c81_245 = arith.constant 81 : index
    %1172 = vector.load %arg8[%c0_244, %c81_245] : memref<2x358xf32, #tpu.memory_space<vmem>>, vector<2x256xf32>
    %1173 = vector.extract_strided_slice %1172 {offsets = [0, 0], sizes = [1, 256], strides = [1, 1]} : vector<2x256xf32> to vector<1x256xf32>
    %1174 = vector.broadcast %39 : f32 to vector<1x256xf32>
    %1175 = arith.mulf %1174, %1173 : vector<1x256xf32>
    %1176 = vector.extract_strided_slice %1172 {offsets = [1, 0], sizes = [1, 256], strides = [1, 1]} : vector<2x256xf32> to vector<1x256xf32>
    %1177 = vector.broadcast %88 : f32 to vector<1x256xf32>
    %1178 = arith.mulf %1177, %1176 : vector<1x256xf32>
    %1179 = arith.addf %1175, %1178 : vector<1x256xf32>
    %1180 = arith.mulf %106, %109 : vector<1x256xf32>
    %1181 = arith.mulf %1179, %1180 : vector<1x256xf32>
    %1182 = arith.addf %1171, %1181 : vector<1x256xf32>
    %c0_246 = arith.constant 0 : index
    %c82_247 = arith.constant 82 : index
    %1183 = vector.load %arg8[%c0_246, %c82_247] : memref<2x358xf32, #tpu.memory_space<vmem>>, vector<2x256xf32>
    %1184 = vector.extract_strided_slice %1183 {offsets = [0, 0], sizes = [1, 256], strides = [1, 1]} : vector<2x256xf32> to vector<1x256xf32>
    %1185 = vector.broadcast %40 : f32 to vector<1x256xf32>
    %1186 = arith.mulf %1185, %1184 : vector<1x256xf32>
    %1187 = vector.extract_strided_slice %1183 {offsets = [1, 0], sizes = [1, 256], strides = [1, 1]} : vector<2x256xf32> to vector<1x256xf32>
    %1188 = vector.broadcast %89 : f32 to vector<1x256xf32>
    %1189 = arith.mulf %1188, %1187 : vector<1x256xf32>
    %1190 = arith.addf %1186, %1189 : vector<1x256xf32>
    %1191 = arith.mulf %106, %110 : vector<1x256xf32>
    %1192 = arith.mulf %1190, %1191 : vector<1x256xf32>
    %1193 = arith.addf %1182, %1192 : vector<1x256xf32>
    %c0_248 = arith.constant 0 : index
    %c83_249 = arith.constant 83 : index
    %1194 = vector.load %arg8[%c0_248, %c83_249] : memref<2x358xf32, #tpu.memory_space<vmem>>, vector<2x256xf32>
    %1195 = vector.extract_strided_slice %1194 {offsets = [0, 0], sizes = [1, 256], strides = [1, 1]} : vector<2x256xf32> to vector<1x256xf32>
    %1196 = vector.broadcast %41 : f32 to vector<1x256xf32>
    %1197 = arith.mulf %1196, %1195 : vector<1x256xf32>
    %1198 = vector.extract_strided_slice %1194 {offsets = [1, 0], sizes = [1, 256], strides = [1, 1]} : vector<2x256xf32> to vector<1x256xf32>
    %1199 = vector.broadcast %90 : f32 to vector<1x256xf32>
    %1200 = arith.mulf %1199, %1198 : vector<1x256xf32>
    %1201 = arith.addf %1197, %1200 : vector<1x256xf32>
    %1202 = arith.mulf %106, %111 : vector<1x256xf32>
    %1203 = arith.mulf %1201, %1202 : vector<1x256xf32>
    %1204 = arith.addf %1193, %1203 : vector<1x256xf32>
    %c0_250 = arith.constant 0 : index
    %c84_251 = arith.constant 84 : index
    %1205 = vector.load %arg8[%c0_250, %c84_251] : memref<2x358xf32, #tpu.memory_space<vmem>>, vector<2x256xf32>
    %1206 = vector.extract_strided_slice %1205 {offsets = [0, 0], sizes = [1, 256], strides = [1, 1]} : vector<2x256xf32> to vector<1x256xf32>
    %1207 = vector.broadcast %42 : f32 to vector<1x256xf32>
    %1208 = arith.mulf %1207, %1206 : vector<1x256xf32>
    %1209 = vector.extract_strided_slice %1205 {offsets = [1, 0], sizes = [1, 256], strides = [1, 1]} : vector<2x256xf32> to vector<1x256xf32>
    %1210 = vector.broadcast %91 : f32 to vector<1x256xf32>
    %1211 = arith.mulf %1210, %1209 : vector<1x256xf32>
    %1212 = arith.addf %1208, %1211 : vector<1x256xf32>
    %1213 = arith.mulf %106, %112 : vector<1x256xf32>
    %1214 = arith.mulf %1212, %1213 : vector<1x256xf32>
    %1215 = arith.addf %1204, %1214 : vector<1x256xf32>
    %c0_252 = arith.constant 0 : index
    %c85_253 = arith.constant 85 : index
    %1216 = vector.load %arg8[%c0_252, %c85_253] : memref<2x358xf32, #tpu.memory_space<vmem>>, vector<2x256xf32>
    %1217 = vector.extract_strided_slice %1216 {offsets = [0, 0], sizes = [1, 256], strides = [1, 1]} : vector<2x256xf32> to vector<1x256xf32>
    %1218 = vector.broadcast %43 : f32 to vector<1x256xf32>
    %1219 = arith.mulf %1218, %1217 : vector<1x256xf32>
    %1220 = vector.extract_strided_slice %1216 {offsets = [1, 0], sizes = [1, 256], strides = [1, 1]} : vector<2x256xf32> to vector<1x256xf32>
    %1221 = vector.broadcast %92 : f32 to vector<1x256xf32>
    %1222 = arith.mulf %1221, %1220 : vector<1x256xf32>
    %1223 = arith.addf %1219, %1222 : vector<1x256xf32>
    %1224 = arith.mulf %106, %113 : vector<1x256xf32>
    %1225 = arith.mulf %1223, %1224 : vector<1x256xf32>
    %1226 = arith.addf %1215, %1225 : vector<1x256xf32>
    %c0_254 = arith.constant 0 : index
    %c86_255 = arith.constant 86 : index
    %1227 = vector.load %arg8[%c0_254, %c86_255] : memref<2x358xf32, #tpu.memory_space<vmem>>, vector<2x256xf32>
    %1228 = vector.extract_strided_slice %1227 {offsets = [0, 0], sizes = [1, 256], strides = [1, 1]} : vector<2x256xf32> to vector<1x256xf32>
    %1229 = vector.broadcast %44 : f32 to vector<1x256xf32>
    %1230 = arith.mulf %1229, %1228 : vector<1x256xf32>
    %1231 = vector.extract_strided_slice %1227 {offsets = [1, 0], sizes = [1, 256], strides = [1, 1]} : vector<2x256xf32> to vector<1x256xf32>
    %1232 = vector.broadcast %93 : f32 to vector<1x256xf32>
    %1233 = arith.mulf %1232, %1231 : vector<1x256xf32>
    %1234 = arith.addf %1230, %1233 : vector<1x256xf32>
    %1235 = arith.mulf %106, %114 : vector<1x256xf32>
    %1236 = arith.mulf %1234, %1235 : vector<1x256xf32>
    %1237 = arith.addf %1226, %1236 : vector<1x256xf32>
    %c0_256 = arith.constant 0 : index
    %c96_257 = arith.constant 96 : index
    %1238 = vector.load %arg8[%c0_256, %c96_257] : memref<2x358xf32, #tpu.memory_space<vmem>>, vector<2x256xf32>
    %1239 = vector.extract_strided_slice %1238 {offsets = [0, 0], sizes = [1, 256], strides = [1, 1]} : vector<2x256xf32> to vector<1x256xf32>
    %1240 = vector.broadcast %45 : f32 to vector<1x256xf32>
    %1241 = arith.mulf %1240, %1239 : vector<1x256xf32>
    %1242 = vector.extract_strided_slice %1238 {offsets = [1, 0], sizes = [1, 256], strides = [1, 1]} : vector<2x256xf32> to vector<1x256xf32>
    %1243 = vector.broadcast %94 : f32 to vector<1x256xf32>
    %1244 = arith.mulf %1243, %1242 : vector<1x256xf32>
    %1245 = arith.addf %1241, %1244 : vector<1x256xf32>
    %1246 = arith.mulf %107, %108 : vector<1x256xf32>
    %1247 = arith.mulf %1245, %1246 : vector<1x256xf32>
    %1248 = arith.addf %1237, %1247 : vector<1x256xf32>
    %c0_258 = arith.constant 0 : index
    %c97_259 = arith.constant 97 : index
    %1249 = vector.load %arg8[%c0_258, %c97_259] : memref<2x358xf32, #tpu.memory_space<vmem>>, vector<2x256xf32>
    %1250 = vector.extract_strided_slice %1249 {offsets = [0, 0], sizes = [1, 256], strides = [1, 1]} : vector<2x256xf32> to vector<1x256xf32>
    %1251 = vector.broadcast %46 : f32 to vector<1x256xf32>
    %1252 = arith.mulf %1251, %1250 : vector<1x256xf32>
    %1253 = vector.extract_strided_slice %1249 {offsets = [1, 0], sizes = [1, 256], strides = [1, 1]} : vector<2x256xf32> to vector<1x256xf32>
    %1254 = vector.broadcast %95 : f32 to vector<1x256xf32>
    %1255 = arith.mulf %1254, %1253 : vector<1x256xf32>
    %1256 = arith.addf %1252, %1255 : vector<1x256xf32>
    %1257 = arith.mulf %107, %109 : vector<1x256xf32>
    %1258 = arith.mulf %1256, %1257 : vector<1x256xf32>
    %1259 = arith.addf %1248, %1258 : vector<1x256xf32>
    %c0_260 = arith.constant 0 : index
    %c98_261 = arith.constant 98 : index
    %1260 = vector.load %arg8[%c0_260, %c98_261] : memref<2x358xf32, #tpu.memory_space<vmem>>, vector<2x256xf32>
    %1261 = vector.extract_strided_slice %1260 {offsets = [0, 0], sizes = [1, 256], strides = [1, 1]} : vector<2x256xf32> to vector<1x256xf32>
    %1262 = vector.broadcast %47 : f32 to vector<1x256xf32>
    %1263 = arith.mulf %1262, %1261 : vector<1x256xf32>
    %1264 = vector.extract_strided_slice %1260 {offsets = [1, 0], sizes = [1, 256], strides = [1, 1]} : vector<2x256xf32> to vector<1x256xf32>
    %1265 = vector.broadcast %96 : f32 to vector<1x256xf32>
    %1266 = arith.mulf %1265, %1264 : vector<1x256xf32>
    %1267 = arith.addf %1263, %1266 : vector<1x256xf32>
    %1268 = arith.mulf %107, %110 : vector<1x256xf32>
    %1269 = arith.mulf %1267, %1268 : vector<1x256xf32>
    %1270 = arith.addf %1259, %1269 : vector<1x256xf32>
    %c0_262 = arith.constant 0 : index
    %c99_263 = arith.constant 99 : index
    %1271 = vector.load %arg8[%c0_262, %c99_263] : memref<2x358xf32, #tpu.memory_space<vmem>>, vector<2x256xf32>
    %1272 = vector.extract_strided_slice %1271 {offsets = [0, 0], sizes = [1, 256], strides = [1, 1]} : vector<2x256xf32> to vector<1x256xf32>
    %1273 = vector.broadcast %48 : f32 to vector<1x256xf32>
    %1274 = arith.mulf %1273, %1272 : vector<1x256xf32>
    %1275 = vector.extract_strided_slice %1271 {offsets = [1, 0], sizes = [1, 256], strides = [1, 1]} : vector<2x256xf32> to vector<1x256xf32>
    %1276 = vector.broadcast %97 : f32 to vector<1x256xf32>
    %1277 = arith.mulf %1276, %1275 : vector<1x256xf32>
    %1278 = arith.addf %1274, %1277 : vector<1x256xf32>
    %1279 = arith.mulf %107, %111 : vector<1x256xf32>
    %1280 = arith.mulf %1278, %1279 : vector<1x256xf32>
    %1281 = arith.addf %1270, %1280 : vector<1x256xf32>
    %c0_264 = arith.constant 0 : index
    %c100_265 = arith.constant 100 : index
    %1282 = vector.load %arg8[%c0_264, %c100_265] : memref<2x358xf32, #tpu.memory_space<vmem>>, vector<2x256xf32>
    %1283 = vector.extract_strided_slice %1282 {offsets = [0, 0], sizes = [1, 256], strides = [1, 1]} : vector<2x256xf32> to vector<1x256xf32>
    %1284 = vector.broadcast %49 : f32 to vector<1x256xf32>
    %1285 = arith.mulf %1284, %1283 : vector<1x256xf32>
    %1286 = vector.extract_strided_slice %1282 {offsets = [1, 0], sizes = [1, 256], strides = [1, 1]} : vector<2x256xf32> to vector<1x256xf32>
    %1287 = vector.broadcast %98 : f32 to vector<1x256xf32>
    %1288 = arith.mulf %1287, %1286 : vector<1x256xf32>
    %1289 = arith.addf %1285, %1288 : vector<1x256xf32>
    %1290 = arith.mulf %107, %112 : vector<1x256xf32>
    %1291 = arith.mulf %1289, %1290 : vector<1x256xf32>
    %1292 = arith.addf %1281, %1291 : vector<1x256xf32>
    %c0_266 = arith.constant 0 : index
    %c101_267 = arith.constant 101 : index
    %1293 = vector.load %arg8[%c0_266, %c101_267] : memref<2x358xf32, #tpu.memory_space<vmem>>, vector<2x256xf32>
    %1294 = vector.extract_strided_slice %1293 {offsets = [0, 0], sizes = [1, 256], strides = [1, 1]} : vector<2x256xf32> to vector<1x256xf32>
    %1295 = vector.broadcast %50 : f32 to vector<1x256xf32>
    %1296 = arith.mulf %1295, %1294 : vector<1x256xf32>
    %1297 = vector.extract_strided_slice %1293 {offsets = [1, 0], sizes = [1, 256], strides = [1, 1]} : vector<2x256xf32> to vector<1x256xf32>
    %1298 = vector.broadcast %99 : f32 to vector<1x256xf32>
    %1299 = arith.mulf %1298, %1297 : vector<1x256xf32>
    %1300 = arith.addf %1296, %1299 : vector<1x256xf32>
    %1301 = arith.mulf %107, %113 : vector<1x256xf32>
    %1302 = arith.mulf %1300, %1301 : vector<1x256xf32>
    %1303 = arith.addf %1292, %1302 : vector<1x256xf32>
    %c0_268 = arith.constant 0 : index
    %c102_269 = arith.constant 102 : index
    %1304 = vector.load %arg8[%c0_268, %c102_269] : memref<2x358xf32, #tpu.memory_space<vmem>>, vector<2x256xf32>
    %1305 = vector.extract_strided_slice %1304 {offsets = [0, 0], sizes = [1, 256], strides = [1, 1]} : vector<2x256xf32> to vector<1x256xf32>
    %1306 = vector.broadcast %51 : f32 to vector<1x256xf32>
    %1307 = arith.mulf %1306, %1305 : vector<1x256xf32>
    %1308 = vector.extract_strided_slice %1304 {offsets = [1, 0], sizes = [1, 256], strides = [1, 1]} : vector<2x256xf32> to vector<1x256xf32>
    %1309 = vector.broadcast %100 : f32 to vector<1x256xf32>
    %1310 = arith.mulf %1309, %1308 : vector<1x256xf32>
    %1311 = arith.addf %1307, %1310 : vector<1x256xf32>
    %1312 = arith.mulf %107, %114 : vector<1x256xf32>
    %1313 = arith.mulf %1311, %1312 : vector<1x256xf32>
    %1314 = arith.addf %1303, %1313 : vector<1x256xf32>
    %1315 = arith.negf %1314 : vector<1x256xf32>
    %1316 = math.exp %1315 : vector<1x256xf32>
    %cst_270 = arith.constant 1.000000e+00 : f32
    %1317 = vector.broadcast %cst_270 : f32 to vector<1x256xf32>
    %1318 = arith.addf %1317, %1316 : vector<1x256xf32>
    %1319 = arith.divf %1317, %1318 : vector<1x256xf32>
    %c1_271 = arith.constant 1 : index
    %c0_272 = arith.constant 0 : index
    %c0_273 = arith.constant 0 : index
    %1320 = vector.load %arg1[%c1_271, %c0_272, %c0_273] : memref<2x4x256xf32, #tpu.memory_space<vmem>>, vector<1x4x256xf32>
    %1321 = vector.shape_cast %1320 : vector<1x4x256xf32> to vector<4x256xf32>
    %1322 = vector.broadcast %755 : vector<4x1xf32> to vector<4x256xf32>
    %1323 = arith.mulf %1321, %1322 : vector<4x256xf32>
    %1324 = vector.broadcast %1319 : vector<1x256xf32> to vector<4x256xf32>
    %1325 = arith.mulf %1323, %1324 : vector<4x256xf32>
    %c1_274 = arith.constant 1 : index
    %c0_275 = arith.constant 0 : index
    %c0_276 = arith.constant 0 : index
    %1326 = vector.load %arg7[%c1_274, %c0_275, %c0_276] : memref<2x4x256xf32, #tpu.memory_space<vmem>>, vector<1x4x256xf32>
    %1327 = vector.shape_cast %1326 : vector<1x4x256xf32> to vector<4x256xf32>
    %1328 = vector.shape_cast %1325 : vector<4x256xf32> to vector<1x4x256xf32>
    tpu.vector_store %arg7[%c1_274, %c0_275, %c0_276], %1328 {strides = array<i32>} : memref<2x4x256xf32, #tpu.memory_space<vmem>>, vector<1x4x256xf32>,
    return
  }
  func.func @transform_0(%arg0: i32) -> (i32, i32, i32) {
    %c0_i32 = arith.constant 0 : i32
    %c0_i32_0 = arith.constant 0 : i32
    %c0_i32_1 = arith.constant 0 : i32
    return %arg0, %c0_i32, %c0_i32_0 : i32, i32, i32
  }
  func.func @transform_1(%arg0: i32) -> (i32, i32) {
    %c0_i32 = arith.constant 0 : i32
    %c0_i32_0 = arith.constant 0 : i32
    %c0_i32_1 = arith.constant 0 : i32
    return %c0_i32, %c0_i32_0 : i32, i32
  }
  func.func @transform_2(%arg0: i32) -> (i32, i32) {
    %c0_i32 = arith.constant 0 : i32
    %c0_i32_0 = arith.constant 0 : i32
    %c0_i32_1 = arith.constant 0 : i32
    return %c0_i32, %c0_i32_0 : i32, i32
  }
  func.func @transform_3(%arg0: i32) -> i32 {
    %c0_i32 = arith.constant 0 : i32
    %c0_i32_0 = arith.constant 0 : i32
    return %c0_i32 : i32
  }
  func.func @transform_4(%arg0: i32) -> i32 {
    %c0_i32 = arith.constant 0 : i32
    %c0_i32_0 = arith.constant 0 : i32
    return %c0_i32 : i32
  }
  func.func @transform_5(%arg0: i32) -> (i32, i32) {
    %c0_i32 = arith.constant 0 : i32
    %c0_i32_0 = arith.constant 0 : i32
    %c0_i32_1 = arith.constant 0 : i32
    return %c0_i32, %c0_i32_0 : i32, i32
  }
  func.func @transform_6(%arg0: i32) -> (i32, i32, i32) {
    %c0_i32 = arith.constant 0 : i32
    %c0_i32_0 = arith.constant 0 : i32
    %c0_i32_1 = arith.constant 0 : i32
    return %arg0, %c0_i32, %c0_i32_0 : i32, i32, i32
  }
}

</mosaic_0001>

<bundles_post_ra>
// kernel: tpu_custom_call.1
= control target key start
LH: loop header
LB: loop body
LE: loop exit
PB: predicated region body
PF: predicated region fallthrough
CT: control target
= control target key end

     0   :  { %s5121_s0 = inlined_call_operand.hbm [shape: f32[2,4,256], index: 0, kind: input, shape index: {}, may-alias: {0,6}]   ;;  %s5122_s1 = inlined_call_operand.vmem [shape: f32[4,1], index: 1, kind: input, shape index: {}]   ;;  %s5123_s2 = inlined_call_operand.vmem [shape: f32[4,1], index: 2, kind: input, shape index: {}]   ;;  %s5124_s3 = inlined_call_operand.vmem [shape: f32[98], index: 3, kind: input, shape index: {}]   ;;  %s5125_s4 = inlined_call_operand.<no memory space> [shape: f32[1], index: 4, kind: input, shape index: {}]   ;;  %s5126_s5 = inlined_call_operand.vmem [shape: f32[14,256], index: 5, kind: input, shape index: {}]   ;;  %s5127_s6 = inlined_call_operand.hbm [shape: f32[2,4,256], index: 6, kind: output, shape index: {}, may-alias: {0,6}]  }
   0x1   :  { %5395 = sst [smem:[#allocation91_spill]] %s5125_s4 }
   0x2   :  { %5396 = sst [smem:[#allocation92_spill]] %s5127_s6 }
   0x3   :  { %12 = vsyncpa [#allocation5], 0 }
   0x4   :  { %13 = vsyncpa [#allocation7], 0 }
   0x5   :  { %14 = vsyncpa [#allocation6], 0  ;;  %s19_s23 = sshll.u32 %s5121_s0, 4  ;;  %s3130_s24 = smov [#allocation4]   ;;  %s20_s23 = int_to_ptr.hbm [resolvable:$true] %s19_s23 }
   0x6   :  { %s21_s25 = sshll.u32 %s3130_s24, 4  ;;  %s37_s28 = sshll.u32 %s5124_s3, 4  ;;  %s22_s25 = int_to_ptr.vmem [resolvable:$true] %s21_s25  ;;  %s38_s28 = int_to_ptr.vmem [resolvable:$true] %s37_s28 }
   0x7   :  { %s5128_s29 = smov 128   ;;  %s5129_s30 = smov 8  }
   0x8   :  { %27 = dma.hbm_to_vmem [thread:$0]  %s20_s23, 256, %s22_s25, [#allocation5], %s5128_s29, %s5128_s29, %s5129_s30  }
   0x9   :  { %s3133_s7 = smov [#allocation8]  }
   0xa   :  { %40 = dma.vmem_to_smem %s38_s28, 16, %s3133_s7, [#allocation7]  }
   0xb   :  { %3124 = dma.done.wait [#allocation5], 256  }
   0xc   :  { %3125 = vsyncadd [#allocation5], 4294967040 }
   0xd   :  { %3126 = dma.done.wait [#allocation7], 16  }
   0xe   :  { %3127 = vsyncadd [#allocation7], 4294967280 }
   0xf   :  { %53 = sfence }
  0x10   :  { %v3274_v0 = vld [vmem:[#allocation4] sm:$0xff]  ;;  %v54_v1 = vld [vmem:[%s5122_s1] sm:$0xf]  ;;  %v3134_v2 = vmov 0   ;;  %v3135_v5 = vmov 857870592   ;;  %v210_v36 = vlaneseq }
  0x11   :  { %188 = vst [vmem:[#allocation1] ss:$2 sm:$0xff] %v3274_v0  ;;  %3034 = vset.pattern.permute.xlu1 %v3134_v2  ;;  %3035 = vset.pattern.permute.xlu0 %v3134_v2  ;;  %v3283_v3 = vld [vmem:[%s5126_s5] ss:$8 sm:$0x3]  ;;  %v342_v6 = vunpack.c.l.s4 %v3135_v5  ;;  %vm5321_vm0 = vcmask 1043456  }
  0x12   :  { %216 = vperm.xlu1 %3034, %v54_v1   ;;  %v3288_v4 = vld [vmem:[%s5126_s5 + $0x12] ss:$8 sm:$0x3]  ;;  %v3297_v9 = vld [vmem:[%s5126_s5 + $0x15] ss:$8 sm:$0x3] }
  0x13   :  { %v418_v7 = vmul.f32 %v3288_v4, %v3283_v3  ;;  %v3292_v8 = vunpack.c.0.s8 %v342_v6  ;;  %v55_v11 = vld [vmem:[%s5123_s2] sm:$0xf]  ;;  %s3136_s15 = smov 3   ;;  %v508_v14 = vmul.f32 %v3297_v9, %v3283_v3  ;;  %v3317_v20 = vld [vmem:[%s5126_s5 + $0x11] ss:$8 sm:$0x3] }
  0x14   :  { %v3312_v19 = vld [vmem:[%s5126_s5 + $0x1] ss:$8 sm:$0x3]  ;;  %s3137_s19 = smov 6   ;;  %s3138_s20 = smov 18   ;;  %v3344_v38 = vand.u32 127, %v210_v36  ;;  %v388_v62 = vmul.f32 %v3317_v20, %v3283_v3 }
  0x15   :  { %v423_v10 = vperm.slane %v418_v7, %v3292_v8  ;;  %v513_v18 = vperm.slane %v508_v14, %v3292_v8  ;;  %v598_v23 = vmul.f32 %v3317_v20, %v3312_v19  ;;  %v718_v28 = vmul.f32 %v3297_v9, %v3312_v19  ;;  %v3330_v30 = vld [vmem:[%s5126_s5 + $0x2] ss:$8 sm:$0x3]  ;;  %s3139_s23 = smov 22   ;;  %s3140_s26 = smov 35  }
  0x16   :  { %v838_v31 = vmul.f32 %v3288_v4, %v3330_v30  ;;  %v3338_v33 = vld [vmem:[%s5126_s5 + $0x13] ss:$8 sm:$0x3]  ;;  %s3141_s27 = smov 36   ;;  %vm212_vm1 = vcmp.eq.s32.totalorder %v3344_v38, 0  ;;  %vm220_vm2 = vcmask 11264   ;;  %v393_v1 = vperm.slane %v388_v62, %v3292_v8 }
  0x17   :  { %424 = vrot.lane.b32.xlu2 %v423_v10, %s3136_s15  ;;  %v603_v27 = vperm.slane %v598_v23, %v3292_v8  ;;  %v723_v29 = vperm.slane %v718_v28, %v3292_v8  ;;  %v868_v34 = vmul.f32 %v3338_v33, %v3330_v30  ;;  %v3356_v50 = vld [vmem:[%s5126_s5 + $0x10] ss:$8 sm:$0x3]  ;;  %s3142_s0 = smov 1   ;;  %s3143_s9 = smov 5   ;;  %v928_v6 = vmul.f32 %v3297_v9, %v3330_v30 }
  0x18   :  { %v189_v12 = vld.sshfl [vmem:[#allocation1] sm:$0xff pattern:$0x75316420]  ;;  %v190_v13 = vld.sshfl [vmem:[#allocation1 + $0x8] sm:$0xff pattern:$0x75316420]  ;;  %v843_v32 = vperm.slane %v838_v31, %v3292_v8  ;;  %v358_v52 = vmul.f32 %v3356_v50, %v3283_v3  ;;  %v568_v61 = vmul.f32 %v3356_v50, %v3312_v19 }
  0x19   :  { %v194_v15 = vsel %vm5321_vm0, %v189_v12, 0.0  ;;  %v195_v16 = vsel %vm5321_vm0, %v190_v13, 0.0  ;;  %200 = vst [vmem:[#allocation1] ss:$2 sm:$0xff] %v3274_v0  ;;  %v873_v35 = vperm.slane %v868_v34, %v3292_v8  ;;  %s3144_s10 = smov 2   ;;  %s3145_s11 = smov 17   ;;  %v933_v7 = vperm.slane %v928_v6, %v3292_v8 }
  0x1a   :  { %v196_v17 = vadd.f32 %v195_v16, %v194_v15  ;;  %231 = vperm.xlu1 %3034, %v55_v11   ;;  %v363_v54 = vperm.slane %v358_v52, %v3292_v8  ;;  %v3368_v58 = vld [vmem:[%s5126_s5 + $0x14] ss:$8 sm:$0x3]  ;;  %v573_v63 = vperm.slane %v568_v61, %v3292_v8  ;;  %s3146_s1 = smov 37   ;;  %s3147_s16 = smov 38   ;;  %vm313_vm8 = vcmask 1041408  }
  0x1b   :  { %v478_v59 = vmul.f32 %v3368_v58, %v3283_v3  ;;  %v898_v2 = vmul.f32 %v3368_v58, %v3330_v30  ;;  %v3388_v10 = vld [vmem:[%s5126_s5 + $0x3] ss:$8 sm:$0x3]  ;;  %v3393_v11 = vld [vmem:[%s5126_s5 + $0x7] ss:$8 sm:$0x3] }
  0x1c   :  { %197 = vadd.xlane.f32.xlu0 %v196_v17  ;;  %v958_v12 = vmul.f32 %v3393_v11, %v3388_v10  ;;  %s5142_s2 = smov 48   ;;  %v988_v17 = vmul.f32 %v3356_v50, %v3388_v10  ;;  %s3149_s17 = smov 49   ;;  %v538_v28 = vmul.f32 %v3393_v11, %v3312_v19  ;;  %v1018_v61 = vmul.f32 %v3317_v20, %v3388_v10 }
  0x1d   :  { %v483_v60 = vperm.slane %v478_v59, %v3292_v8  ;;  %v903_v5 = vperm.slane %v898_v2, %v3292_v8  ;;  %s3150_s18 = smov 34   ;;  %s3153_s21 = smov 52   ;;  %v3163_v62 = vmov 839922192   ;;  %vm182_vm9 = vcmask 410624  }
  0x1e   :  { %v963_v13 = vperm.slane %v958_v12, %v3292_v8  ;;  %v543_v31 = vperm.slane %v538_v28, %v3292_v8  ;;  %s3154_s22 = smov 16   ;;  %s3155_s25 = smov 65   ;;  %vm184_vm10 = vcmask 828824   ;;  %vm321_vm11 = vcmask 1041816  }
  0x1f   :  { %514 = vrot.lane.b32.xlu2 %v513_v18, %s3137_s19  ;;  %v808_v18 = vmul.f32 %v3317_v20, %v3330_v30  ;;  %s3151_s19 = smov 4   ;;  %s3158_s28 = smov 67   ;;  %vm322_vm12 = vcmask 1043458   ;;  %vm324_vm14 = vcmask 414724   ;;  %vm318_vm15 = vcmask 416768  }
  0x20   :  { %v201_v21 = vld.sshfl [vmem:[#allocation1] sm:$0xff pattern:$0x75316420]  ;;  %v202_v22 = vld.sshfl [vmem:[#allocation1 + $0x8] sm:$0xff pattern:$0x75316420]  ;;  %vm323_vm13 = vmor %vm322_vm12, %vm321_vm11 }
  0x21   :  { %v205_v24 = vsel %vm5321_vm0, %v201_v21, -inf  ;;  %v206_v25 = vsel %vm5321_vm0, %v202_v22, -inf  ;;  %v993_v21 = vperm.slane %v988_v17, %v3292_v8  ;;  %v448_v22 = vmul.f32 %v3338_v33, %v3283_v3  ;;  %s3159_s7 = smov 20   ;;  %s5139_s8 = smov 32  }
  0x22   :  { %v207_v26 = vmax.f32 %v205_v24, %v206_v25  ;;  %394 = vrot.lane.b32.xlu1 %v393_v1, %s3144_s10  ;;  %v813_v23 = vperm.slane %v808_v18, %v3292_v8  ;;  %s3162_s3 = smov 33   ;;  %v1048_v17 = vmul.f32 %v3288_v4, %v3388_v10  ;;  %s5141_s10 = smov 51   ;;  %vm547_vm11 = vcmask 130048  }
  0x23   :  { %v453_v24 = vperm.slane %v448_v22, %v3292_v8  ;;  %s3533_s12 = sld [smem:[#allocation8 + $0x32]]  ;;  %s5130_s29 = smov 125   ;;  %vm607_vm12 = vcmask 146432  }
  0x24   :  { %208 = vmax.xlane.f32.xlu0 %v207_v26  ;;  %v1107_v26 = vmul.f32 %v3368_v58, %v3388_v10  ;;  %v1053_v22 = vperm.slane %v1048_v17, %v3292_v8  ;;  %s3537_s13 = sld [smem:[#allocation8 + $0x1]]  ;;  %s5152_s6 = smov 122  }
  0x25   :  { %s3542_s14 = sld [smem:[#allocation8 + $0x6]] }
  0x26   :  { %v1112_v3 = vperm.slane %v1107_v26, %v3292_v8  ;;  %s3547_s15 = sld [smem:[#allocation8 + $0x34]] }
  0x27   :  { %604 = vrot.lane.b32.xlu2 %v603_v27, %s3138_s20  ;;  %v1077_v27 = vmul.f32 %v3338_v33, %v3388_v10  ;;  %s3152_s20 = smov 53   ;;  %s3574_s24 = sld [smem:[#allocation8 + $0x38]] }
  0x28   :  { %s3643_s30 = sld [smem:[#allocation8 + $0x8]] }
  0x2a   :  { %454 = vrot.lane.b32.xlu1 %v453_v24, %s3151_s19  ;;  %s3560_s19 = sld [smem:[#allocation8 + $0x36]] }
  0x2e   :  { %5407 = sst [smem:[#allocation21_spill]] %s3643_s30 }
  0x2f   :  { %724 = vrot.lane.b32.xlu2 %v723_v29, %s3139_s23  ;;  %v1082_v29 = vperm.slane %v1077_v27, %v3292_v8  ;;  %s3572_s23 = sld [smem:[#allocation8 + $0x2]] }
  0x32   :  { %544 = vrot.lane.b32.xlu1 %v543_v31, %s3154_s22  ;;  %s3569_s22 = sld [smem:[#allocation8 + $0x33]] }
  0x37   :  { %844 = vrot.lane.b32.xlu2 %v843_v32, %s3140_s26  ;;  %v3428_v32 = vld [vmem:[%s5126_s5 + $0x4] ss:$8 sm:$0x3]  ;;  %s5144_s26 = smov 64  }
  0x38   :  { %364 = vrot.lane.b32.xlu0 %v363_v54, %s3142_s0  ;;  %v1196_v34 = vmul.f32 %v3356_v50, %v3428_v32  ;;  %s3160_s0 = smov 21   ;;  %v1226_v27 = vmul.f32 %v3317_v20, %v3428_v32 }
  0x3f   :  { %874 = vrot.lane.b32.xlu2 %v873_v35, %s3141_s27  ;;  %s3157_s27 = smov 19  }
  0x40   :  { %484 = vrot.lane.b32.xlu0 %v483_v60, %s3143_s9  ;;  %s3164_s9 = smov 50  }
  0x48   :  { %574 = vrot.lane.b32.xlu0 %v573_v63, %s3145_s11  ;;  %v3462_v63 = vunpack.c.l.s4 %v3163_v62  ;;  %s3166_s11 = smov 54  }
  0x50   :  { %814 = vrot.lane.b32.xlu0 %v813_v23, %s3150_s18  ;;  %v1137_v23 = vmul.f32 %v3297_v9, %v3388_v10  ;;  %s3555_s18 = sld [smem:[#allocation8 + $0x3a]] }
  0x52   :  { %v1142_v24 = vperm.slane %v1137_v23, %v3292_v8 }
  0x56   :  { %5400 = sst [smem:[#allocation14_spill]] %s3555_s18 }
  0x58   :  { %1083 = vrot.lane.b32.xlu0 %v1082_v29, %s3153_s21  ;;  %s3567_s21 = sld [smem:[#allocation8 + $0x35]] }
  0x71   :  { %v3399_v14 = vpop.permute.xlu2 %424 }
  0x79   :  { %v3401_v15 = vpop.permute.xlu2 %514 }
  0x81   :  { %v3403_v16 = vpop.permute.xlu2 %604 }
  0x84   :  { %v3347_v41 = vpop.permute.xlu1 %216 }
  0x89   :  { %v3414_v25 = vpop.permute.xlu2 %724 }
  0x8c   :  { %v3361_v55 = vpop.permute.xlu1 %231 }
  0x8f   :  { %v198_v37 = vpop.xlane.xlu0 %197 }
  0x90   :  { %v199_v39 = vmul.f32 0.00390625, %v198_v37  ;;  %v1167_v37 = vmul.f32 %v3393_v11, %v3428_v32 }
  0x91   :  { %v3432_v35 = vpop.permute.xlu2 %844 }
  0x97   :  { %v209_v40 = vpop.xlane.xlu0 %208 }
  0x98   :  { %v213_v42 = vsel %vm212_vm1, %v199_v39, %v209_v40  ;;  %v1201_v39 = vperm.slane %v1196_v34, %v3292_v8  ;;  %v628_v40 = vmul.f32 %v3288_v4, %v3312_v19 }
  0x99   :  { %v219_v43 = vmul.f32 %v3347_v41, %v213_v42  ;;  %v1172_v42 = vperm.slane %v1167_v37, %v3292_v8 }
  0x9b   :  { %v221_v44 = vsel %vm220_vm2, %v219_v43, 0.0  ;;  %v633_v43 = vperm.slane %v628_v40, %v3292_v8  ;;  %1173 = vrot.lane.b32.xlu0 %v1172_v42, %s5144_s26  ;;  %s3695_s26 = sld [smem:[#allocation8 + $0x16]] }
  0x9c   :  { %v222_v45 = vrot.slane %v221_v44, 4 }
  0x9d   :  { %634 = vrot.lane.b32.xlu1 %v633_v43, %s3157_s27  ;;  %s3586_s27 = sld [smem:[#allocation8 + $0x3e]] }
  0x9e   :  { %v223_v46 = vadd.f32 %v222_v45, %v221_v44  ;;  %v1256_v44 = vmul.f32 %v3288_v4, %v3428_v32  ;;  %v658_v45 = vmul.f32 %v3338_v33, %v3312_v19  ;;  %v748_v33 = vmul.f32 %v3393_v11, %v3330_v30 }
  0xa0   :  { %v224_v47 = vrot.slane %v223_v46, 2 }
  0xa1   :  { %5410 = sst [smem:[#allocation24_spill]] %s3695_s26 }
  0xa2   :  { %v225_v48 = vadd.f32 %v224_v47, %v223_v46  ;;  %v3446_v46 = vpop.permute.xlu2 %874  ;;  %v1261_v47 = vperm.slane %v1256_v44, %v3292_v8 }
  0xa3   :  { %5402 = sst [smem:[#allocation16_spill]] %s3586_s27 }
  0xa4   :  { %v226_v49 = vrot.slane %v225_v48, 1  ;;  %1262 = vrot.lane.b32.xlu0 %v1261_v47, %s3158_s28  ;;  %s3591_s28 = sld [smem:[#allocation8 + $0x5]] }
  0xa6   :  { %v227_v51 = vadd.f32 %v226_v49, %v225_v48  ;;  %v663_v48 = vperm.slane %v658_v45, %v3292_v8  ;;  %v688_v49 = vmul.f32 %v3368_v58, %v3312_v19  ;;  %v778_v19 = vmul.f32 %v3356_v50, %v3330_v30 }
  0xa7   :  { %v1023_v30 = vperm.slane %v1018_v61, %v3292_v8  ;;  %v5277_v50 = vunpack.c.0.s8 %v3462_v63 }
  0xa8   :  { %v228_v53 = vmax.f32 %v227_v51, 0.0  ;;  %664 = vrot.lane.b32.xlu1 %v663_v48, %s3159_s7  ;;  %v783_v58 = vperm.slane %v778_v19, %v3292_v8  ;;  %s3603_s7 = sld [smem:[#allocation8 + $0x39]] }
  0xaa   :  { %v234_v56 = vmul.f32 %v3361_v55, %v228_v53  ;;  %v693_v53 = vperm.slane %v688_v49, %v3292_v8 }
  0xac   :  { %v235_v57 = vsel %vm220_vm2, %v234_v56, 0.0  ;;  %v753_v56 = vperm.slane %v748_v33, %v3292_v8 }
  0xad   :  { %236 = vadd.xlane.f32.xlu2 %v235_v57 }
  0xae   :  { %5403 = sst [smem:[#allocation17_spill]] %s3603_s7 }
  0xb0   :  { %694 = vrot.lane.b32.xlu1 %v693_v53, %s3160_s0  ;;  %s5133_s0 = smov 127  }
  0xb8   :  { %754 = vrot.lane.b32.xlu1 %v753_v56, %s5139_s8  ;;  %s3684_s8 = sld [smem:[#allocation8 + $0x3b]] }
  0xc0   :  { %784 = vrot.lane.b32.xlu1 %v783_v58, %s3162_s3  ;;  %s3611_s3 = sld [smem:[#allocation8 + $0x7]] }
  0xc5   :  { %904 = vrot.lane.b32.xlu2 %v903_v5, %s3146_s1  ;;  %s3167_s1 = smov 66  }
  0xc8   :  { %1024 = vrot.lane.b32.xlu1 %v1023_v30, %s3164_s9  ;;  %s3617_s9 = sld [smem:[#allocation8 + $0x40]] }
  0xcd   :  { %934 = vrot.lane.b32.xlu2 %v933_v7, %s3147_s16  ;;  %s3549_s16 = sld [smem:[#allocation8 + $0x37]] }
  0xce   :  { %5404 = sst [smem:[#allocation18_spill]] %s3617_s9 }
  0xd0   :  { %1054 = vrot.lane.b32.xlu1 %v1053_v22, %s5141_s10 }
  0xd5   :  { %964 = vrot.lane.b32.xlu2 %v963_v13, %s5142_s2  ;;  %s5147_s2 = smov 126  }
  0xd8   :  { %1143 = vrot.lane.b32.xlu1 %v1142_v24, %s3166_s11  ;;  %s3622_s11 = sld [smem:[#allocation8 + $0xd]] }
  0xdd   :  { %994 = vrot.lane.b32.xlu2 %v993_v21, %s3149_s17  ;;  %s3553_s17 = sld [smem:[#allocation8 + $0x3]] }
  0xde   :  { %5405 = sst [smem:[#allocation19_spill]] %s3622_s11 }
  0xe5   :  { %1113 = vrot.lane.b32.xlu2 %v1112_v3, %s3152_s20  ;;  %v1231_v3 = vperm.slane %v1226_v27, %v3292_v8  ;;  %s3562_s20 = sld [smem:[#allocation8 + $0x4]] }
  0xe7   :  { %1232 = vrot.lane.b32.xlu1 %v1231_v3, %s3167_s1  ;;  %s3631_s1 = sld [smem:[#allocation8 + $0x47]] }
  0xed   :  { %1202 = vrot.lane.b32.xlu2 %v1201_v39, %s3155_s25  ;;  %s3579_s25 = sld [smem:[#allocation8 + $0x9]] }
  0xee   :  { %5406 = sst [smem:[#allocation20_spill]] %s3631_s1 }
  0xf3   :  { %5401 = sst [smem:[#allocation15_spill]] %s3579_s25 }
 0x120   :  { %v237_v51 = vpop.xlane.xlu2 %236 }
 0x121   :  { %v2832_v52 = vmul.f32 -1.442695, %v237_v51 }
 0x123   :  { %3036 = vpow2.f32 %v2832_v52 }
 0x128   :  { %v3504_v27 = vpop.permute.xlu2 %904 }
 0x129   :  { %v3037_v54 = vpop.eup %3036 }
 0x12a   :  { %v241_v57 = vadd.f32 1.0, %v3037_v54 }
 0x12c   :  { %3038 = vrcp.f32 %v241_v57  ;;  %v253_v2 = vand.u32 2147483648, %v241_v57  ;;  %v251_v6 = vand.u32 2147483647, %v241_v57  ;;  %vm247_vm4 = vweird.f32 %v241_v57 }
 0x12e   :  { %v254_v11 = vor.u32 1.1754944e-38, %v253_v2  ;;  %vm252_vm6 = vcmp.eq.f32.partialorder %v251_v6, 8.507059e+37  ;;  %v3495_v6 = vshrl.u32 %v210_v36, 7 }
 0x130   :  { %vm307_vm7 = vcmp.eq.s32.totalorder %v3495_v6, 0  ;;  %v3506_v3 = vpop.permute.xlu2 %934  ;;  %v4336_v6 = vld [vmem:[%s5126_s5 + $0x11] ss:$8 sm:$0x3] }
 0x132   :  { %v3039_v59 = vpop.eup %3038 }
 0x133   :  { %v243_v60 = vmul.f32 %v3039_v59, %v241_v57  ;;  %vm248_vm3 = vweird.f32 %v3039_v59 }
 0x134   :  { %vm249_vm5 = vmor %vm247_vm4, %vm248_vm3  ;;  %vm367_vm4 = vcmask 7168  }
 0x135   :  { %v244_v1 = vsub.f32 1.0, %v243_v60  ;;  %vm3524_vm3 = vmor %vm324_vm14, %vm323_vm13  ;;  %vm487_vm13 = vcmask 39936   ;;  %vm727_vm14 = vcmask 179200  }
 0x137   :  { %v245_v5 = vmul.f32 %v3039_v59, %v244_v1 }
 0x139   :  { %v246_v7 = vadd.f32 %v3039_v59, %v245_v5 }
 0x13b   :  { %v250_v12 = vsel %vm249_vm5, %v3039_v59, %v246_v7  ;;  %vm427_vm5 = vcmask 23552  }
 0x13c   :  { %v255_v13 = vsel %vm252_vm6, %v254_v11, %v250_v12  ;;  %vm517_vm6 = vcmask 48128  }
 0x13d   :  { %v3470_v18 = vperm.slane %v255_v13, %v5277_v50 }
 0x13f   :  { %5397 = vst [vmem:[#allocation13_spill] sm:$0xff] %v3470_v18  ;;  %v263_v21 = vmul.f32 %v3470_v18, %v3274_v0  ;;  %v3481_v0 = vld [vmem:[#allocation4 + $0x8] sm:$0xff] }
 0x141   :  { %265 = vst [vmem:[#allocation1] ss:$2 sm:$0xff] %v263_v21 }
 0x148   :  { %v266_v26 = vld.sshfl [vmem:[#allocation1] sm:$0xff pattern:$0x75316420]  ;;  %v267_v4 = vld.sshfl [vmem:[#allocation1 + $0x8] sm:$0xff pattern:$0x75316420] }
 0x149   :  { %286 = vst [vmem:[#allocation1] ss:$2 sm:$0xff] %v263_v21  ;;  %v277_v28 = vsel %vm5321_vm0, %v267_v4, 0.0  ;;  %v270_v34 = vsel %vm5321_vm0, %v266_v26, 0.0 }
 0x14a   :  { %v278_v10 = vrot.slane %v277_v28, 4  ;;  %v271_v20 = vrot.slane %v270_v34, 4 }
 0x14c   :  { %v279_v39 = vadd.f32 %v278_v10, %v277_v28  ;;  %v272_v52 = vadd.f32 %v271_v20, %v270_v34  ;;  %v3508_v28 = vpop.permute.xlu2 %964  ;;  %v3514_v10 = vpop.permute.xlu1 %394 }
 0x14e   :  { %v280_v49 = vrot.slane %v279_v39, 2  ;;  %v273_v56 = vrot.slane %v272_v52, 2 }
 0x150   :  { %v287_v29 = vld.sshfl [vmem:[#allocation1] sm:$0xff pattern:$0x75316420]  ;;  %v288_v31 = vld.sshfl [vmem:[#allocation1 + $0x8] sm:$0xff pattern:$0x75316420]  ;;  %v281_v33 = vadd.f32 %v280_v49, %v279_v39  ;;  %v274_v2 = vadd.f32 %v273_v56, %v272_v52  ;;  %v5203_v49 = vstv %s3533_s12 }
 0x151   :  { %1821 = vst [vmem:[#allocation1] ss:$2 sm:$0xff] %v3481_v0  ;;  %v298_v9 = vsel %vm5321_vm0, %v288_v31, -inf  ;;  %v291_v40 = vsel %vm5321_vm0, %v287_v29, -inf  ;;  %v3168_v31 = vmov 0.0  }
 0x152   :  { %v299_v37 = vrot.slane %v298_v9, 4  ;;  %v292_v51 = vrot.slane %v291_v40, 4  ;;  %v282_v62 = vrot.slane %v281_v33, 1  ;;  %v275_v11 = vrot.slane %v274_v2, 1  ;;  %183 = vst.msk [vmem:[#allocation2] sm:$0x3] %vm182_vm9, %v3168_v31 }
 0x153   :  { %185 = vst.msk [vmem:[#allocation2 + $0x4] sm:$0x3] %vm184_vm10, %v3168_v31  ;;  %v5174_v31 = vstv %s3560_s19  ;;  %vm397_vm9 = vcmask 15360   ;;  %vm457_vm10 = vcmask 31744  }
 0x154   :  { %v300_v44 = vmax.f32 %v298_v9, %v299_v37  ;;  %v293_v54 = vmax.f32 %v291_v40, %v292_v51  ;;  %v283_v30 = vadd.f32 %v282_v62, %v281_v33  ;;  %v276_v21 = vadd.f32 %v275_v11, %v274_v2  ;;  %v3510_v29 = vpop.permute.xlu2 %994  ;;  %v3518_v37 = vpop.permute.xlu1 %454 }
 0x155   :  { %v5202_v33 = vstv %s3537_s13  ;;  %v426_v62 = vrot.slane %v3399_v14, 6 }
 0x156   :  { %v301_v53 = vrot.slane %v300_v44, 2  ;;  %v294_v1 = vrot.slane %v293_v54, 2  ;;  %v285_v13 = vmul.f32 0.25, %v283_v30  ;;  %v284_v26 = vmul.f32 0.25, %v276_v21 }
 0x157   :  { %v5136_v21 = vstv %s3555_s18  ;;  %s3757_s18 = sld [smem:[#allocation8 + $0x1a]] }
 0x158   :  { %v1822_v42 = vld.sshfl [vmem:[#allocation1] sm:$0xff pattern:$0x75316420]  ;;  %v1823_v43 = vld.sshfl [vmem:[#allocation1 + $0x8] sm:$0xff pattern:$0x75316420]  ;;  %v302_v58 = vmax.f32 %v300_v44, %v301_v53  ;;  %v295_v7 = vmax.f32 %v293_v54, %v294_v1 }
 0x159   :  { %v1826_v45 = vsel %vm5321_vm0, %v1822_v42, 0.0  ;;  %v1827_v47 = vsel %vm5321_vm0, %v1823_v43, 0.0  ;;  %1832 = vst [vmem:[#allocation1] ss:$2 sm:$0xff] %v3481_v0 }
 0x15a   :  { %v1828_v48 = vadd.f32 %v1827_v47, %v1826_v45  ;;  %v303_v5 = vrot.slane %v302_v58, 1  ;;  %v296_v17 = vrot.slane %v295_v7, 1 }
 0x15c   :  { %1829 = vadd.xlane.f32.xlu2 %v1828_v48  ;;  %v304_v12 = vmax.f32 %v302_v58, %v303_v5  ;;  %v297_v23 = vmax.f32 %v295_v7, %v296_v17  ;;  %v3512_v9 = vpop.permute.xlu2 %1113  ;;  %v3522_v20 = vpop.permute.xlu1 %544  ;;  %v5131_v17 = vstv %s3542_s14 }
 0x15d   :  { %v365_v48 = vpop.permute.xlu0 %364  ;;  %5416 = sst [smem:[#allocation30_spill]] %s3757_s18 }
 0x15e   :  { %v309_v22 = vsel %vm307_vm7, %v285_v13, %v304_v12  ;;  %v308_v36 = vsel %vm307_vm7, %v284_v26, %v297_v23  ;;  %v5158_v26 = vstv %s3569_s22 }
 0x15f   :  { %v312_v24 = vrot.slane %v309_v22, 6  ;;  %v3607_v22 = vsel %vm427_vm5, %v426_v62, %v3399_v14  ;;  %vm577_vm5 = vcmask 138240  }
 0x160   :  { %v1833_v57 = vld.sshfl [vmem:[#allocation1] sm:$0xff pattern:$0x75316420]  ;;  %v1834_v19 = vld.sshfl [vmem:[#allocation1 + $0x8] sm:$0xff pattern:$0x75316420] }
 0x161   :  { %v1837_v59 = vsel %vm5321_vm0, %v1833_v57, -inf  ;;  %v1838_v60 = vsel %vm5321_vm0, %v1834_v19, -inf  ;;  %v314_v4 = vsel %vm313_vm8, %v308_v36, %v312_v24  ;;  %v366_v19 = vrot.slane %v365_v48, 6 }
 0x162   :  { %v1839_v61 = vmax.f32 %v1837_v59, %v1838_v60  ;;  %v5189_v59 = vstv %s3547_s15  ;;  %v5138_v60 = vstv %s3549_s16  ;;  %v5156_v24 = vstv %s3567_s21 }
 0x163   :  { %v3581_v1 = vsel %vm367_vm4, %v366_v19, %v365_v48  ;;  %v396_v36 = vrot.slane %v3514_v10, 6  ;;  %v5134_v48 = vstv %s3574_s24  ;;  %vm787_vm4 = vcmask 269312  }
 0x164   :  { %1840 = vmax.xlane.f32.xlu0 %v1839_v61  ;;  %v3516_v34 = vpop.permute.xlu2 %1202  ;;  %v3531_v45 = vpop.permute.xlu1 %634  ;;  %v5137_v61 = vstv %s3553_s17 }
 0x165   :  { %v3558_v54 = vpop.permute.xlu0 %484 }
 0x16c   :  { %v3535_v47 = vpop.permute.xlu1 %664 }
 0x16d   :  { %v3593_v7 = vpop.permute.xlu0 %574 }
 0x174   :  { %315 = vrot.lane.b32.xlu2 %v314_v4, %s5141_s10  ;;  %v3551_v53 = vpop.permute.xlu1 %694  ;;  %v456_v4 = vrot.slane %v3518_v37, 6  ;;  %s5146_s10 = smov 124  }
 0x17c   :  { %v3588_v5 = vpop.permute.xlu1 %754 }
 0x1cf   :  { %v3520_v39 = vpop.xlane.xlu2 %1829 }
 0x1d7   :  { %v316_v40 = vpop.permute.xlu2 %315 }
 0x1d8   :  { %v317_v43 = vrot.slane %v316_v40, 6 }
 0x1da   :  { %v319_v44 = vsel %vm318_vm15, %v317_v43, %v316_v40  ;;  %v5132_v40 = vstv %s3562_s20 }
 0x1db   :  { %326 = vst.msk [vmem:[#allocation2] sm:$0x3f] %vm3524_vm3, %v319_v44  ;;  %v5135_v44 = vstv %s3572_s23 }
 0x1e2   :  { %v3540_v51 = vld [vmem:[#allocation2] sm:$0x3f] }
 0x1e3   :  { %v352_v52 = vmul.f32 %v5203_v49, %v3540_v51  ;;  %v350_v57 = vmul.f32 %v5202_v33, %v3540_v51  ;;  %v412_v2 = vmul.f32 %v5189_v59, %v3540_v51  ;;  %v502_v11 = vmul.f32 %v5138_v60, %v3540_v51 }
 0x1e4   :  { %v410_v12 = vmul.f32 %v5137_v61, %v3540_v51  ;;  %v472_v19 = vmul.f32 %v5174_v31, %v3540_v51  ;;  %v440_v62 = vmul.f32 %v5132_v40, %v3540_v51  ;;  %v3666_v40 = vpop.permute.xlu1 %784  ;;  %v1115_v59 = vrot.slane %v3512_v9, 6 }
 0x1e5   :  { %v2834_v56 = vrot.slane %v352_v52, 9  ;;  %v2836_v13 = vrot.slane %v412_v2, 9  ;;  %v2839_v14 = vrot.slane %v502_v11, 9  ;;  %v442_v52 = vmul.f32 %v5156_v24, %v3540_v51 }
 0x1e6   :  { %v5172_v24 = vstv %s3684_s8 }
 0x1e7   :  { %v357_v58 = vadd.f32 %v2834_v56, %v350_v57  ;;  %v417_v23 = vadd.f32 %v2836_v13, %v410_v12  ;;  %v382_v56 = vmul.f32 %v5158_v26, %v3540_v51  ;;  %v516_v57 = vrot.slane %v3401_v15, 6 }
 0x1e8   :  { %v2837_v2 = vrot.slane %v442_v52, 9  ;;  %v532_v12 = vmul.f32 %v5134_v48, %v3540_v51  ;;  %v3653_v13 = vsel %vm397_vm9, %v396_v36, %v3514_v10  ;;  %v576_v26 = vrot.slane %v3593_v7, 6 }
 0x1e9   :  { %v370_v30 = vmul.f32 %v3581_v1, %v357_v58  ;;  %v430_v43 = vmul.f32 %v3607_v22, %v417_v23  ;;  %v500_v58 = vmul.f32 %v5131_v17, %v3540_v51  ;;  %v2835_v11 = vrot.slane %v382_v56, 9 }
 0x1ea   :  { %v3657_v23 = vsel %vm457_vm10, %v456_v4, %v3518_v37  ;;  %v5148_v17 = vstv %s3579_s25  ;;  %v5154_v56 = vstv %s3586_s27  ;;  %v447_v48 = vadd.f32 %v2837_v2, %v440_v62  ;;  %s3746_s27 = sld [smem:[#allocation8 + $0x3c]]  ;;  %s5166_s25 = smov 112  }
 0x1eb   :  { %372 = vrot.lane.b32.xlu1 %v370_v30, %s5133_s0  ;;  %432 = vrot.lane.b32.xlu0 %v430_v43, %s5130_s29  ;;  %v380_v30 = vmul.f32 %v5135_v44, %v3540_v51  ;;  %s3659_s29 = sld [smem:[#allocation8 + $0xf]]  ;;  %v592_v43 = vmul.f32 %v5136_v21, %v3540_v51  ;;  %v507_v52 = vadd.f32 %v2839_v14, %v500_v58  ;;  %v5155_v37 = vstv %s3591_s28  ;;  %v3676_v44 = vpop.permute.xlu0 %814 }
 0x1ec   :  { %s3668_s0 = sld [smem:[#allocation8 + $0x48]]  ;;  %v3672_v36 = vsel %vm517_vm6, %v516_v57, %v3401_v15  ;;  %v5149_v4 = vstv %s3603_s7  ;;  %v5150_v21 = vstv %s3611_s3  ;;  %v2838_v14 = vrot.slane %v472_v19, 9  ;;  %s5168_s7 = smov 123  }
 0x1ed   :  { %v387_v10 = vadd.f32 %v2835_v11, %v380_v30  ;;  %v460_v58 = vmul.f32 %v3657_v23, %v447_v48  ;;  %v2840_v60 = vrot.slane %v532_v12, 9  ;;  %v546_v62 = vrot.slane %v3522_v20, 6 }
 0x1ee   :  { %v5151_v2 = vstv %s3617_s9  ;;  %v2842_v30 = vrot.slane %v592_v43, 9  ;;  %v520_v15 = vmul.f32 %v3672_v36, %v507_v52  ;;  %v606_v57 = vrot.slane %v3403_v16, 6  ;;  %s3737_s9 = sld [smem:[#allocation8 + $0x49]] }
 0x1ef   :  { %v400_v61 = vmul.f32 %v3653_v13, %v387_v10  ;;  %v470_v48 = vmul.f32 %v5155_v37, %v3540_v51  ;;  %462 = vrot.lane.b32.xlu2 %v460_v58, %s5146_s10  ;;  %v530_v19 = vmul.f32 %v5150_v21, %v3540_v51  ;;  %v486_v11 = vrot.slane %v3558_v54, 6  ;;  %s3702_s10 = sld [smem:[#allocation8 + $0x4b]] }
 0x1f0   :  { %v590_v12 = vmul.f32 %v5148_v17, %v3540_v51  ;;  %v772_v43 = vmul.f32 %v5151_v2, %v3540_v51  ;;  %v3712_v58 = vsel %vm547_vm11, %v546_v62, %v3522_v20  ;;  %v5170_v21 = vstv %s3622_s11  ;;  %5415 = sst [smem:[#allocation29_spill]] %s3746_s27  ;;  %s5183_s11 = smov 111  }
 0x1f1   :  { %5408 = sst [smem:[#allocation22_spill]] %s3659_s29  ;;  %v477_v52 = vadd.f32 %v2838_v14, %v470_v48  ;;  %v537_v10 = vadd.f32 %v2840_v60, %v530_v19  ;;  %v726_v2 = vrot.slane %v3414_v25, 6  ;;  %v5169_v14 = vstv %s3631_s1  ;;  %s5178_s1 = smov 95  }
 0x1f2   :  { %5409 = sst [smem:[#allocation23_spill]] %s3668_s0  ;;  %v597_v17 = vadd.f32 %v2842_v30, %v590_v12  ;;  %v3730_v20 = vsel %vm487_vm13, %v486_v11, %v3558_v54  ;;  %v5171_v60 = vstv %s3643_s30  ;;  %v5164_v62 = vstv %s3659_s29  ;;  %v3735_v30 = vpop.permute.xlu1 %1024  ;;  %s5165_s30 = smov 110  }
 0x1f3   :  { %402 = vrot.lane.b32.xlu1 %v400_v61, %s5147_s2  ;;  %522 = vrot.lane.b32.xlu0 %v520_v15, %s5152_s6  ;;  %v562_v61 = vmul.f32 %v5149_v4, %v3540_v51  ;;  %s3714_s2 = sld [smem:[#allocation8 + $0x17]]  ;;  %v712_v15 = vmul.f32 %v5154_v56, %v3540_v51  ;;  %v3721_v4 = vsel %vm607_vm12, %v606_v57, %v3403_v16  ;;  %v5167_v48 = vstv %s3668_s0  ;;  %v3741_v56 = vpop.permute.xlu0 %1083 }
 0x1f4   :  { %s3726_s6 = sld [smem:[#allocation8 + $0xa]]  ;;  %v2848_v57 = vrot.slane %v772_v43, 9  ;;  %v490_v19 = vmul.f32 %v3730_v20, %v477_v52  ;;  %v550_v12 = vmul.f32 %v3712_v58, %v537_v10  ;;  %v786_v54 = vrot.slane %v3666_v40, 6 }
 0x1f5   :  { %5411 = sst [smem:[#allocation25_spill]] %s3702_s10  ;;  %v2841_v16 = vrot.slane %v562_v61, 9  ;;  %v2846_v11 = vrot.slane %v712_v15, 9  ;;  %v610_v37 = vmul.f32 %v3721_v4, %v597_v17  ;;  %v560_v61 = vmul.f32 %v5171_v60, %v3540_v51 }
 0x1f6   :  { %5414 = sst [smem:[#allocation28_spill]] %s3737_s9  ;;  %v770_v43 = vmul.f32 %v5164_v62, %v3540_v51  ;;  %v710_v17 = vmul.f32 %v5170_v21, %v3540_v51  ;;  %v1012_v52 = vmul.f32 %v5167_v48, %v3540_v51  ;;  %v3777_v62 = vsel %vm787_vm4, %v786_v54, %v3666_v40 }
 0x1f7   :  { %552 = vrot.lane.b32.xlu2 %v550_v12, %s5166_s25  ;;  %s3763_s29 = sld [smem:[#allocation8 + $0x4e]]  ;;  %v567_v10 = vadd.f32 %v2841_v16, %v560_v61  ;;  %v3773_v12 = vsel %vm727_vm14, %v726_v2, %v3414_v25  ;;  %v5180_v61 = vstv %s3695_s26  ;;  %v3789_v25 = vsel %vm577_vm5, %v576_v26, %v3593_v7  ;;  %s5197_s26 = smov 78  }
 0x1f8   :  { %v777_v15 = vadd.f32 %v2848_v57, %v770_v43  ;;  %v717_v16 = vadd.f32 %v2846_v11, %v710_v17  ;;  %v996_v57 = vrot.slane %v3510_v29, 6  ;;  %v5185_v43 = vstv %s3702_s10  ;;  %s3791_s25 = sld [smem:[#allocation8 + $0xb]] }
 0x1f9   :  { %5412 = sst [smem:[#allocation26_spill]] %s3714_s2  ;;  %v636_v40 = vrot.slane %v3531_v45, 6  ;;  %v5179_v2 = vstv %s3714_s2  ;;  %v1026_v54 = vrot.slane %v3735_v30, 6  ;;  %v2856_v11 = vrot.slane %v1012_v52, 9  ;;  %s5181_s2 = smov 106  }
 0x1fa   :  { %5413 = sst [smem:[#allocation27_spill]] %s3726_s6  ;;  %v5187_v48 = vstv %s3726_s6  ;;  %v580_v17 = vmul.f32 %v3789_v25, %v567_v10  ;;  %v5182_v7 = vstv %s3737_s9  ;;  %v730_v60 = vmul.f32 %v3773_v12, %v717_v16  ;;  %v1055_v31 = vpop.permute.xlu1 %1054  ;;  %s5198_s6 = smov 79  }
 0x1fb   :  { %492 = vrot.lane.b32.xlu1 %v490_v19, %s5168_s7  ;;  %612 = vrot.lane.b32.xlu0 %v610_v37, %s5165_s30  ;;  %v622_v19 = vmul.f32 %v5172_v24, %v3540_v51  ;;  %s3779_s30 = sld [smem:[#allocation8 + $0x18]]  ;;  %v982_v37 = vmul.f32 %v5169_v14, %v3540_v51  ;;  %v790_v14 = vmul.f32 %v3777_v62, %v777_v15  ;;  %v5186_v24 = vstv %s3746_s27  ;;  %v3814_v15 = vpop.permute.xlu0 %1173  ;;  %s5204_s27 = smov 109  }
 0x1fc   :  { %s3797_s7 = sld [smem:[#allocation8 + $0x4c]]  ;;  %vm637_vm6 = vcmask 154624   ;;  %vm1027_vm9 = vcmask 408576   ;;  %v1010_v52 = vmul.f32 %v5179_v2, %v3540_v51  ;;  %v620_v10 = vmul.f32 %v5187_v48, %v3540_v51 }
 0x1fd   :  { %5417 = sst [smem:[#allocation31_spill]] %s3763_s29  ;;  %v2843_v21 = vrot.slane %v622_v19, 9  ;;  %v2855_v26 = vrot.slane %v982_v37, 9  ;;  %vm997_vm10 = vcmask 400384   ;;  %v980_v19 = vmul.f32 %v5180_v61, %v3540_v51 }
 0x1fe   :  { %s3804_s0 = sld [smem:[#allocation8 + $0x3d]]  ;;  %v1017_v37 = vadd.f32 %v2856_v11, %v1010_v52  ;;  %v3830_v2 = vsel %vm637_vm6, %v636_v40, %v3531_v45  ;;  %v3834_v61 = vsel %vm1027_vm9, %v1026_v54, %v3735_v30  ;;  %v5194_v11 = vstv %s3757_s18  ;;  %s5212_s18 = smov 75  }
 0x1ff   :  { %792 = vrot.lane.b32.xlu2 %v790_v14, %s5178_s1  ;;  %s3820_s1 = sld [smem:[#allocation8 + $0x1d]]  ;;  %v1042_v14 = vmul.f32 %v5182_v7, %v3540_v51  ;;  %v627_v16 = vadd.f32 %v2843_v21, %v620_v10  ;;  %v987_v7 = vadd.f32 %v2855_v26, %v980_v19  ;;  %v3842_v21 = vsel %vm997_vm10, %v996_v57, %v3510_v29 }
 0x200   :  { %v5199_v52 = vstv %s3763_s29  ;;  %v666_v45 = vrot.slane %v3535_v47, 6  ;;  %v1056_v40 = vrot.slane %v1055_v31, 6  ;;  %v5200_v54 = vstv %s3791_s25  ;;  %s3851_s10 = sld [smem:[#allocation8 + $0x4f]]  ;;  %s5213_s29 = smov 108  }
 0x201   :  { %5418 = sst [smem:[#allocation32_spill]] %s3779_s30  ;;  %v5195_v30 = vstv %s3779_s30  ;;  %v2857_v10 = vrot.slane %v1042_v14, 9  ;;  %v1030_v26 = vmul.f32 %v3834_v61, %v1017_v37  ;;  %v640_v29 = vmul.f32 %v3830_v2, %v627_v16 }
 0x202   :  { %5419 = sst [smem:[#allocation33_spill]] %s3797_s7  ;;  %v5196_v19 = vstv %s3797_s7  ;;  %vm667_vm11 = vcmask 162816   ;;  %v1040_v14 = vmul.f32 %v5195_v30, %v3540_v51  ;;  %vm1116_vm12 = vcmask 433152   ;;  %s3191_s7 = smov 69  }
 0x203   :  { %582 = vrot.lane.b32.xlu1 %v580_v17, %s5183_s11  ;;  %732 = vrot.lane.b32.xlu0 %v730_v60, %s5181_s2  ;;  %v652_v17 = vmul.f32 %v5186_v24, %v3540_v51  ;;  %v1101_v60 = vmul.f32 %v5185_v43, %v3540_v51  ;;  %s3839_s2 = sld [smem:[#allocation8 + $0x1b]]  ;;  %v1000_v24 = vmul.f32 %v3842_v21, %v987_v7  ;;  %v3885_v30 = vpop.permute.xlu0 %1262  ;;  %vm697_vm13 = vcmask 171008  }
 0x204   :  { %s3846_s11 = sld [smem:[#allocation8 + $0xc]]  ;;  %v5201_v48 = vstv %s3804_s0  ;;  %v650_v7 = vmul.f32 %v5200_v54, %v3540_v51  ;;  %v1099_v37 = vmul.f32 %v5194_v11, %v3540_v51  ;;  %v1131_v16 = vmul.f32 %v5196_v19, %v3540_v51 }
 0x205   :  { %5420 = sst [smem:[#allocation34_spill]] %s3820_s1  ;;  %v2844_v57 = vrot.slane %v652_v17, 9  ;;  %v2859_v43 = vrot.slane %v1101_v60, 9  ;;  %v1144_v17 = vpop.permute.xlu1 %1143  ;;  %v1047_v60 = vadd.f32 %v2857_v10, %v1040_v14  ;;  %v3883_v11 = vsel %vm667_vm11, %v666_v45, %v3535_v47 }
 0x206   :  { %5422 = sst [smem:[#allocation36_spill]] %s3851_s10  ;;  %v1190_v19 = vmul.f32 %v5199_v52, %v3540_v51  ;;  %v5207_v14 = vstv %s3820_s1  ;;  %v1204_v47 = vrot.slane %v3516_v34, 6  ;;  %v2860_v52 = vrot.slane %v1131_v16, 9  ;;  %s5218_s1 = smov 107  }
 0x207   :  { %s3858_s9 = sld [smem:[#allocation8 + $0x3f]]  ;;  %1032 = vrot.lane.b32.xlu2 %v1030_v26, %s5197_s26  ;;  %v657_v26 = vadd.f32 %v2844_v57, %v650_v7  ;;  %v1106_v10 = vadd.f32 %v2859_v43, %v1099_v37  ;;  %v3897_v57 = vsel %vm1116_vm12, %v1115_v59, %v3512_v9  ;;  %v5210_v54 = vstv %s3851_s10  ;;  %s5217_s10 = smov 63  }
 0x208   :  { %s3873_s30 = sld [smem:[#allocation8 + $0x41]]  ;;  %v2862_v59 = vrot.slane %v1190_v19, 9  ;;  %vm1146_vm14 = vcmask 441344   ;;  %vm1205_vm4 = vcmask 531456   ;;  %v1188_v16 = vmul.f32 %v5207_v14, %v3540_v51 }
 0x209   :  { %5421 = sst [smem:[#allocation35_spill]] %s3839_s2  ;;  %v5208_v45 = vstv %s3839_s2  ;;  %v670_v37 = vmul.f32 %v3883_v11, %v657_v26  ;;  %v1220_v26 = vmul.f32 %v5210_v54, %v3540_v51  ;;  %vm5392_vm5 = vcmask 261120  }
 0x20a   :  { %s3893_s26 = sld [smem:[#allocation8 + $0x1e]]  ;;  %v5270_v7 = vstv %s3846_s11  ;;  %v1129_v49 = vmul.f32 %v5208_v45, %v3540_v51  ;;  %v1195_v14 = vadd.f32 %v2862_v59, %v1188_v16  ;;  %v3936_v45 = vsel %vm1205_vm4, %v1204_v47, %v3516_v34 }
 0x20b   :  { %642 = vrot.lane.b32.xlu1 %v640_v29, %s5204_s27  ;;  %1002 = vrot.lane.b32.xlu0 %v1000_v24, %s5198_s6  ;;  %v682_v29 = vmul.f32 %v5201_v48, %v3540_v51  ;;  %v3888_v24 = vsel %vm318_vm15, %v1056_v40, %v1055_v31  ;;  %s3901_s6 = sld [smem:[#allocation8 + $0xe]]  ;;  %v696_v31 = vrot.slane %v3551_v53, 6  ;;  %v1145_v40 = vrot.slane %v1144_v17, 6  ;;  %s5209_s27 = smov 77   ;;  %5427 = vst [vmem:[#allocation41_spill] sm:$0xff] %v3936_v45 }
 0x20c   :  { %v1059_v43 = vmul.f32 %v3888_v24, %v1047_v60  ;;  %v1119_v48 = vmul.f32 %v3897_v57, %v1106_v10  ;;  %v680_v19 = vmul.f32 %v5270_v7, %v3540_v51  ;;  %v1136_v60 = vadd.f32 %v2860_v52, %v1129_v49  ;;  %s4002_s2 = sld [smem:[#allocation8 + $0x44]] }
 0x20d   :  { %5423 = sst [smem:[#allocation37_spill]] %s3858_s9  ;;  %v2845_v9 = vrot.slane %v682_v29, 9  ;;  %v5211_v33 = vstv %s3858_s9  ;;  %v1233_v49 = vpop.permute.xlu1 %1232  ;;  %v1831_v52 = vmul.f32 0.00390625, %v3520_v39  ;;  %v756_v34 = vrot.slane %v3588_v5, 6 }
 0x20e   :  { %5424 = sst [smem:[#allocation38_spill]] %s3873_s30  ;;  %v742_v10 = vmul.f32 %v5211_v33, %v3540_v51  ;;  %v1234_v47 = vrot.slane %v1233_v49, 6  ;;  %vm1235_vm6 = vcmask 539648   ;;  %vm847_vm9 = vcmask 285696  }
 0x20f   :  { %1061 = vrot.lane.b32.xlu2 %v1059_v43, %s5209_s27  ;;  %v687_v29 = vadd.f32 %v2845_v9, %v680_v19  ;;  %v3931_v43 = vsel %vm697_vm13, %v696_v31, %v3551_v53  ;;  %s3938_s27 = sld [smem:[#allocation8 + $0x10]]  ;;  %v1841_v9 = vpop.xlane.xlu0 %1840  ;;  %v2863_v53 = vrot.slane %v1220_v26, 9  ;;  %v3966_v26 = vsel %vm5392_vm5, %v756_v34, %v3588_v5 }
 0x210   :  { %5425 = sst [smem:[#allocation39_spill]] %s3893_s26  ;;  %v5231_v19 = vstv %s3893_s26  ;;  %v2847_v31 = vrot.slane %v742_v10, 9  ;;  %v1842_v39 = vsel %vm212_vm1, %v1831_v52, %v1841_v9  ;;  %vm817_vm1 = vcmask 277504   ;;  %s5224_s26 = smov 96  }
 0x211   :  { %5426 = sst [smem:[#allocation40_spill]] %s3901_s6  ;;  %v5264_v54 = vstv %s3901_s6  ;;  %v1218_v59 = vmul.f32 %v5231_v19, %v3540_v51  ;;  %vm877_vm10 = vcmask 293888   ;;  %vm907_vm11 = vcmask 302080  }
 0x212   :  { %v740_v16 = vmul.f32 %v5264_v54, %v3540_v51  ;;  %s3996_s6 = sld [smem:[#allocation8 + $0x12]]  ;;  %vm937_vm12 = vcmask 310272   ;;  %vm1086_vm13 = vcmask 424960   ;;  %vm5302_vm4 = vcmask 1039360  }
 0x213   :  { %672 = vrot.lane.b32.xlu1 %v670_v37, %s5213_s29  ;;  %1121 = vrot.lane.b32.xlu0 %v1119_v48, %s5212_s18  ;;  %v3933_v37 = vsel %vm1146_vm14, %v1145_v40, %v1144_v17  ;;  %v5267_v48 = vstv %s3873_s30  ;;  %v700_v17 = vmul.f32 %v3931_v43, %v687_v29  ;;  %s3946_s18 = sld [smem:[#allocation8 + $0x42]]  ;;  %v1208_v40 = vmul.f32 %v3936_v45, %v1195_v14  ;;  %s5216_s29 = smov 74  }
 0x214   :  { %v1149_v33 = vmul.f32 %v3933_v37, %v1136_v60  ;;  %v802_v38 = vmul.f32 %v5267_v48, %v3540_v51  ;;  %v1225_v14 = vadd.f32 %v2863_v53, %v1218_v59  ;;  %v747_v60 = vadd.f32 %v2847_v31, %v740_v16  ;;  %5434 = sst [smem:[#allocation48_spill]] %s4002_s2  ;;  %s5257_s30 = smov 80  }
 0x215   :  { %5428 = sst [smem:[#allocation42_spill]] %s3938_s27  ;;  %v3969_v29 = vsel %vm1235_vm6, %v1234_v47, %v1233_v49  ;;  %v5266_v10 = vstv %s3938_s27  ;;  %v816_v53 = vrot.slane %v3676_v44, 6  ;;  %v3052_v49 = vld [vmem:[%s5126_s5 + $0x14] ss:$8 sm:$0x3]  ;;  %vm1176_vm14 = vcmask 523264  }
 0x216   :  { %5430 = vst [vmem:[#allocation44_spill] sm:$0xff] %v3969_v29  ;;  %v2849_v52 = vrot.slane %v802_v38, 9  ;;  %v1238_v9 = vmul.f32 %v3969_v29, %v1225_v14  ;;  %v1316_v31 = vmul.f32 %v3052_v49, %v3428_v32  ;;  %vm1265_vm6 = vcmask 547840   ;;  %s4207_s27 = sld [smem:[#allocation8 + $0x21]] }
 0x217   :  { %1151 = vrot.lane.b32.xlu2 %v1149_v33, %s5216_s29  ;;  %v1843_v33 = vmul.f32 %v1842_v39, %v3347_v41  ;;  %s3971_s29 = sld [smem:[#allocation8 + $0x11]]  ;;  %v800_v41 = vmul.f32 %v5266_v10, %v3540_v51  ;;  %v3994_v59 = vsel %vm817_vm1, %v816_v53, %v3676_v44  ;;  %v846_v44 = vrot.slane %v3432_v35, 6 }
 0x218   :  { %5433 = sst [smem:[#allocation47_spill]] %s3996_s6  ;;  %v1321_v16 = vperm.slane %v1316_v31, %v3292_v8  ;;  %vm5301_vm1 = vcmask 1031168  }
 0x219   :  { %5429 = sst [smem:[#allocation43_spill]] %s3946_s18  ;;  %v1844_v5 = vsel %vm220_vm2, %v1843_v33, 0.0  ;;  %v807_v39 = vadd.f32 %v2849_v52, %v800_v41  ;;  %v5253_v41 = vstv %s3996_s6  ;;  %s5232_s6 = smov 92  }
 0x21a   :  { %v1845_v34 = vrot.slane %v1844_v5, 4  ;;  %s4250_s9 = sld [smem:[#allocation8 + $0x51]] }
 0x21b   :  { %702 = vrot.lane.b32.xlu1 %v700_v17, %s5218_s1  ;;  %1210 = vrot.lane.b32.xlu0 %v1208_v40, %s5217_s10  ;;  %v760_v17 = vmul.f32 %v3966_v26, %v747_v60  ;;  %v5263_v40 = vstv %s3946_s18  ;;  %s3977_s10 = sld [smem:[#allocation8 + $0x43]]  ;;  %s5223_s1 = smov 62   ;;  %v820_v33 = vmul.f32 %v3994_v59, %v807_v39  ;;  %v860_v39 = vmul.f32 %v5253_v41, %v3540_v51 }
 0x21c   :  { %v832_v47 = vmul.f32 %v5263_v40, %v3540_v51  ;;  %v1846_v14 = vadd.f32 %v1845_v34, %v1844_v5  ;;  %v4013_v5 = vsel %vm847_vm9, %v846_v44, %v3432_v35  ;;  %v876_v35 = vrot.slane %v3446_v46, 6  ;;  %s5445_s18 = smov 64   ;;  %5448 = sst [smem:[#allocation61_spill]] %s4207_s27 }
 0x21d   :  { %5431 = sst [smem:[#allocation45_spill]] %s3971_s29  ;;  %v5252_v38 = vstv %s3971_s29  ;;  %vm5299_vm9 = vcmask 1022976  }
 0x21e   :  { %v2850_v60 = vrot.slane %v832_v47, 9  ;;  %v830_v52 = vmul.f32 %v5252_v38, %v3540_v51  ;;  %v5254_v47 = vstv %s4002_s2  ;;  %s4034_s29 = sld [smem:[#allocation8 + $0x14]] }
 0x21f   :  { %1240 = vrot.lane.b32.xlu2 %v1238_v9, %s5223_s1  ;;  %s5226_s1 = smov 94   ;;  %v1847_v9 = vrot.slane %v1846_v14, 2  ;;  %s4074_s2 = sld [smem:[#allocation8 + $0x4d]] }
 0x220   :  { %v837_v53 = vadd.f32 %v2850_v60, %v830_v52 }
 0x221   :  { %5432 = sst [smem:[#allocation46_spill]] %s3977_s10  ;;  %v5262_v32 = vstv %s3977_s10  ;;  %v1848_v34 = vadd.f32 %v1847_v9, %v1846_v14 }
 0x222   :  { %v850_v31 = vmul.f32 %v4013_v5, %v837_v53  ;;  %s4090_s10 = sld [smem:[#allocation8 + $0x1c]] }
 0x223   :  { %762 = vrot.lane.b32.xlu1 %v760_v17, %s5224_s26  ;;  %v862_v17 = vmul.f32 %v5262_v32, %v3540_v51  ;;  %s4016_s26 = sld [smem:[#allocation8 + $0x13]]  ;;  %v1849_v14 = vrot.slane %v1848_v34, 1 }
 0x224   :  { %5437 = sst [smem:[#allocation51_spill]] %s4034_s29 }
 0x225   :  { %v2851_v49 = vrot.slane %v862_v17, 9  ;;  %v1850_v17 = vadd.f32 %v1849_v14, %v1848_v34  ;;  %5441 = sst [smem:[#allocation55_spill]] %s4074_s2 }
 0x227   :  { %1322 = vrot.lane.b32.xlu2 %v1321_v16, %s3191_s7  ;;  %s4020_s7 = sld [smem:[#allocation8 + $0x45]]  ;;  %v892_v16 = vmul.f32 %v5254_v47, %v3540_v51  ;;  %v867_v60 = vadd.f32 %v2851_v49, %v860_v39  ;;  %v1851_v34 = vmax.f32 %v1850_v17, 0.0 }
 0x228   :  { %v5265_v47 = vstv %s4090_s10 }
 0x229   :  { %5435 = sst [smem:[#allocation49_spill]] %s4016_s26  ;;  %v5251_v52 = vstv %s4016_s26  ;;  %v2852_v44 = vrot.slane %v892_v16, 9  ;;  %v5248_v16 = vstv %s4034_s29 }
 0x22a   :  { %s4052_s26 = sld [smem:[#allocation8 + $0x15]] }
 0x22b   :  { %822 = vrot.lane.b32.xlu1 %v820_v33, %s5226_s1  ;;  %s5228_s1 = smov 93   ;;  %v4031_v33 = vsel %vm877_vm10, %v876_v35, %v3446_v46  ;;  %v906_v46 = vrot.slane %v3504_v27, 6  ;;  %s4072_s29 = sld [smem:[#allocation8 + $0x19]]  ;;  %vm5288_vm10 = vcmask 1014784  }
 0x22c   :  { %v880_v9 = vmul.f32 %v4031_v33, %v867_v60 }
 0x22d   :  { %5436 = sst [smem:[#allocation50_spill]] %s4020_s7  ;;  %v5250_v53 = vstv %s4020_s7  ;;  %v4049_v35 = vsel %vm907_vm11, %v906_v46, %v3504_v27  ;;  %s5236_s7 = smov 91   ;;  %v936_v27 = vrot.slane %v3506_v3, 6  ;;  %vm5272_vm11 = vcmask 1006592  }
 0x22e   :  { %v922_v49 = vmul.f32 %v5250_v53, %v3540_v51 }
 0x22f   :  { %v4069_v46 = vsel %vm937_vm12, %v936_v27, %v3506_v3  ;;  %v966_v3 = vrot.slane %v3508_v28, 6  ;;  %vm5282_vm12 = vcmask 998400  }
 0x230   :  { %5439 = sst [smem:[#allocation53_spill]] %s4052_s26  ;;  %v2853_v60 = vrot.slane %v922_v49, 9  ;;  %v5246_v49 = vstv %s4052_s26 }
 0x231   :  { %s4133_s26 = sld [smem:[#allocation8 + $0x1f]] }
 0x233   :  { %852 = vrot.lane.b32.xlu1 %v850_v31, %s5228_s1  ;;  %s4038_s1 = sld [smem:[#allocation8 + $0x46]]  ;;  %v890_v31 = vmul.f32 %v5251_v52, %v3540_v51 }
 0x235   :  { %v897_v39 = vadd.f32 %v2852_v44, %v890_v31  ;;  %v920_v44 = vmul.f32 %v5248_v16, %v3540_v51 }
 0x237   :  { %v910_v14 = vmul.f32 %v4049_v35, %v897_v39  ;;  %v927_v31 = vadd.f32 %v2853_v60, %v920_v44  ;;  %v950_v60 = vmul.f32 %v5246_v49, %v3540_v51 }
 0x239   :  { %5438 = sst [smem:[#allocation52_spill]] %s4038_s1  ;;  %v5249_v19 = vstv %s4038_s1  ;;  %s5239_s1 = smov 90  }
 0x23a   :  { %v952_v17 = vmul.f32 %v5249_v19, %v3540_v51 }
 0x23b   :  { %882 = vrot.lane.b32.xlu1 %v880_v9, %s5232_s6  ;;  %v1852_v9 = vmul.f32 %v1851_v34, %v3361_v55  ;;  %s4057_s6 = sld [smem:[#allocation8 + $0x4a]]  ;;  %v940_v34 = vmul.f32 %v4069_v46, %v927_v31  ;;  %v5255_v31 = vstv %s4072_s29 }
 0x23c   :  { %v2854_v39 = vrot.slane %v952_v17, 9  ;;  %v1069_v49 = vmul.f32 %v5255_v31, %v3540_v51 }
 0x23d   :  { %v1853_v55 = vsel %vm220_vm2, %v1852_v9, 0.0  ;;  %vm5334_vm2 = vcmask 392192  }
 0x23e   :  { %v957_v44 = vadd.f32 %v2854_v39, %v950_v60  ;;  %v4094_v17 = vsel %vm5334_vm2, %v966_v3, %v3508_v28  ;;  %v5256_v39 = vstv %s4074_s2  ;;  %v4107_v60 = vld [vmem:[%s5126_s5 + $0x13] ss:$8 sm:$0x3]  ;;  %v4112_v28 = vld [vmem:[%s5126_s5 + $0x4] ss:$8 sm:$0x3] }
 0x23f   :  { %v1286_v3 = vmul.f32 %v4112_v28, %v4107_v60  ;;  %v1161_v16 = vmul.f32 %v5256_v39, %v3540_v51  ;;  %s5279_s2 = smov 76  }
 0x241   :  { %5440 = sst [smem:[#allocation54_spill]] %s4057_s6  ;;  %v1291_v41 = vperm.slane %v1286_v3, %v3292_v8  ;;  %v2861_v31 = vrot.slane %v1161_v16, 9  ;;  %v1175_v3 = vrot.slane %v3814_v15, 6 }
 0x243   :  { %912 = vrot.lane.b32.xlu1 %v910_v14, %s5236_s7  ;;  %v5240_v14 = vstv %s4057_s6  ;;  %s4078_s7 = sld [smem:[#allocation8 + $0x31]] }
 0x244   :  { %v1071_v9 = vmul.f32 %v5240_v14, %v3540_v51  ;;  %v1085_v14 = vrot.slane %v3741_v56, 6  ;;  %s4102_s6 = sld [smem:[#allocation8 + $0x50]] }
 0x245   :  { %1854 = vadd.xlane.f32.xlu0 %v1853_v55 }
 0x246   :  { %v2858_v55 = vrot.slane %v1071_v9, 9  ;;  %v329_v9 = vld [vmem:[#allocation2] sm:$0xf]  ;;  %v4129_v38 = vsel %vm1086_vm13, %v1085_v14, %v3741_v56  ;;  %v4143_v56 = vld [vmem:[%s5126_s5 + $0x7] ss:$8 sm:$0x3] }
 0x247   :  { %vm5273_vm13 = vcmask 916480  }
 0x248   :  { %v1076_v19 = vadd.f32 %v2858_v55, %v1069_v49  ;;  %v3055_v55 = vld [vmem:[%s5126_s5] ss:$8 sm:$0x3] }
 0x249   :  { %5442 = sst [smem:[#allocation56_spill]] %s4078_s7  ;;  %v4088_v27 = vpop.permute.xlu2 %462  ;;  %v339_v14 = vmul.f32 %v4143_v56, %v3055_v55 }
 0x24a   :  { %v1089_v39 = vmul.f32 %v4129_v38, %v1076_v19  ;;  %v1159_v19 = vmul.f32 %v5265_v47, %v3540_v51  ;;  %v4164_v47 = vsel %vm1176_vm14, %v1175_v3, %v3814_v15 }
 0x24b   :  { %942 = vrot.lane.b32.xlu1 %v940_v34, %s5239_s1  ;;  %s4097_s1 = sld [smem:[#allocation8]]  ;;  %v970_v34 = vmul.f32 %v4094_v17, %v957_v44  ;;  %v5259_v44 = vstv %s4078_s7  ;;  %s3198_s7 = smov 68  }
 0x24c   :  { %v333_v52 = vmul.f32 %v5259_v44, %v329_v9  ;;  %v5269_v44 = vstv %s4102_s6  ;;  %v1166_v55 = vadd.f32 %v2861_v31, %v1159_v19  ;;  %v1264_v31 = vrot.slane %v3885_v30, 6 }
 0x24d   :  { %v1250_v32 = vmul.f32 %v5269_v44, %v3540_v51 }
 0x24e   :  { %v2833_v49 = vrot.slane %v333_v52, 9 }
 0x251   :  { %5443 = sst [smem:[#allocation57_spill]] %s4097_s1  ;;  %v4124_v53 = vpop.permute.xlu2 %552 }
 0x253   :  { %972 = vrot.lane.b32.xlu1 %v970_v34, %s5257_s30  ;;  %v5268_v34 = vstv %s4097_s1  ;;  %s5278_s30 = smov 61   ;;  %s3203_s1 = smov 70  }
 0x254   :  { %v331_v52 = vmul.f32 %v5268_v34, %v329_v9  ;;  %v2864_v9 = vrot.slane %v1250_v32, 9  ;;  %v1179_v34 = vmul.f32 %v4164_v47, %v1166_v55 }
 0x256   :  { %v338_v54 = vadd.f32 %v2833_v49, %v331_v52  ;;  %v5271_v49 = vstv %s5125_s4  ;;  %v4185_v52 = vsel %vm1265_vm6, %v1264_v31, %v3885_v30  ;;  %vm5275_vm6 = vcmask 908288   ;;  %s5313_s4 = smov 60  }
 0x257   :  { %5446 = vst [vmem:[#allocation59_spill] sm:$0xff] %v4185_v52 }
 0x259   :  { %1292 = vrot.lane.b32.xlu0 %v1291_v41, %s3198_s7  ;;  %v4157_v40 = vpop.permute.xlu2 %792  ;;  %v4160_v41 = vperm.slane %v339_v14, %v3292_v8  ;;  %s4201_s7 = sld [smem:[#allocation8 + $0x52]] }
 0x25b   :  { %1091 = vrot.lane.b32.xlu1 %v1089_v39, %s5279_s2  ;;  %5444 = vst [vmem:[#allocation58_spill] sm:$0xff] %v4160_v41  ;;  %v5276_v39 = vstv %s4133_s26  ;;  %v346_v44 = vmul.f32 %v4160_v41, %v338_v54  ;;  %s5291_s2 = smov 59  }
 0x25c   :  { %v1248_v15 = vmul.f32 %v5276_v39, %v3540_v51 }
 0x25d   :  { %v373_v16 = vpop.permute.xlu1 %372  ;;  %v433_v10 = vpop.permute.xlu0 %432  ;;  %v347_v54 = vadd.f32 %v346_v44, %v5271_v49 }
 0x25e   :  { %v374_v48 = vrot.slane %v373_v16, 2  ;;  %v1255_v32 = vadd.f32 %v2864_v9, %v1248_v15  ;;  %v434_v55 = vrot.slane %v433_v10, 2 }
 0x25f   :  { %5447 = sst [smem:[#allocation60_spill]] %s4201_s7 }
 0x260   :  { %v376_v14 = vsel %vm5302_vm4, %v373_v16, %v374_v48  ;;  %v1268_v16 = vmul.f32 %v4185_v52, %v1255_v32  ;;  %v436_v44 = vsel %vm5299_vm9, %v433_v10, %v434_v55  ;;  %v554_v32 = vrot.slane %v4124_v53, 2 }
 0x261   :  { %v4178_v3 = vpop.permute.xlu2 %1032  ;;  %v378_v51 = vadd.f32 %v376_v14, %v347_v54  ;;  %vm5312_vm9 = vcmask 613376   ;;  %vm1094_vm4 = vcmask 621568  }
 0x263   :  { %1181 = vrot.lane.b32.xlu1 %v1179_v34, %s5445_s18  ;;  %v464_v34 = vrot.slane %v4088_v27, 2  ;;  %s5320_s18 = smov 58  }
 0x265   :  { %v403_v19 = vpop.permute.xlu1 %402  ;;  %v523_v9 = vpop.permute.xlu0 %522  ;;  %v466_v30 = vsel %vm5288_vm10, %v4088_v27, %v464_v34  ;;  %v556_v27 = vsel %vm5273_vm13, %v4124_v53, %v554_v32  ;;  %vm5280_vm13 = vcmask 891904   ;;  %vm5293_vm10 = vcmask 752640  }
 0x266   :  { %v404_v7 = vrot.slane %v403_v19, 2 }
 0x268   :  { %v406_v48 = vsel %vm5301_vm1, %v403_v19, %v404_v7  ;;  %v524_v7 = vrot.slane %v523_v9, 2  ;;  %vm1295_vm1 = vcmask 556032  }
 0x269   :  { %v408_v15 = vadd.f32 %v406_v48, %v378_v51  ;;  %v4194_v31 = vpop.permute.xlu2 %1061 }
 0x26a   :  { %v526_v55 = vsel %vm5282_vm12, %v523_v9, %v524_v7  ;;  %v5284_v7 = vstv %s4201_s7  ;;  %vm5289_vm12 = vcmask 777216   ;;  %s4371_s7 = sld [smem:[#allocation8 + $0x25]] }
 0x26b   :  { %v438_v49 = vadd.f32 %v436_v44, %v408_v15  ;;  %1270 = vrot.lane.b32.xlu1 %v1268_v16, %s5278_s30  ;;  %s5450_s30 = smov 80  }
 0x26d   :  { %v468_v14 = vadd.f32 %v466_v30, %v438_v49  ;;  %v493_v54 = vpop.permute.xlu1 %492  ;;  %v613_v48 = vpop.permute.xlu0 %612 }
 0x26e   :  { %v494_v19 = vrot.slane %v493_v54, 2  ;;  %v614_v44 = vrot.slane %v613_v48, 2 }
 0x270   :  { %v496_v51 = vsel %vm5272_vm11, %v493_v54, %v494_v19  ;;  %vm5274_vm11 = vcmask 900096   ;;  %5460 = sst [smem:[#allocation70_spill]] %s4371_s7 }
 0x271   :  { %v498_v10 = vadd.f32 %v496_v51, %v468_v14  ;;  %v4203_v49 = vpop.permute.xlu2 %1151  ;;  %v616_v54 = vsel %vm5274_vm11, %v613_v48, %v614_v44  ;;  %v5283_v48 = vstv %s4207_s27  ;;  %vm1325_vm11 = vcmask 564224   ;;  %s4309_s27 = sld [smem:[#allocation8 + $0x54]] }
 0x272   :  { %v1153_v29 = vrot.slane %v4203_v49, 2 }
 0x273   :  { %v528_v16 = vadd.f32 %v526_v55, %v498_v10  ;;  %v4212_v10 = vld [vmem:[#allocation2] sm:$0x3f] }
 0x274   :  { %v1310_v55 = vmul.f32 %v4212_v10, %v5284_v7 }
 0x275   :  { %v558_v34 = vadd.f32 %v556_v27, %v528_v16  ;;  %v583_v15 = vpop.permute.xlu1 %582 }
 0x276   :  { %v584_v30 = vrot.slane %v583_v15, 2 }
 0x277   :  { %5454 = sst [smem:[#allocation65_spill]] %s4309_s27 }
 0x278   :  { %v586_v14 = vsel %vm5275_vm6, %v583_v15, %v584_v30  ;;  %v1308_v15 = vmul.f32 %v4212_v10, %v5283_v48  ;;  %vm5281_vm6 = vcmask 883712  }
 0x279   :  { %v588_v9 = vadd.f32 %v586_v14, %v558_v34  ;;  %v4210_v19 = vpop.permute.xlu2 %1240  ;;  %v2866_v34 = vrot.slane %v1310_v55, 9  ;;  %v733_v55 = vpop.permute.xlu0 %732 }
 0x27b   :  { %v618_v53 = vadd.f32 %v616_v54, %v588_v9  ;;  %v1315_v54 = vadd.f32 %v2866_v34, %v1308_v15  ;;  %v734_v15 = vrot.slane %v733_v55, 2 }
 0x27d   :  { %v643_v32 = vpop.permute.xlu1 %642 }
 0x27e   :  { %v644_v51 = vrot.slane %v643_v32, 2 }
 0x280   :  { %v646_v16 = vsel %vm5280_vm13, %v643_v32, %v644_v51  ;;  %vm5286_vm13 = vcmask 875520  }
 0x281   :  { %v648_v27 = vadd.f32 %v646_v16, %v618_v53  ;;  %v1323_v44 = vpop.permute.xlu2 %1322  ;;  %v4228_v53 = vld [vmem:[%s5126_s5 + $0x5] ss:$8 sm:$0x3] }
 0x282   :  { %v1324_v14 = vrot.slane %v1323_v44, 6  ;;  %v1376_v16 = vmul.f32 %v4143_v56, %v4228_v53 }
 0x284   :  { %v4222_v39 = vsel %vm1325_vm11, %v1324_v14, %v1323_v44  ;;  %vm5287_vm11 = vcmask 867328  }
 0x285   :  { %v673_v30 = vpop.permute.xlu1 %672  ;;  %5449 = vst [vmem:[#allocation62_spill] sm:$0xff] %v4222_v39  ;;  %v1328_v32 = vmul.f32 %v4222_v39, %v1315_v54  ;;  %v736_v54 = vsel %vm5287_vm11, %v733_v55, %v734_v15  ;;  %vm5290_vm11 = vcmask 760832  }
 0x286   :  { %v674_v9 = vrot.slane %v673_v30, 2 }
 0x287   :  { %1330 = vrot.lane.b32.xlu0 %v1328_v32, %s5291_s2  ;;  %v794_v32 = vrot.slane %v4157_v40, 2  ;;  %s4252_s2 = sld [smem:[#allocation8 + $0x20]] }
 0x288   :  { %v676_v50 = vsel %vm5281_vm6, %v673_v30, %v674_v9  ;;  %v1381_v30 = vperm.slane %v1376_v16, %v3292_v8  ;;  %vm765_vm6 = vcmask 785408  }
 0x289   :  { %v678_v51 = vadd.f32 %v676_v50, %v648_v27  ;;  %v796_v16 = vsel %vm5289_vm12, %v4157_v40, %v794_v32  ;;  %vm5292_vm12 = vcmask 744448  }
 0x28d   :  { %v703_v34 = vpop.permute.xlu1 %702  ;;  %5451 = sst [smem:[#allocation63_spill]] %s4252_s2 }
 0x28e   :  { %v704_v44 = vrot.slane %v703_v34, 2 }
 0x28f   :  { %1382 = vrot.lane.b32.xlu0 %v1381_v30, %s5450_s30 }
 0x290   :  { %v706_v14 = vsel %vm5286_vm13, %v703_v34, %v704_v44  ;;  %v1003_v34 = vpop.permute.xlu0 %1002  ;;  %vm5295_vm13 = vcmask 769024  }
 0x291   :  { %v708_v9 = vadd.f32 %v706_v14, %v678_v51 }
 0x293   :  { %v738_v50 = vadd.f32 %v736_v54, %v708_v9 }
 0x295   :  { %v763_v27 = vpop.permute.xlu1 %762 }
 0x296   :  { %v764_v56 = vrot.slane %v763_v27, 2 }
 0x298   :  { %v766_v48 = vsel %vm765_vm6, %v763_v27, %v764_v56  ;;  %v4243_v9 = vpop.permute.xlu0 %1121 }
 0x299   :  { %v768_v7 = vadd.f32 %v766_v48, %v738_v50 }
 0x29b   :  { %v798_v18 = vadd.f32 %v796_v16, %v768_v7 }
 0x29d   :  { %v823_v51 = vpop.permute.xlu1 %822 }
 0x29e   :  { %v824_v55 = vrot.slane %v823_v51, 2 }
 0x2a0   :  { %v826_v15 = vsel %vm5295_vm13, %v823_v51, %v824_v55  ;;  %v4247_v7 = vpop.permute.xlu0 %1210  ;;  %vm5307_vm13 = vcmask 629760  }
 0x2a1   :  { %v828_v44 = vadd.f32 %v826_v15, %v798_v18 }
 0x2a5   :  { %v853_v30 = vpop.permute.xlu1 %852 }
 0x2a6   :  { %v854_v14 = vrot.slane %v853_v30, 2 }
 0x2a8   :  { %v856_v54 = vsel %vm5290_vm11, %v853_v30, %v854_v14  ;;  %vm5294_vm11 = vcmask 736256  }
 0x2a9   :  { %v858_v27 = vadd.f32 %v856_v54, %v828_v44  ;;  %v5296_v54 = vstv %s4250_s9 }
 0x2ad   :  { %v883_v48 = vpop.permute.xlu1 %882 }
 0x2ae   :  { %v884_v50 = vrot.slane %v883_v48, 2 }
 0x2b0   :  { %v886_v40 = vsel %vm5293_vm10, %v883_v48, %v884_v50  ;;  %vm5308_vm10 = vcmask 646144  }
 0x2b1   :  { %v888_v32 = vadd.f32 %v886_v40, %v858_v27  ;;  %v1280_v40 = vmul.f32 %v4212_v10, %v5296_v54 }
 0x2b5   :  { %v913_v56 = vpop.permute.xlu1 %912 }
 0x2b6   :  { %v914_v16 = vrot.slane %v913_v56, 2 }
 0x2b8   :  { %v916_v18 = vsel %vm5292_vm12, %v913_v56, %v914_v16  ;;  %v1855_v55 = vpop.xlane.xlu0 %1854  ;;  %vm975_vm12 = vcmask 654336   ;;  %v1004_v56 = vrot.slane %v1003_v34, 2 }
 0x2b9   :  { %v918_v51 = vadd.f32 %v916_v18, %v888_v32  ;;  %v2883_v15 = vmul.f32 -1.442695, %v1855_v55  ;;  %v5303_v18 = vstv %s4252_s2  ;;  %v2865_v55 = vrot.slane %v1280_v40, 9  ;;  %s4341_s2 = sld [smem:[#allocation8 + $0x53]] }
 0x2bb   :  { %3040 = vpow2.f32 %v2883_v15  ;;  %v1034_v15 = vrot.slane %v4178_v3, 2 }
 0x2bd   :  { %v943_v44 = vpop.permute.xlu1 %942 }
 0x2be   :  { %v944_v30 = vrot.slane %v943_v44, 2 }
 0x2bf   :  { %5457 = sst [smem:[#allocation67_spill]] %s4341_s2 }
 0x2c0   :  { %v946_v14 = vsel %vm5294_vm11, %v943_v44, %v944_v30  ;;  %vm5305_vm11 = vcmask 637952  }
 0x2c1   :  { %v948_v27 = vadd.f32 %v946_v14, %v918_v51  ;;  %v3041_v48 = vpop.eup %3040  ;;  %v1063_v51 = vrot.slane %v4194_v31, 2  ;;  %v1278_v14 = vmul.f32 %v4212_v10, %v5303_v18  ;;  %v1036_v40 = vsel %vm5305_vm11, %v4178_v3, %v1034_v15 }
 0x2c2   :  { %v1859_v50 = vadd.f32 1.0, %v3041_v48  ;;  %v1006_v48 = vsel %vm5308_vm10, %v1003_v34, %v1004_v56  ;;  %v1123_v34 = vrot.slane %v4243_v9, 2 }
 0x2c3   :  { %v1285_v39 = vadd.f32 %v2865_v55, %v1278_v14 }
 0x2c4   :  { %3042 = vrcp.f32 %v1859_v50  ;;  %v1871_v14 = vand.u32 2147483648, %v1859_v50  ;;  %vm1865_vm10 = vweird.f32 %v1859_v50 }
 0x2c5   :  { %v973_v32 = vpop.permute.xlu1 %972 }
 0x2c6   :  { %v974_v16 = vrot.slane %v973_v32, 2 }
 0x2c8   :  { %v976_v44 = vsel %vm975_vm12, %v973_v32, %v974_v16  ;;  %v1065_v16 = vsel %vm5307_vm13, %v4194_v31, %v1063_v51  ;;  %vm1154_vm13 = vcmask 605184   ;;  %v1125_v51 = vsel %vm5312_vm9, %v4243_v9, %v1123_v34 }
 0x2c9   :  { %v978_v30 = vadd.f32 %v976_v44, %v948_v27  ;;  %v5452_v34 = vunpack.c.0.s8 %v3462_v63 }
 0x2ca   :  { %v3043_v54 = vpop.eup %3042 }
 0x2cb   :  { %v1008_v41 = vadd.f32 %v1006_v48, %v978_v30  ;;  %v1861_v52 = vmul.f32 %v3043_v54, %v1859_v50  ;;  %v1293_v32 = vpop.permute.xlu0 %1292  ;;  %v1869_v30 = vand.u32 2147483647, %v1859_v50  ;;  %vm1866_vm11 = vweird.f32 %v3043_v54 }
 0x2cc   :  { %v1294_v27 = vrot.slane %v1293_v32, 6 }
 0x2cd   :  { %v1038_v44 = vadd.f32 %v1036_v40, %v1008_v41  ;;  %v1092_v18 = vpop.permute.xlu1 %1091  ;;  %v1862_v56 = vsub.f32 1.0, %v1861_v52  ;;  %v4283_v52 = vld [vmem:[%s5126_s5 + $0x15] ss:$8 sm:$0x3]  ;;  %vm1870_vm9 = vcmp.eq.f32.partialorder %v1869_v30, 8.507059e+37 }
 0x2ce   :  { %v1093_v55 = vrot.slane %v1092_v18, 2  ;;  %v4273_v3 = vsel %vm1295_vm1, %v1294_v27, %v1293_v32  ;;  %vm1867_vm1 = vmor %vm1865_vm10, %vm1866_vm11  ;;  %vm1213_vm10 = vcmask 515072   ;;  %vm1333_vm11 = vcmask 482304  }
 0x2cf   :  { %v1067_v15 = vadd.f32 %v1065_v16, %v1038_v44  ;;  %v1863_v48 = vmul.f32 %v3043_v54, %v1862_v56  ;;  %v1298_v45 = vmul.f32 %v4273_v3, %v1285_v39  ;;  %v1346_v39 = vmul.f32 %v4283_v52, %v4112_v28 }
 0x2d0   :  { %v1095_v31 = vsel %vm1094_vm4, %v1092_v18, %v1093_v55  ;;  %v1872_v18 = vor.u32 1.1754944e-38, %v1871_v14  ;;  %v1155_v16 = vsel %vm1154_vm13, %v4203_v49, %v1153_v29  ;;  %v1242_v14 = vrot.slane %v4210_v19, 2 }
 0x2d1   :  { %v1097_v41 = vadd.f32 %v1095_v31, %v1067_v15  ;;  %v1864_v40 = vadd.f32 %v3043_v54, %v1863_v48  ;;  %1300 = vrot.lane.b32.xlu1 %v1298_v45, %s5313_s4  ;;  %v1212_v45 = vrot.slane %v4247_v7, 2  ;;  %v1351_v28 = vperm.slane %v1346_v39, %v3292_v8  ;;  %s5456_s4 = smov 48  }
 0x2d3   :  { %v1127_v32 = vadd.f32 %v1125_v51, %v1097_v41  ;;  %v1868_v9 = vsel %vm1867_vm1, %v3043_v54, %v1864_v40  ;;  %v1214_v30 = vsel %vm1213_vm10, %v4247_v7, %v1212_v45  ;;  %vm1355_vm1 = vcmask 572416  }
 0x2d4   :  { %v1873_v50 = vsel %vm1870_vm9, %v1872_v18, %v1868_v9  ;;  %vm1243_vm9 = vcmask 506880  }
 0x2d5   :  { %v1157_v27 = vadd.f32 %v1155_v16, %v1127_v32  ;;  %v1182_v44 = vpop.permute.xlu1 %1181  ;;  %v4292_v56 = vperm.slane %v1873_v50, %v5452_v34  ;;  %v1244_v15 = vsel %vm1243_vm9, %v4210_v19, %v1242_v14 }
 0x2d6   :  { %v1183_v55 = vrot.slane %v1182_v44, 2 }
 0x2d7   :  { %5453 = vst [vmem:[#allocation64_spill] sm:$0xff] %v4292_v56  ;;  %v1881_v29 = vmul.f32 %v4292_v56, %v3481_v0 }
 0x2d8   :  { %v1184_v49 = vsel %vm1176_vm14, %v1182_v44, %v1183_v55 }
 0x2d9   :  { %v1186_v54 = vadd.f32 %v1184_v49, %v1157_v27  ;;  %1883 = vst [vmem:[#allocation1] ss:$2 sm:$0xff] %v1881_v29  ;;  %1352 = vrot.lane.b32.xlu1 %v1351_v28, %s3203_s1  ;;  %s4311_s1 = sld [smem:[#allocation8 + $0x23]] }
 0x2db   :  { %v1216_v63 = vadd.f32 %v1214_v30, %v1186_v54 }
 0x2dd   :  { %v4303_v48 = vadd.f32 %v1244_v15, %v1216_v63 }
 0x2df   :  { %5455 = sst [smem:[#allocation66_spill]] %s4311_s1 }
 0x2e0   :  { %v1884_v31 = vld.sshfl [vmem:[#allocation1] sm:$0xff pattern:$0x75316420]  ;;  %v1885_v41 = vld.sshfl [vmem:[#allocation1 + $0x8] sm:$0xff pattern:$0x75316420] }
 0x2e1   :  { %v1888_v0 = vsel %vm5321_vm0, %v1884_v31, 0.0  ;;  %v1895_v51 = vsel %vm5321_vm0, %v1885_v41, 0.0  ;;  %1904 = vst [vmem:[#allocation1] ss:$2 sm:$0xff] %v1881_v29  ;;  %v5340_v41 = vstv %s4309_s27  ;;  %s3208_s27 = smov 84  }
 0x2e2   :  { %v1889_v40 = vrot.slane %v1888_v0, 4  ;;  %v1896_v39 = vrot.slane %v1895_v51, 4 }
 0x2e4   :  { %v1890_v18 = vadd.f32 %v1889_v40, %v1888_v0  ;;  %v1897_v7 = vadd.f32 %v1896_v39, %v1895_v51 }
 0x2e6   :  { %v1891_v32 = vrot.slane %v1890_v18, 2  ;;  %v1898_v16 = vrot.slane %v1897_v7, 2 }
 0x2e8   :  { %v1899_v9 = vadd.f32 %v1898_v16, %v1897_v7  ;;  %v1905_v50 = vld.sshfl [vmem:[#allocation1] sm:$0xff pattern:$0x75316420]  ;;  %v1906_v27 = vld.sshfl [vmem:[#allocation1 + $0x8] sm:$0xff pattern:$0x75316420]  ;;  %v1892_v45 = vadd.f32 %v1891_v32, %v1890_v18  ;;  %v1370_v16 = vmul.f32 %v4212_v10, %v5340_v41 }
 0x2e9   :  { %v1909_v19 = vsel %vm5321_vm0, %v1905_v50, -inf  ;;  %v1916_v44 = vsel %vm5321_vm0, %v1906_v27, -inf  ;;  %vm1413_vm0 = vcmask 662528  }
 0x2ea   :  { %v1910_v34 = vrot.slane %v1909_v19, 4  ;;  %v1917_v55 = vrot.slane %v1916_v44, 4  ;;  %v1900_v28 = vrot.slane %v1899_v9, 1  ;;  %v1893_v49 = vrot.slane %v1892_v45, 1 }
 0x2ec   :  { %v1911_v14 = vmax.f32 %v1909_v19, %v1910_v34  ;;  %v1918_v29 = vmax.f32 %v1916_v44, %v1917_v55  ;;  %v1901_v63 = vadd.f32 %v1900_v28, %v1899_v9  ;;  %v1894_v0 = vadd.f32 %v1893_v49, %v1892_v45 }
 0x2ed   :  { %v5323_v9 = vstv %s4311_s1  ;;  %v2868_v34 = vrot.slane %v1370_v16, 9  ;;  %s3204_s1 = smov 82  }
 0x2ee   :  { %v1912_v54 = vrot.slane %v1911_v14, 2  ;;  %v1919_v30 = vrot.slane %v1918_v29, 2  ;;  %v1903_v18 = vmul.f32 0.25, %v1901_v63  ;;  %v1902_v50 = vmul.f32 0.25, %v1894_v0 }
 0x2ef   :  { %v1368_v55 = vmul.f32 %v4212_v10, %v5323_v9 }
 0x2f0   :  { %v1913_v15 = vmax.f32 %v1911_v14, %v1912_v54  ;;  %v1920_v31 = vmax.f32 %v1918_v29, %v1919_v30  ;;  %v1434_v30 = vmul.f32 %v4336_v6, %v4228_v53 }
 0x2f1   :  { %v1375_v29 = vadd.f32 %v2868_v34, %v1368_v55 }
 0x2f2   :  { %v1914_v51 = vrot.slane %v1913_v15, 1  ;;  %v1921_v40 = vrot.slane %v1920_v31, 1  ;;  %v1439_v63 = vperm.slane %v1434_v30, %v3292_v8 }
 0x2f4   :  { %v1915_v7 = vmax.f32 %v1913_v15, %v1914_v51  ;;  %v1922_v32 = vmax.f32 %v1920_v31, %v1921_v40  ;;  %v1271_v15 = vpop.permute.xlu1 %1270  ;;  %v5342_v51 = vstv %s4341_s2  ;;  %s4369_s2 = sld [smem:[#allocation8 + $0x56]] }
 0x2f5   :  { %v1272_v31 = vrot.slane %v1271_v15, 2  ;;  %v1340_v16 = vmul.f32 %v4212_v10, %v5342_v51 }
 0x2f6   :  { %v1924_v27 = vsel %vm307_vm7, %v1903_v18, %v1922_v32  ;;  %v1923_v44 = vsel %vm307_vm7, %v1902_v50, %v1915_v7  ;;  %vm1273_vm7 = vcmask 498688  }
 0x2f7   :  { %v1927_v19 = vrot.slane %v1924_v27, 6  ;;  %v1274_v0 = vsel %vm1273_vm7, %v1271_v15, %v1272_v31  ;;  %v2867_v34 = vrot.slane %v1340_v16, 9 }
 0x2f8   :  { %v1276_v32 = vadd.f32 %v1274_v0, %v4303_v48 }
 0x2f9   :  { %v1331_v39 = vpop.permute.xlu0 %1330  ;;  %v4323_v45 = vsel %vm313_vm8, %v1923_v44, %v1927_v19  ;;  %vm1303_vm8 = vcmask 490496  }
 0x2fa   :  { %v1332_v18 = vrot.slane %v1331_v39, 2  ;;  %5459 = sst [smem:[#allocation69_spill]] %s4369_s2  ;;  %v5324_v31 = vstv %s4369_s2 }
 0x2fb   :  { %s4414_s2 = sld [smem:[#allocation8 + $0x58]] }
 0x2fc   :  { %v1334_v19 = vsel %vm1333_vm11, %v1331_v39, %v1332_v18  ;;  %v4364_v39 = vld [vmem:[%s5126_s5 + $0x10] ss:$8 sm:$0x3]  ;;  %v5322_v18 = vstv %s4371_s7  ;;  %s5332_s7 = smov 44  }
 0x301   :  { %v1383_v28 = vpop.permute.xlu0 %1382  ;;  %5463 = sst [smem:[#allocation73_spill]] %s4414_s2 }
 0x302   :  { %v1384_v14 = vrot.slane %v1383_v28, 6 }
 0x304   :  { %v4329_v49 = vsel %vm975_vm12, %v1384_v14, %v1383_v28 }
 0x305   :  { %v1387_v54 = vmul.f32 %v4329_v49, %v1375_v29 }
 0x307   :  { %1389 = vrot.lane.b32.xlu1 %v1387_v54, %s5456_s4  ;;  %s4343_s4 = sld [smem:[#allocation8 + $0x22]] }
 0x30d   :  { %5458 = sst [smem:[#allocation68_spill]] %s4343_s4  ;;  %v5341_v44 = vstv %s4343_s4  ;;  %s3206_s4 = smov 81  }
 0x30e   :  { %v1338_v28 = vmul.f32 %v4212_v10, %v5341_v44 }
 0x30f   :  { %1440 = vrot.lane.b32.xlu1 %v1439_v63, %s3204_s1  ;;  %v1404_v63 = vmul.f32 %v4364_v39, %v4228_v53  ;;  %s4388_s1 = sld [smem:[#allocation8 + $0x55]] }
 0x310   :  { %v1345_v54 = vadd.f32 %v2867_v34, %v1338_v28  ;;  %v1494_v28 = vmul.f32 %v4107_v60, %v4228_v53 }
 0x311   :  { %v1409_v15 = vperm.slane %v1404_v63, %v3292_v8 }
 0x315   :  { %5461 = sst [smem:[#allocation71_spill]] %s4388_s1 }
 0x343   :  { %v1301_v40 = vpop.permute.xlu1 %1300 }
 0x344   :  { %v1302_v7 = vrot.slane %v1301_v40, 2 }
 0x346   :  { %v1304_v50 = vsel %vm1303_vm8, %v1301_v40, %v1302_v7  ;;  %v1428_v40 = vmul.f32 %v4212_v10, %v5324_v31 }
 0x347   :  { %v1306_v27 = vadd.f32 %v1304_v50, %v1276_v32  ;;  %v1426_v32 = vmul.f32 %v4212_v10, %v5322_v18 }
 0x348   :  { %v2870_v7 = vrot.slane %v1428_v40, 9 }
 0x349   :  { %v1336_v55 = vadd.f32 %v1334_v19, %v1306_v27 }
 0x34a   :  { %v1433_v27 = vadd.f32 %v2870_v7, %v1426_v32 }
 0x34b   :  { %v1353_v14 = vpop.permute.xlu1 %1352 }
 0x34c   :  { %v1354_v29 = vrot.slane %v1353_v14, 6 }
 0x34e   :  { %v4357_v48 = vsel %vm1355_vm1, %v1354_v29, %v1353_v14  ;;  %vm1443_vm1 = vcmask 670720   ;;  %v1499_v14 = vperm.slane %v1494_v28, %v3292_v8  ;;  %v5339_v29 = vstv %s4388_s1  ;;  %s4416_s1 = sld [smem:[#allocation8 + $0x27]] }
 0x34f   :  { %v1358_v30 = vmul.f32 %v4357_v48, %v1345_v54 }
 0x351   :  { %1360 = vrot.lane.b32.xlu2 %v1358_v30, %s5320_s18  ;;  %s4390_s18 = sld [smem:[#allocation8 + $0x24]] }
 0x354   :  { %5464 = sst [smem:[#allocation74_spill]] %s4416_s1 }
 0x357   :  { %5462 = sst [smem:[#allocation72_spill]] %s4390_s18 }
 0x359   :  { %1410 = vrot.lane.b32.xlu2 %v1409_v15, %s3206_s4  ;;  %s5325_s4 = smov 46   ;;  %v1398_v15 = vmul.f32 %v4212_v10, %v5339_v29 }
 0x379   :  { %v1390_v0 = vpop.permute.xlu1 %1389 }
 0x37a   :  { %v1391_v30 = vrot.slane %v1390_v0, 2 }
 0x37c   :  { %v1392_v32 = vsel %vm5334_vm2, %v1390_v0, %v1391_v30  ;;  %vm5347_vm2 = vcmask 375808  }
 0x381   :  { %v1441_v16 = vpop.permute.xlu1 %1440 }
 0x382   :  { %v1442_v50 = vrot.slane %v1441_v16, 6 }
 0x384   :  { %v4381_v19 = vsel %vm1443_vm1, %v1442_v50, %v1441_v16  ;;  %vm5336_vm1 = vcmask 474112   ;;  %v5338_v16 = vstv %s4390_s18  ;;  %v2869_v50 = vrot.slane %v1398_v15, 9  ;;  %s3210_s18 = smov 83  }
 0x385   :  { %v1446_v34 = vmul.f32 %v4381_v19, %v1433_v27 }
 0x387   :  { %1448 = vrot.lane.b32.xlu2 %v1446_v34, %s5325_s4  ;;  %v1396_v34 = vmul.f32 %v4212_v10, %v5338_v16  ;;  %s4446_s4 = sld [smem:[#allocation8 + $0x57]] }
 0x389   :  { %v1403_v18 = vadd.f32 %v2869_v50, %v1396_v34 }
 0x38d   :  { %5465 = sst [smem:[#allocation75_spill]] %s4446_s4 }
 0x38f   :  { %1500 = vrot.lane.b32.xlu2 %v1499_v14, %s3208_s27  ;;  %s5330_s27 = smov 47  }
 0x3ab   :  { %v1361_v54 = vpop.permute.xlu2 %1360 }
 0x3ac   :  { %v1362_v63 = vrot.slane %v1361_v54, 2 }
 0x3ae   :  { %v1364_v40 = vsel %vm5336_vm1, %v1361_v54, %v1362_v63  ;;  %v5335_v63 = vstv %s4416_s1  ;;  %s3213_s1 = smov 98   ;;  %vm1473_vm1 = vcmask 678912  }
 0x3af   :  { %v1366_v7 = vadd.f32 %v1364_v40, %v1336_v55  ;;  %v4409_v55 = vld [vmem:[%s5126_s5 + $0x12] ss:$8 sm:$0x3]  ;;  %v1486_v40 = vmul.f32 %v4212_v10, %v5335_v63 }
 0x3b0   :  { %v1464_v0 = vmul.f32 %v4409_v55, %v4228_v53 }
 0x3b1   :  { %v1394_v27 = vadd.f32 %v1392_v32, %v1366_v7 }
 0x3b2   :  { %v1469_v54 = vperm.slane %v1464_v0, %v3292_v8 }
 0x3b3   :  { %v1411_v28 = vpop.permute.xlu2 %1410 }
 0x3b4   :  { %v1412_v14 = vrot.slane %v1411_v28, 6 }
 0x3b6   :  { %v4402_v9 = vsel %vm1413_vm0, %v1412_v14, %v1411_v28  ;;  %vm1503_vm0 = vcmask 687104   ;;  %v1554_v14 = vmul.f32 %v4283_v52, %v4228_v53 }
 0x3b7   :  { %v1416_v31 = vmul.f32 %v4402_v9, %v1403_v18 }
 0x3b8   :  { %v1559_v0 = vperm.slane %v1554_v14, %v3292_v8 }
 0x3b9   :  { %1418 = vrot.lane.b32.xlu0 %v1416_v31, %s5330_s27  ;;  %v5337_v31 = vstv %s4414_s2  ;;  %s3212_s27 = smov 86   ;;  %s5343_s2 = smov 45  }
 0x3ba   :  { %v1488_v30 = vmul.f32 %v4212_v10, %v5337_v31 }
 0x3bc   :  { %v2872_v15 = vrot.slane %v1488_v30, 9 }
 0x3be   :  { %v1493_v50 = vadd.f32 %v2872_v15, %v1486_v40  ;;  %v3062_v40 = vld [vmem:[%s5126_s5 + $0x14] ss:$8 sm:$0x3] }
 0x3c1   :  { %1470 = vrot.lane.b32.xlu0 %v1469_v54, %s3210_s18  ;;  %v4436_v54 = vld [vmem:[%s5126_s5 + $0x6] ss:$8 sm:$0x3]  ;;  %s3214_s18 = smov 101  }
 0x3c2   :  { %v1642_v30 = vmul.f32 %v4336_v6, %v4436_v54  ;;  %v5385_v6 = vstv %s4446_s4  ;;  %s5371_s4 = smov 31  }
 0x3c3   :  { %v1458_v14 = vmul.f32 %v4212_v10, %v5385_v6 }
 0x3c4   :  { %v1647_v15 = vperm.slane %v1642_v30, %v3292_v8 }
 0x3e1   :  { %v1449_v18 = vpop.permute.xlu2 %1448 }
 0x3e9   :  { %v1501_v7 = vpop.permute.xlu2 %1500 }
 0x3ea   :  { %v1502_v32 = vrot.slane %v1501_v7, 6 }
 0x3ec   :  { %v4426_v34 = vsel %vm1503_vm0, %v1502_v32, %v1501_v7  ;;  %v1732_v7 = vmul.f32 %v3062_v40, %v4436_v54  ;;  %vm1421_vm0 = vcmask 384000  }
 0x3ed   :  { %v1506_v28 = vmul.f32 %v4426_v34, %v1493_v50 }
 0x3ee   :  { %v1737_v32 = vperm.slane %v1732_v7, %v3292_v8  ;;  %v1450_v7 = vrot.slane %v1449_v18, 2 }
 0x3ef   :  { %1508 = vrot.lane.b32.xlu0 %v1506_v28, %s5332_s7  ;;  %s3217_s7 = smov 97  }
 0x3f0   :  { %v1452_v29 = vsel %vm5347_vm2, %v1449_v18, %v1450_v7  ;;  %vm1651_vm2 = vcmask 801792  }
 0x3f7   :  { %1560 = vrot.lane.b32.xlu0 %v1559_v0, %s3212_s27  ;;  %s4448_s27 = sld [smem:[#allocation8 + $0x26]] }
 0x3fd   :  { %5466 = sst [smem:[#allocation76_spill]] %s4448_s27 }
 0x3ff   :  { %1648 = vrot.lane.b32.xlu0 %v1647_v15, %s3213_s1  ;;  %v5368_v15 = vstv %s4448_s27  ;;  %s3216_s1 = smov 85   ;;  %s4476_s27 = sld [smem:[#allocation8 + $0x29]] }
 0x400   :  { %v1456_v63 = vmul.f32 %v4212_v10, %v5368_v15 }
 0x405   :  { %5468 = sst [smem:[#allocation78_spill]] %s4476_s27 }
 0x407   :  { %1738 = vrot.lane.b32.xlu0 %v1737_v32, %s3214_s18  ;;  %v2871_v32 = vrot.slane %v1458_v14, 9  ;;  %v1612_v14 = vmul.f32 %v4364_v39, %v4436_v54  ;;  %s3218_s18 = smov 100  }
 0x409   :  { %v1463_v41 = vadd.f32 %v2871_v32, %v1456_v63  ;;  %v1617_v18 = vperm.slane %v1612_v14, %v3292_v8 }
 0x42b   :  { %v1419_v50 = vpop.permute.xlu0 %1418 }
 0x42c   :  { %v1420_v28 = vrot.slane %v1419_v50, 2 }
 0x42e   :  { %v1422_v0 = vsel %vm1421_vm0, %v1419_v50, %v1420_v28 }
 0x42f   :  { %v1424_v30 = vadd.f32 %v1422_v0, %v1394_v27  ;;  %v1524_v27 = vmul.f32 %v3062_v40, %v4228_v53 }
 0x431   :  { %v4462_v51 = vadd.f32 %v1452_v29, %v1424_v30  ;;  %v1529_v28 = vperm.slane %v1524_v27, %v3292_v8  ;;  %v1702_v29 = vmul.f32 %v4107_v60, %v4436_v54 }
 0x433   :  { %v1471_v31 = vpop.permute.xlu0 %1470 }
 0x434   :  { %v1472_v16 = vrot.slane %v1471_v31, 6 }
 0x436   :  { %v4460_v44 = vsel %vm1473_vm1, %v1472_v16, %v1471_v31  ;;  %v5351_v16 = vstv %s4476_s27  ;;  %vm1563_vm1 = vcmask 703488   ;;  %s5352_s27 = smov 42  }
 0x437   :  { %v1476_v50 = vmul.f32 %v4460_v44, %v1463_v41  ;;  %v1707_v41 = vperm.slane %v1702_v29, %v3292_v8  ;;  %v1546_v40 = vmul.f32 %v4212_v10, %v5351_v16 }
 0x439   :  { %1478 = vrot.lane.b32.xlu1 %v1476_v50, %s5343_s2  ;;  %s4474_s2 = sld [smem:[#allocation8 + $0x5a]] }
 0x43f   :  { %5467 = sst [smem:[#allocation77_spill]] %s4474_s2  ;;  %v5362_v53 = vstv %s4474_s2 }
 0x440   :  { %v1548_v60 = vmul.f32 %v4212_v10, %v5362_v53  ;;  %s4502_s2 = sld [smem:[#allocation8 + $0x2f]] }
 0x441   :  { %1530 = vrot.lane.b32.xlu1 %v1529_v28, %s3216_s1  ;;  %s4479_s1 = sld [smem:[#allocation8 + $0x5d]] }
 0x442   :  { %v2874_v31 = vrot.slane %v1548_v60, 9 }
 0x444   :  { %v1553_v7 = vadd.f32 %v2874_v31, %v1546_v40 }
 0x446   :  { %5472 = sst [smem:[#allocation82_spill]] %s4502_s2 }
 0x447   :  { %5469 = sst [smem:[#allocation79_spill]] %s4479_s1  ;;  %v5350_v63 = vstv %s4479_s1  ;;  %s5354_s1 = smov 30  }
 0x448   :  { %v1636_v32 = vmul.f32 %v4212_v10, %v5350_v63 }
 0x449   :  { %1618 = vrot.lane.b32.xlu1 %v1617_v18, %s3217_s7  ;;  %s4487_s7 = sld [smem:[#allocation8 + $0x2c]] }
 0x44a   :  { %v2877_v14 = vrot.slane %v1636_v32, 9 }
 0x44f   :  { %5470 = sst [smem:[#allocation80_spill]] %s4487_s7  ;;  %v5349_v28 = vstv %s4487_s7 }
 0x450   :  { %v1634_v29 = vmul.f32 %v4212_v10, %v5349_v28  ;;  %s4540_s7 = sld [smem:[#allocation8 + $0x5f]] }
 0x451   :  { %1708 = vrot.lane.b32.xlu1 %v1707_v41, %s3218_s18  ;;  %s4490_s18 = sld [smem:[#allocation8 + $0x60]] }
 0x452   :  { %v1641_v31 = vadd.f32 %v2877_v14, %v1634_v29 }
 0x456   :  { %5478 = sst [smem:[#allocation88_spill]] %s4540_s7 }
 0x457   :  { %5471 = sst [smem:[#allocation81_spill]] %s4490_s18  ;;  %v5359_v18 = vstv %s4490_s18 }
 0x458   :  { %v1726_v40 = vmul.f32 %v4212_v10, %v5359_v18  ;;  %s4524_s18 = sld [smem:[#allocation8 + $0x59]] }
 0x45a   :  { %v2880_v32 = vrot.slane %v1726_v40, 9 }
 0x45e   :  { %5474 = sst [smem:[#allocation84_spill]] %s4524_s18 }
 0x461   :  { %v4481_v39 = vpop.permute.xlu0 %1508 }
 0x462   :  { %v1510_v18 = vrot.slane %v4481_v39, 2 }
 0x469   :  { %v1561_v0 = vpop.permute.xlu0 %1560 }
 0x46a   :  { %v1562_v30 = vrot.slane %v1561_v0, 6 }
 0x46c   :  { %v4498_v50 = vsel %vm1563_vm1, %v1562_v30, %v1561_v0  ;;  %vm1741_vm1 = vcmask 826368  }
 0x46d   :  { %v1566_v27 = vmul.f32 %v4498_v50, %v1553_v7  ;;  %v5358_v7 = vstv %s4502_s2  ;;  %s4529_s2 = sld [smem:[#allocation8 + $0x5c]] }
 0x46f   :  { %1568 = vrot.lane.b32.xlu0 %v1566_v27, %s5352_s27  ;;  %v1724_v27 = vmul.f32 %v4212_v10, %v5358_v7  ;;  %s5356_s27 = smov 27  }
 0x471   :  { %v1649_v41 = vpop.permute.xlu0 %1648  ;;  %v1731_v16 = vadd.f32 %v2880_v32, %v1724_v27 }
 0x472   :  { %v1650_v60 = vrot.slane %v1649_v41, 6 }
 0x473   :  { %5476 = sst [smem:[#allocation86_spill]] %s4529_s2  ;;  %v5366_v32 = vstv %s4529_s2  ;;  %s3224_s2 = smov 99  }
 0x474   :  { %v4512_v0 = vsel %vm1651_vm2, %v1650_v60, %v1649_v41  ;;  %v5369_v41 = vstv %s4524_s18  ;;  %vm5360_vm2 = vcmask 367616   ;;  %s5372_s18 = smov 43  }
 0x475   :  { %v1654_v30 = vmul.f32 %v4512_v0, %v1641_v31 }
 0x477   :  { %1656 = vrot.lane.b32.xlu0 %v1654_v30, %s5354_s1  ;;  %s4526_s1 = sld [smem:[#allocation8 + $0x28]] }
 0x479   :  { %v1739_v28 = vpop.permute.xlu0 %1738 }
 0x47a   :  { %v1740_v63 = vrot.slane %v1739_v28, 6 }
 0x47c   :  { %v4520_v14 = vsel %vm1741_vm1, %v1740_v63, %v1739_v28  ;;  %vm1533_vm1 = vcmask 695296  }
 0x47d   :  { %5473 = vst [vmem:[#allocation83_spill] sm:$0xff] %v4520_v14  ;;  %v1744_v29 = vmul.f32 %v4520_v14, %v1731_v16  ;;  %5475 = sst [smem:[#allocation85_spill]] %s4526_s1  ;;  %v1518_v16 = vmul.f32 %v4212_v10, %v5369_v41  ;;  %v5367_v40 = vstv %s4526_s1 }
 0x47e   :  { %v1516_v27 = vmul.f32 %v4212_v10, %v5367_v40  ;;  %s4553_s1 = sld [smem:[#allocation8 + $0x2e]] }
 0x47f   :  { %1746 = vrot.lane.b32.xlu0 %v1744_v29, %s5356_s27  ;;  %s4537_s27 = sld [smem:[#allocation8 + $0x2b]]  ;;  %v2873_v30 = vrot.slane %v1518_v16, 9 }
 0x484   :  { %5479 = sst [smem:[#allocation89_spill]] %s4553_s1 }
 0x485   :  { %5477 = sst [smem:[#allocation87_spill]] %s4537_s27 }
 0x4ab   :  { %v1479_v63 = vpop.permute.xlu1 %1478 }
 0x4ac   :  { %v1480_v28 = vrot.slane %v1479_v63, 2 }
 0x4ae   :  { %v1482_v60 = vsel %vm5360_vm2, %v1479_v63, %v1480_v28  ;;  %v1523_v63 = vadd.f32 %v2873_v30, %v1516_v27  ;;  %vm5370_vm2 = vcmask 359424   ;;  %v3063_v27 = vld [vmem:[%s5126_s5 + $0x7] ss:$8 sm:$0x3]  ;;  %s5480_s5 = smov 96  }
 0x4af   :  { %v1484_v31 = vadd.f32 %v1482_v60, %v4462_v51  ;;  %v1606_v51 = vmul.f32 %v4212_v10, %v5366_v32  ;;  %v5382_v60 = vstv %s4537_s27  ;;  %v1512_v53 = vsel %vm5370_vm2, %v4481_v39, %v1510_v18  ;;  %s4593_s27 = sld [smem:[#allocation8 + $0x2a]] }
 0x4b0   :  { %v1604_v32 = vmul.f32 %v4212_v10, %v5382_v60  ;;  %vm1711_vm2 = vcmask 818176   ;;  %v5491_v60 = vstv %s3549_s16  ;;  %s5501_s16 = smov 126  }
 0x4b1   :  { %v2876_v30 = vrot.slane %v1606_v51, 9 }
 0x4b3   :  { %v1531_v29 = vpop.permute.xlu1 %1530  ;;  %v1611_v18 = vadd.f32 %v2876_v30, %v1604_v32 }
 0x4b4   :  { %v1532_v7 = vrot.slane %v1531_v29, 6 }
 0x4b6   :  { %v4549_v28 = vsel %vm1533_vm1, %v1532_v7, %v1531_v29  ;;  %v1584_v7 = vmul.f32 %v3063_v27, %v4436_v54  ;;  %v5380_v29 = vstv %s4540_s7  ;;  %vm1621_vm1 = vcmask 793600   ;;  %s4591_s7 = sld [smem:[#allocation8 + $0x5b]] }
 0x4b7   :  { %v1536_v16 = vmul.f32 %v4549_v28, %v1523_v63  ;;  %v1514_v63 = vadd.f32 %v1512_v53, %v1484_v31  ;;  %v1696_v51 = vmul.f32 %v4212_v10, %v5380_v29  ;;  %v5376_v27 = vstv %s4553_s1  ;;  %s3226_s1 = smov 102  }
 0x4b8   :  { %v1589_v15 = vperm.slane %v1584_v7, %v3292_v8  ;;  %v1672_v31 = vmul.f32 %v4409_v55, %v4436_v54  ;;  %v1694_v32 = vmul.f32 %v4212_v10, %v5376_v27  ;;  %v1762_v55 = vmul.f32 %v4283_v52, %v4436_v54 }
 0x4b9   :  { %1538 = vrot.lane.b32.xlu2 %v1536_v16, %s5372_s18  ;;  %v2879_v53 = vrot.slane %v1696_v51, 9  ;;  %s5482_s18 = smov 51   ;;  %v5489_v29 = vstv %s3569_s22  ;;  %s5511_s22 = sld [smem:[#allocation29_spill]] }
 0x4bb   :  { %v1619_v40 = vpop.permute.xlu1 %1618 }
 0x4bc   :  { %v1620_v39 = vrot.slane %v1619_v40, 6  ;;  %v5384_v51 = vstv %s4591_s7 }
 0x4be   :  { %v4570_v16 = vsel %vm1621_vm1, %v1620_v39, %v1619_v40  ;;  %v1701_v40 = vadd.f32 %v2879_v53, %v1694_v32  ;;  %v1677_v39 = vperm.slane %v1672_v31, %v3292_v8  ;;  %v5383_v31 = vstv %s4593_s27 }
 0x4bf   :  { %v1624_v41 = vmul.f32 %v4570_v16, %v1611_v18  ;;  %vm1681_vm1 = vcmask 809984  }
 0x4c1   :  { %1590 = vrot.lane.b32.xlu2 %v1589_v15, %s5480_s5  ;;  %1626 = vrot.lane.b32.xlu1 %v1624_v41, %s5371_s4  ;;  %s5377_s4 = smov 28   ;;  %v1767_v41 = vperm.slane %v1762_v55, %v3292_v8  ;;  %v1578_v8 = vmul.f32 %v4212_v10, %v5384_v51  ;;  %v5495_v51 = vstv %s3574_s24  ;;  %s5516_s24 = smov 112  }
 0x4c3   :  { %v1709_v30 = vpop.permute.xlu1 %1708  ;;  %v2875_v32 = vrot.slane %v1578_v8, 9 }
 0x4c4   :  { %v1710_v7 = vrot.slane %v1709_v30, 6 }
 0x4c6   :  { %v4582_v18 = vsel %vm1711_vm2, %v1710_v7, %v1709_v30  ;;  %vm5394_vm2 = vcmask 351232   ;;  %v1576_v7 = vmul.f32 %v4212_v10, %v5383_v31 }
 0x4c7   :  { %5481 = vst [vmem:[#allocation90_spill] sm:$0xff] %v4582_v18  ;;  %v1714_v15 = vmul.f32 %v4582_v18, %v1701_v40 }
 0x4c9   :  { %1678 = vrot.lane.b32.xlu2 %v1677_v39, %s3224_s2  ;;  %1716 = vrot.lane.b32.xlu1 %v1714_v15, %s5377_s4  ;;  %s4596_s2 = sld [smem:[#allocation8 + $0x5e]]  ;;  %v1583_v15 = vadd.f32 %v2875_v32, %v1576_v7  ;;  %s5379_s4 = smov 29  }
 0x4cf   :  { %v5381_v30 = vstv %s4596_s2 }
 0x4d0   :  { %v1666_v55 = vmul.f32 %v4212_v10, %v5381_v30 }
 0x4d1   :  { %1929 = vrot.lane.b32.xlu2 %v4323_v45, %s5482_s18  ;;  %s5483_s18 = smov 32  }
 0x4d9   :  { %1768 = vrot.lane.b32.xlu2 %v1767_v41, %s3226_s1  ;;  %s4603_s1 = sld [smem:[#allocation8 + $0x2d]] }
 0x513   :  { %v1539_v45 = vpop.permute.xlu2 %1538 }
 0x514   :  { %v1540_v52 = vrot.slane %v1539_v45, 2 }
 0x516   :  { %v1542_v54 = vsel %vm5394_vm2, %v1539_v45, %v1540_v52  ;;  %v5378_v45 = vstv %s4603_s1  ;;  %v2878_v52 = vrot.slane %v1666_v55, 9  ;;  %vm5711_vm2 = vcmask 891904  }
 0x517   :  { %v1544_v53 = vadd.f32 %v1542_v54, %v1514_v63  ;;  %v1664_v8 = vmul.f32 %v4212_v10, %v5378_v45 }
 0x519   :  { %v1671_v32 = vadd.f32 %v2878_v52, %v1664_v8 }
 0x51b   :  { %v1591_v40 = vpop.permute.xlu2 %1590 }
 0x51c   :  { %v1592_v39 = vrot.slane %v1591_v40, 6 }
 0x51e   :  { %v4613_v41 = vsel %vm765_vm6, %v1592_v39, %v1591_v40 }
 0x51f   :  { %v1595_v63 = vmul.f32 %v4613_v41, %v1583_v15  ;;  %v1569_v15 = vpop.permute.xlu0 %1568 }
 0x520   :  { %v1570_v45 = vrot.slane %v1569_v15, 2 }
 0x521   :  { %1597 = vrot.lane.b32.xlu2 %v1595_v63, %s5483_s18 }
 0x523   :  { %v1679_v54 = vpop.permute.xlu2 %1678 }
 0x524   :  { %v1680_v27 = vrot.slane %v1679_v54, 6 }
 0x526   :  { %v4621_v7 = vsel %vm1681_vm1, %v1680_v27, %v1679_v54  ;;  %vm5393_vm1 = vcmask 343040   ;;  %v5484_v54 = vstv %s3533_s12  ;;  %s5496_s12 = sld [smem:[#allocation14_spill]] }
 0x527   :  { %v1684_v40 = vmul.f32 %v4621_v7, %v1671_v32  ;;  %v1572_v27 = vsel %vm5393_vm1, %v1569_v15, %v1570_v45  ;;  %v5487_v45 = vstv %s3547_s15  ;;  %v5488_v15 = vstv %s3560_s19  ;;  %s5499_s15 = smov 125   ;;  %s5503_s19 = smov 124  }
 0x528   :  { %v4629_v52 = vadd.f32 %v1572_v27, %v1544_v53  ;;  %vm5705_vm1 = vcmask 1006592  }
 0x529   :  { %1686 = vrot.lane.b32.xlu2 %v1684_v40, %s5379_s4  ;;  %s5486_s4 = smov 127  }
 0x52b   :  { %v1930_v39 = vpop.permute.xlu2 %1929 }
 0x52c   :  { %v1931_v55 = vrot.slane %v1930_v39, 6 }
 0x52e   :  { %v1932_v63 = vsel %vm318_vm15, %v1931_v55, %v1930_v39  ;;  %v5485_v39 = vstv %s3537_s13  ;;  %s5497_s13 = sld [smem:[#allocation17_spill]]  ;;  %vm5389_vm15 = vcmask 252928  }
 0x52f   :  { %1934 = vst.msk [vmem:[#allocation2] sm:$0x3f] %vm3524_vm3, %v1932_v63  ;;  %vm5391_vm3 = vcmask 244736  }
 0x536   :  { %v4631_v8 = vld [vmem:[#allocation2] sm:$0x3f] }
 0x537   :  { %v1947_v32 = vmul.f32 %v4631_v8, %v5484_v54  ;;  %v1946_v42 = vmul.f32 %v4631_v8, %v5485_v39  ;;  %v1977_v53 = vmul.f32 %v4631_v8, %v5487_v45  ;;  %v2007_v27 = vmul.f32 %v4631_v8, %v5488_v15 }
 0x538   :  { %v1962_v30 = vmul.f32 %v4631_v8, %v5489_v29  ;;  %v5490_v54 = vstv %s3567_s21  ;;  %v2022_v39 = vmul.f32 %v4631_v8, %v5491_v60  ;;  %v5494_v15 = vstv %s3562_s20  ;;  %s5505_s20 = sld [smem:[#allocation21_spill]] }
 0x539   :  { %v2885_v40 = vrot.slane %v1947_v32, 9  ;;  %v1992_v32 = vmul.f32 %v4631_v8, %v5490_v54  ;;  %v1991_v31 = vmul.f32 %v4631_v8, %v5494_v15  ;;  %v2037_v54 = vmul.f32 %v4631_v8, %v5495_v51  ;;  %s5510_s21 = sld [smem:[#allocation16_spill]] }
 0x53a   :  { %v2886_v45 = vrot.slane %v1962_v30, 9  ;;  %v2890_v56 = vrot.slane %v2022_v39, 9  ;;  %v5500_v51 = vstv %s3591_s28  ;;  %s5518_s28 = sld [smem:[#allocation19_spill]] }
 0x53b   :  { %v1952_v55 = vadd.f32 %v2885_v40, %v1946_v42  ;;  %v5492_v40 = vstv %s3553_s17  ;;  %v2887_v42 = vrot.slane %v1977_v53, 9  ;;  %v2888_v29 = vrot.slane %v1992_v32, 9  ;;  %s5502_s17 = sld [smem:[#allocation15_spill]] }
 0x53c   :  { %v2891_v15 = vrot.slane %v2037_v54, 9  ;;  %v5498_v32 = vstv %s3542_s14  ;;  %s5508_s14 = sld [smem:[#allocation27_spill]] }
 0x53d   :  { %v1953_v63 = vmul.f32 %v1952_v55, %v3581_v1  ;;  %v1976_v1 = vmul.f32 %v4631_v8, %v5492_v40  ;;  %v5493_v55 = vstv %s3572_s23  ;;  %v1997_v40 = vadd.f32 %v2888_v29, %v1991_v31  ;;  %s5513_s23 = smov 122  }
 0x53e   :  { %v2021_v18 = vmul.f32 %v4631_v8, %v5498_v32 }
 0x53f   :  { %1955 = vrot.lane.b32.xlu1 %v1953_v63, %s5486_s4  ;;  %v1961_v63 = vmul.f32 %v4631_v8, %v5493_v55  ;;  %v1982_v60 = vadd.f32 %v2887_v42, %v1976_v1  ;;  %v2889_v55 = vrot.slane %v2007_v27, 9  ;;  %v1998_v14 = vmul.f32 %v1997_v40, %v3657_v23  ;;  %s5523_s4 = sld [smem:[#allocation38_spill]] }
 0x540   :  { %v2006_v1 = vmul.f32 %v4631_v8, %v5500_v51  ;;  %v2027_v31 = vadd.f32 %v2890_v56, %v2021_v18  ;;  %v5507_v27 = vstv %s5497_s13  ;;  %s5528_s13 = smov 111  }
 0x541   :  { %v1967_v6 = vadd.f32 %v2886_v45, %v1961_v63  ;;  %v1983_v53 = vmul.f32 %v1982_v60, %v3607_v22  ;;  %v5504_v22 = vstv %s3611_s3  ;;  %v2052_v39 = vmul.f32 %v4631_v8, %v5507_v27  ;;  %s5522_s3 = sld [smem:[#allocation18_spill]] }
 0x542   :  { %v2012_v42 = vadd.f32 %v2889_v55, %v2006_v1  ;;  %v5509_v45 = vstv %s3684_s8  ;;  %v2028_v54 = vmul.f32 %v2027_v31, %v3672_v36  ;;  %v5514_v55 = vstv %s5505_s20  ;;  %s5515_s8 = smov 123   ;;  %s5539_s20 = sld [smem:[#allocation48_spill]] }
 0x543   :  { %v1968_v30 = vmul.f32 %v1967_v6, %v3653_v13  ;;  %1985 = vrot.lane.b32.xlu0 %v1983_v53, %s5499_s15  ;;  %v2036_v13 = vmul.f32 %v4631_v8, %v5504_v22  ;;  %v5506_v6 = vstv %s5496_s12  ;;  %v2082_v29 = vmul.f32 %v4631_v8, %v5509_v45  ;;  %s5524_s12 = sld [smem:[#allocation37_spill]] }
 0x544   :  { %v2067_v23 = vmul.f32 %v4631_v8, %v5506_v6  ;;  %v2892_v60 = vrot.slane %v2052_v39, 9  ;;  %v2013_v40 = vmul.f32 %v2012_v42, %v3730_v20  ;;  %v5512_v53 = vstv %s5502_s17  ;;  %s5530_s15 = sld [smem:[#allocation22_spill]] }
 0x545   :  { %1970 = vrot.lane.b32.xlu2 %v1968_v30, %s5501_s16  ;;  %v2042_v63 = vadd.f32 %v2891_v15, %v2036_v13  ;;  %v2894_v18 = vrot.slane %v2082_v29, 9  ;;  %v2066_v30 = vmul.f32 %v4631_v8, %v5512_v53  ;;  %v2051_v15 = vmul.f32 %v4631_v8, %v5514_v55  ;;  %s5531_s16 = smov 109   ;;  %s5533_s17 = sld [smem:[#allocation42_spill]] }
 0x546   :  { %v5517_v36 = vstv %s5508_s14  ;;  %v5520_v1 = vstv %s5510_s21  ;;  %v5521_v6 = vstv %s5511_s22  ;;  %s5541_s14 = smov 107   ;;  %s5543_s21 = smov 108  }
 0x547   :  { %2000 = vrot.lane.b32.xlu1 %v1998_v14, %s5503_s19  ;;  %v2893_v14 = vrot.slane %v2067_v23, 9  ;;  %v2043_v56 = vmul.f32 %v2042_v63, %v3712_v58  ;;  %v2081_v20 = vmul.f32 %v4631_v8, %v5517_v36  ;;  %v5519_v58 = vstv %s3804_s0  ;;  %s5525_s0 = smov 110   ;;  %s5538_s19 = sld [smem:[#allocation46_spill]] }
 0x548   :  { %v2112_v51 = vmul.f32 %v4631_v8, %v5519_v58  ;;  %v2127_v22 = vmul.f32 %v4631_v8, %v5520_v1  ;;  %v2057_v13 = vadd.f32 %v2892_v60, %v2051_v15  ;;  %v2097_v23 = vmul.f32 %v4631_v8, %v5521_v6  ;;  %s5545_s22 = smov 106  }
 0x549   :  { %v2072_v32 = vadd.f32 %v2893_v14, %v2066_v30  ;;  %v2087_v31 = vadd.f32 %v2894_v18, %v2081_v20  ;;  %v5526_v14 = vstv %s3846_s11  ;;  %v5527_v60 = vstv %s5518_s28  ;;  %s5535_s11 = sld [smem:[#allocation40_spill]] }
 0x54a   :  { %v2896_v39 = vrot.slane %v2112_v51, 9  ;;  %v2897_v42 = vrot.slane %v2127_v22, 9  ;;  %v2058_v63 = vmul.f32 %v2057_v13, %v3789_v25  ;;  %v2895_v45 = vrot.slane %v2097_v23, 9  ;;  %v1627_v51 = vpop.permute.xlu1 %1626  ;;  %s5552_s28 = sld [smem:[#allocation50_spill]] }
 0x54b   :  { %2030 = vrot.lane.b32.xlu0 %v2028_v54, %s5513_s23  ;;  %v2073_v27 = vmul.f32 %v2072_v32, %v3721_v4  ;;  %v2088_v29 = vmul.f32 %v2087_v31, %v3830_v2  ;;  %v2111_v54 = vmul.f32 %v4631_v8, %v5526_v14  ;;  %v5529_v4 = vstv %s3791_s25  ;;  %s5537_s25 = sld [smem:[#allocation43_spill]] }
 0x54c   :  { %v2096_v18 = vmul.f32 %v4631_v8, %v5529_v4  ;;  %v5532_v25 = vstv %s5522_s3  ;;  %v5534_v30 = vstv %s5523_s4  ;;  %v5536_v20 = vstv %s5524_s12  ;;  %s5549_s23 = sld [smem:[#allocation47_spill]]  ;;  %s5556_s12 = smov 95  }
 0x54d   :  { %2015 = vrot.lane.b32.xlu2 %v2013_v40, %s5515_s8  ;;  %v2126_v40 = vmul.f32 %v4631_v8, %v5527_v60  ;;  %v2157_v2 = vmul.f32 %v4631_v8, %v5532_v25  ;;  %v2117_v53 = vadd.f32 %v2896_v39, %v2111_v54  ;;  %v2172_v55 = vmul.f32 %v4631_v8, %v5534_v30  ;;  %v1657_v39 = vpop.permute.xlu0 %1656  ;;  %s5550_s8 = sld [smem:[#allocation45_spill]] }
 0x54e   :  { %v2102_v36 = vadd.f32 %v2895_v45, %v2096_v18  ;;  %v2142_v32 = vmul.f32 %v4631_v8, %v5536_v20  ;;  %v5540_v31 = vstv %s5530_s15  ;;  %v1628_v45 = vrot.slane %v1627_v51, 2  ;;  %s5553_s3 = sld [smem:[#allocation52_spill]] }
 0x54f   :  { %2045 = vrot.lane.b32.xlu1 %v2043_v56, %s5516_s24  ;;  %v4726_v56 = vpop.permute.xlu2 %1768  ;;  %v2132_v15 = vadd.f32 %v2897_v42, %v2126_v40  ;;  %v2899_v58 = vrot.slane %v2157_v2, 9  ;;  %v2118_v1 = vmul.f32 %v2117_v53, %v3931_v43  ;;  %v2900_v22 = vrot.slane %v2172_v55, 9  ;;  %s5551_s24 = sld [smem:[#allocation49_spill]] }
 0x550   :  { %v2103_v6 = vmul.f32 %v2102_v36, %v3883_v11  ;;  %v2898_v23 = vrot.slane %v2142_v32, 9  ;;  %v5542_v42 = vstv %s5533_s17  ;;  %v5544_v43 = vstv %s5535_s11  ;;  %s5554_s4 = sld [smem:[#allocation20_spill]] }
 0x551   :  { %v2133_v13 = vmul.f32 %v2132_v15, %v3773_v12  ;;  %v5546_v11 = vstv %s5537_s25  ;;  %v5547_v54 = vstv %s5538_s19  ;;  %v5548_v18 = vstv %s5539_s20  ;;  %s5562_s15 = sld [smem:[#allocation53_spill]]  ;;  %s5570_s25 = smov 92  }
 0x552   :  { %v2187_v14 = vmul.f32 %v4631_v8, %v5546_v11  ;;  %v2202_v60 = vmul.f32 %v4631_v8, %v5547_v54  ;;  %v2217_v25 = vmul.f32 %v4631_v8, %v5548_v18  ;;  %v1658_v30 = vrot.slane %v1657_v39, 2  ;;  %s5567_s17 = sld [smem:[#allocation28_spill]]  ;;  %s5574_s20 = smov 93  }
 0x553   :  { %2075 = vrot.lane.b32.xlu0 %v2073_v27, %s5525_s0  ;;  %v2156_v27 = vmul.f32 %v4631_v8, %v5540_v31  ;;  %v1630_v32 = vsel %vm5389_vm15, %v1627_v51, %v1628_v45  ;;  %v5555_v31 = vstv %s5549_s23  ;;  %s5559_s0 = smov 94   ;;  %vm5390_vm15 = vcmask 236544   ;;  %s5568_s11 = sld [smem:[#allocation54_spill]] }
 0x554   :  { %v2901_v36 = vrot.slane %v2187_v14, 9  ;;  %v2902_v20 = vrot.slane %v2202_v60, 9  ;;  %s5573_s19 = sld [smem:[#allocation26_spill]] }
 0x555   :  { %2060 = vrot.lane.b32.xlu2 %v2058_v63, %s5528_s13  ;;  %v2171_v63 = vmul.f32 %v4631_v8, %v5542_v42  ;;  %v2162_v40 = vadd.f32 %v2899_v58, %v2156_v27  ;;  %v5557_v27 = vstv %s5550_s8  ;;  %v5558_v42 = vstv %s5551_s24  ;;  %s5561_s13 = sld [smem:[#allocation51_spill]]  ;;  %s5584_s24 = smov 90  }
 0x556   :  { %v2186_v51 = vmul.f32 %v4631_v8, %v5557_v27  ;;  %v5565_v11 = vstv %s5554_s4  ;;  %s5581_s23 = sld [smem:[#allocation33_spill]] }
 0x557   :  { %2090 = vrot.lane.b32.xlu1 %v2088_v29, %s5531_s16  ;;  %v2141_v29 = vmul.f32 %v4631_v8, %v5544_v43  ;;  %v2177_v2 = vadd.f32 %v2900_v22, %v2171_v63  ;;  %v2163_v58 = vmul.f32 %v2162_v40, %v3777_v62  ;;  %v2216_v62 = vmul.f32 %v4631_v8, %v5558_v42  ;;  %s5564_s16 = sld [smem:[#allocation24_spill]] }
 0x558   :  { %v5560_v63 = vstv %s5552_s28  ;;  %v2262_v14 = vmul.f32 %v4631_v8, %v5565_v11  ;;  %v2192_v54 = vadd.f32 %v2901_v36, %v2186_v51  ;;  %s5582_s8 = sld [smem:[#allocation55_spill]] }
 0x559   :  { %v2147_v53 = vadd.f32 %v2898_v23, %v2141_v29  ;;  %v1660_v23 = vsel %vm5391_vm3, %v1657_v39, %v1658_v30  ;;  %v2232_v39 = vmul.f32 %v4631_v8, %v5560_v63  ;;  %v5563_v29 = vstv %s5553_s3  ;;  %s5587_s28 = sld [smem:[#allocation30_spill]]  ;;  %s5588_s3 = smov 79  }
 0x55a   :  { %v2193_v30 = vmul.f32 %v2192_v54, %v4013_v5  ;;  %v5583_v63 = vstv %s5573_s19  ;;  %s5589_s4 = sld [smem:[#allocation35_spill]]  ;;  %vm5699_vm3 = vcmask 1031168  }
 0x55b   :  { %2120 = vrot.lane.b32.xlu0 %v2118_v1, %s5541_s14  ;;  %v2903_v1 = vrot.slane %v2217_v25, 9  ;;  %v2148_v22 = vmul.f32 %v2147_v53, %v3966_v26  ;;  %v2904_v18 = vrot.slane %v2232_v39, 9  ;;  %v2906_v53 = vrot.slane %v2262_v14, 9  ;;  %s5575_s14 = smov 91   ;;  %s5615_s19 = sld [smem:[#allocation61_spill]] }
 0x55c   :  { %v2276_v39 = vmul.f32 %v4631_v8, %v5583_v63  ;;  %v5591_v11 = vstv %s5581_s23  ;;  %s5631_s23 = smov 61  }
 0x55d   :  { %2105 = vrot.lane.b32.xlu2 %v2103_v6, %s5543_s21  ;;  %v2222_v60 = vadd.f32 %v2903_v1, %v2216_v62  ;;  %s5576_s21 = sld [smem:[#allocation32_spill]]  ;;  %v2337_v14 = vmul.f32 %v4631_v8, %v5591_v11 }
 0x55e   :  { %v5592_v54 = vstv %s5582_s8  ;;  %s5632_s8 = smov 62  }
 0x55f   :  { %2135 = vrot.lane.b32.xlu1 %v2133_v13, %s5545_s22  ;;  %v2178_v13 = vmul.f32 %v2177_v2, %v3994_v59  ;;  %s5580_s22 = sld [smem:[#allocation25_spill]] }
 0x563   :  { %2165 = vrot.lane.b32.xlu0 %v2163_v58, %s5556_s12  ;;  %v5572_v58 = vstv %s5564_s16  ;;  %s5593_s12 = sld [smem:[#allocation31_spill]] }
 0x564   :  { %v2261_v1 = vmul.f32 %v4631_v8, %v5572_v58  ;;  %s5602_s16 = sld [smem:[#allocation39_spill]] }
 0x565   :  { %2150 = vrot.lane.b32.xlu2 %v2148_v22, %s5480_s5  ;;  %s5566_s5 = sld [smem:[#allocation23_spill]] }
 0x567   :  { %2180 = vrot.lane.b32.xlu1 %v2178_v13, %s5559_s0  ;;  %v5578_v13 = vstv %s5567_s17  ;;  %s5599_s0 = sld [smem:[#allocation34_spill]] }
 0x568   :  { %v2292_v22 = vmul.f32 %v4631_v8, %v5578_v13  ;;  %v5605_v13 = vstv %s4102_s6  ;;  %s5609_s6 = smov 75   ;;  %s5612_s17 = sld [smem:[#allocation63_spill]] }
 0x56a   :  { %v2908_v42 = vrot.slane %v2292_v22, 9  ;;  %v2397_v22 = vmul.f32 %v4631_v8, %v5605_v13  ;;  %v5610_v63 = vstv %s5602_s16  ;;  %s5651_s16 = sld [smem:[#allocation85_spill]] }
 0x56b   :  { %v5577_v5 = vstv %s5566_s5  ;;  %s5607_s5 = sld [smem:[#allocation67_spill]] }
 0x56d   :  { %2195 = vrot.lane.b32.xlu2 %v2193_v30, %s5574_s20  ;;  %s5617_s20 = sld [smem:[#allocation68_spill]] }
 0x57b   :  { %v1598_v12 = vpop.permute.xlu2 %1597 }
 0x57c   :  { %v1599_v4 = vrot.slane %v1598_v12, 2 }
 0x57e   :  { %v1600_v55 = vsel %vm5392_vm5, %v1598_v12, %v1599_v4  ;;  %v2247_v12 = vmul.f32 %v4631_v8, %v5563_v29  ;;  %v5586_v29 = vstv %s4072_s29  ;;  %s5594_s29 = sld [smem:[#allocation36_spill]]  ;;  %vm5703_vm5 = vcmask 1014784  }
 0x57f   :  { %v1602_v15 = vadd.f32 %v1600_v55, %v4629_v52  ;;  %v2201_v52 = vmul.f32 %v4631_v8, %v5555_v31  ;;  %v2223_v55 = vmul.f32 %v2222_v60, %v4049_v35  ;;  %v2352_v60 = vmul.f32 %v4631_v8, %v5592_v54  ;;  %v5623_v54 = vld [vmem:[#allocation41_spill] sm:$0xff] }
 0x580   :  { %v2905_v2 = vrot.slane %v2247_v12, 9  ;;  %v2306_v12 = vmul.f32 %v4631_v8, %v5586_v29 }
 0x581   :  { %v1632_v6 = vadd.f32 %v1630_v32, %v1602_v15  ;;  %v2207_v45 = vadd.f32 %v2902_v20, %v2201_v52  ;;  %v5569_v15 = vstv %s5561_s13  ;;  %v5571_v20 = vstv %s5562_s15  ;;  %2225 = vrot.lane.b32.xlu1 %v2223_v55, %s5575_s14  ;;  %s5600_s13 = smov 77   ;;  %s5601_s15 = smov 76  }
 0x582   :  { %v2231_v36 = vmul.f32 %v4631_v8, %v5569_v15  ;;  %v2246_v32 = vmul.f32 %v4631_v8, %v5571_v20  ;;  %v2267_v52 = vadd.f32 %v2906_v53, %v2261_v1  ;;  %v2911_v53 = vrot.slane %v2337_v14, 9  ;;  %s5620_s14 = sld [smem:[#allocation65_spill]] }
 0x583   :  { %v1687_v26 = vpop.permute.xlu2 %1686  ;;  %v1662_v59 = vadd.f32 %v1660_v23, %v1632_v6  ;;  %v2208_v25 = vmul.f32 %v2207_v45, %v4031_v33  ;;  %v2277_v33 = vmul.f32 %v4631_v8, %v5577_v5  ;;  %v5579_v6 = vstv %s5568_s11  ;;  %s5613_s11 = smov 64  }
 0x584   :  { %v1688_v43 = vrot.slane %v1687_v26, 2  ;;  %v2237_v35 = vadd.f32 %v2904_v18, %v2231_v36  ;;  %v2307_v23 = vmul.f32 %v4631_v8, %v5579_v6  ;;  %v2252_v31 = vadd.f32 %v2905_v2, %v2246_v32 }
 0x585   :  { %2210 = vrot.lane.b32.xlu0 %v2208_v25, %s5570_s25  ;;  %v2907_v27 = vrot.slane %v2277_v33, 9  ;;  %v5585_v45 = vstv %s5576_s21  ;;  %v2912_v30 = vrot.slane %v2352_v60, 9  ;;  %v5595_v36 = vstv %s5587_s28  ;;  %s5614_s25 = smov 74   ;;  %s5622_s21 = sld [smem:[#allocation69_spill]] }
 0x586   :  { %v1690_v40 = vsel %vm5390_vm15, %v1687_v26, %v1688_v43  ;;  %v2238_v51 = vmul.f32 %v2237_v35, %v4069_v46  ;;  %v2909_v62 = vrot.slane %v2307_v23, 9  ;;  %v2253_v26 = vmul.f32 %v2252_v31, %v4094_v17  ;;  %s5635_s28 = sld [smem:[#allocation70_spill]] }
 0x587   :  { %v4795_v4 = vadd.f32 %v1690_v40, %v1662_v59  ;;  %v2268_v59 = vmul.f32 %v2267_v52, %v3842_v21  ;;  %v2291_v43 = vmul.f32 %v4631_v8, %v5585_v45  ;;  %v5590_v46 = vstv %s5580_s22  ;;  %s5630_s22 = sld [smem:[#allocation66_spill]] }
 0x588   :  { %2255 = vrot.lane.b32.xlu2 %v2253_v26, %s5450_s30  ;;  %v2322_v21 = vmul.f32 %v4631_v8, %v5590_v46  ;;  %v2282_v17 = vadd.f32 %v2907_v27, %v2276_v39  ;;  %v2312_v18 = vadd.f32 %v2909_v62, %v2306_v12  ;;  %v2321_v20 = vmul.f32 %v4631_v8, %v5595_v36  ;;  %s5596_s30 = smov 78  }
 0x589   :  { %2270 = vrot.lane.b32.xlu1 %v2268_v59, %s5588_s3  ;;  %v2297_v40 = vadd.f32 %v2908_v42, %v2291_v43  ;;  %v5597_v32 = vstv %s5589_s4  ;;  %v5598_v1 = vstv %s4090_s10  ;;  %v5604_v33 = vstv %s5594_s29  ;;  %s5606_s10 = sld [smem:[#allocation60_spill]]  ;;  %s5643_s29 = smov 60  }
 0x58a   :  { %v2910_v25 = vrot.slane %v2322_v21, 9  ;;  %v2283_v2 = vmul.f32 %v2282_v17, %v3834_v61  ;;  %v2313_v15 = vmul.f32 %v2312_v18, %v4129_v38  ;;  %v2336_v58 = vmul.f32 %v4631_v8, %v5597_v32  ;;  %s5638_s3 = sld [smem:[#allocation75_spill]] }
 0x58b   :  { %v2298_v55 = vmul.f32 %v2297_v40, %v3888_v24  ;;  %v2351_v5 = vmul.f32 %v4631_v8, %v5598_v1  ;;  %v5603_v61 = vstv %s5593_s12  ;;  %v2382_v35 = vmul.f32 %v4631_v8, %v5604_v33  ;;  %s5639_s4 = sld [smem:[#allocation73_spill]] }
 0x58c   :  { %v2367_v24 = vmul.f32 %v4631_v8, %v5603_v61  ;;  %v2327_v38 = vadd.f32 %v2910_v25, %v2321_v20  ;;  %v2342_v6 = vadd.f32 %v2911_v53, %v2336_v58  ;;  %v5608_v26 = vstv %s5599_s0  ;;  %v5624_v25 = vld [vmem:[#allocation44_spill] sm:$0xff]  ;;  %v5625_v53 = vld [vmem:[#allocation59_spill] sm:$0xff]  ;;  %s5640_s12 = sld [smem:[#allocation84_spill]]  ;;  %s5647_s0 = smov 58  }
 0x58d   :  { %2240 = vrot.lane.b32.xlu0 %v2238_v51, %s5584_s24  ;;  %v2357_v23 = vadd.f32 %v2912_v30, %v2351_v5  ;;  %v2914_v27 = vrot.slane %v2382_v35, 9  ;;  %v2915_v51 = vrot.slane %v2397_v22, 9  ;;  %v2366_v59 = vmul.f32 %v4631_v8, %v5608_v26  ;;  %s5633_s24 = sld [smem:[#allocation72_spill]] }
 0x58e   :  { %v2913_v31 = vrot.slane %v2367_v24, 9  ;;  %v2328_v52 = vmul.f32 %v2327_v38, %v3897_v57  ;;  %v2343_v42 = vmul.f32 %v2342_v6, %v3933_v37  ;;  %v2381_v39 = vmul.f32 %v4631_v8, %v5610_v63 }
 0x58f   :  { %v2358_v62 = vmul.f32 %v2357_v23, %v4164_v47  ;;  %v5611_v45 = vstv %s4133_s26  ;;  %v5616_v57 = vstv %s4250_s9  ;;  %v5618_v29 = vstv %s5606_s10  ;;  %s5621_s26 = sld [smem:[#allocation71_spill]]  ;;  %s5627_s9 = smov 63  }
 0x590   :  { %2300 = vrot.lane.b32.xlu2 %v2298_v55, %s5600_s13  ;;  %v2396_v43 = vmul.f32 %v4631_v8, %v5611_v45  ;;  %v2412_v37 = vmul.f32 %v4631_v8, %v5616_v57  ;;  %v2372_v47 = vadd.f32 %v2913_v31, %v2366_v59  ;;  %v2427_v12 = vmul.f32 %v4631_v8, %v5618_v29  ;;  %s5648_s13 = smov 59   ;;  %s5654_s10 = sld [smem:[#allocation77_spill]] }
 0x591   :  { %2315 = vrot.lane.b32.xlu1 %v2313_v15, %s5601_s15  ;;  %v5619_v46 = vstv %s5607_s5  ;;  %v2387_v17 = vadd.f32 %v2914_v27, %v2381_v39  ;;  %v5626_v55 = vstv %s5612_s17  ;;  %v5628_v36 = vstv %s5615_s19  ;;  %v5641_v27 = vld [vmem:[#allocation62_spill] sm:$0xff]  ;;  %s5649_s15 = sld [smem:[#allocation74_spill]]  ;;  %s5658_s17 = smov 48  }
 0x592   :  { %v2442_v21 = vmul.f32 %v4631_v8, %v5619_v46  ;;  %v2402_v11 = vadd.f32 %v2915_v51, %v2396_v43  ;;  %v2916_v14 = vrot.slane %v2412_v37, 9  ;;  %v2373_v60 = vmul.f32 %v2372_v47, %v5623_v54  ;;  %s5655_s5 = sld [smem:[#allocation86_spill]] }
 0x593   :  { %v2917_v40 = vrot.slane %v2427_v12, 9  ;;  %v2411_v15 = vmul.f32 %v4631_v8, %v5626_v55  ;;  %v2426_v20 = vmul.f32 %v4631_v8, %v5628_v36  ;;  %v5629_v32 = vstv %s5617_s20  ;;  %s5666_s19 = sld [smem:[#allocation78_spill]] }
 0x594   :  { %v2918_v18 = vrot.slane %v2442_v21, 9  ;;  %v2403_v30 = vmul.f32 %v2402_v11, %v5625_v53  ;;  %v2441_v58 = vmul.f32 %v4631_v8, %v5629_v32  ;;  %v5634_v1 = vstv %s5620_s14  ;;  %s5667_s20 = sld [smem:[#allocation87_spill]] }
 0x595   :  { %2285 = vrot.lane.b32.xlu0 %v2283_v2, %s5596_s30  ;;  %v2388_v2 = vmul.f32 %v2387_v17, %v5624_v25  ;;  %v2457_v5 = vmul.f32 %v4631_v8, %v5634_v1  ;;  %v2417_v61 = vadd.f32 %v2916_v14, %v2411_v15  ;;  %v5636_v24 = vstv %s5621_s26  ;;  %s5646_s30 = sld [smem:[#allocation76_spill]] }
 0x596   :  { %v2472_v38 = vmul.f32 %v4631_v8, %v5636_v24  ;;  %v5637_v33 = vstv %s5622_s21  ;;  %v2432_v13 = vadd.f32 %v2917_v40, %v2426_v20  ;;  %v2447_v22 = vadd.f32 %v2918_v18, %v2441_v58  ;;  %s5670_s14 = sld [smem:[#allocation57_spill]]  ;;  %s5673_s21 = smov 45  }
 0x597   :  { %v2487_v35 = vmul.f32 %v4631_v8, %v5637_v33  ;;  %v2919_v6 = vrot.slane %v2457_v5, 9  ;;  %v2418_v23 = vmul.f32 %v2417_v61, %v4273_v3  ;;  %v5644_v59 = vstv %s5633_s24  ;;  %v4967_v61 = vpop.permute.xlu1 %1716  ;;  %s5671_s26 = sld [smem:[#allocation88_spill]] }
 0x598   :  { %2360 = vrot.lane.b32.xlu2 %v2358_v62, %s5613_s11  ;;  %v2920_v31 = vrot.slane %v2472_v38, 9  ;;  %v2433_v51 = vmul.f32 %v2432_v13, %v5641_v27  ;;  %v5642_v62 = vstv %s5630_s22  ;;  %v2471_v63 = vmul.f32 %v4631_v8, %v5644_v59  ;;  %s5661_s11 = smov 46   ;;  %s5676_s22 = smov 43  }
 0x599   :  { %2345 = vrot.lane.b32.xlu1 %v2343_v42, %s5614_s25  ;;  %v2448_v42 = vmul.f32 %v2447_v22, %v4357_v48  ;;  %v2456_v26 = vmul.f32 %v4631_v8, %v5642_v62  ;;  %v5645_v39 = vstv %s5635_s28  ;;  %v5650_v3 = vstv %s5638_s3  ;;  %s5662_s25 = smov 47   ;;  %s5684_s24 = sld [smem:[#allocation81_spill]] }
 0x59a   :  { %v2486_v45 = vmul.f32 %v4631_v8, %v5645_v39  ;;  %v2502_v48 = vmul.f32 %v4631_v8, %v5650_v3  ;;  %v5652_v57 = vstv %s5639_s4  ;;  %v5653_v47 = vstv %s5640_s12  ;;  %s5689_s28 = smov 31   ;;  %s5690_s3 = smov 42  }
 0x59b   :  { %v2462_v43 = vadd.f32 %v2919_v6, %v2456_v26  ;;  %v2517_v37 = vmul.f32 %v4631_v8, %v5652_v57  ;;  %v2532_v29 = vmul.f32 %v4631_v8, %v5653_v47  ;;  %v2477_v12 = vadd.f32 %v2920_v31, %v2471_v63  ;;  %s5694_s12 = sld [smem:[#allocation91_spill]] }
 0x59c   :  { %v2922_v21 = vrot.slane %v2502_v48, 9  ;;  %v5656_v40 = vstv %s5646_s30  ;;  %v5659_v25 = vstv %s5649_s15  ;;  %v5660_v53 = vstv %s5651_s16  ;;  %s5700_s30 = smov 28   ;;  %s5706_s15 = smov 27  }
 0x59d   :  { %2330 = vrot.lane.b32.xlu0 %v2328_v52, %s5609_s6  ;;  %v2921_v52 = vrot.slane %v2487_v35, 9  ;;  %v2463_v17 = vmul.f32 %v2462_v43, %v4329_v49  ;;  %v2923_v11 = vrot.slane %v2517_v37, 9  ;;  %v2924_v14 = vrot.slane %v2532_v29, 9  ;;  %s5657_s6 = sld [smem:[#allocation56_spill]]  ;;  %v1935_v49 = vld [vmem:[#allocation2] sm:$0xf] }
 0x59e   :  { %v2478_v54 = vmul.f32 %v2477_v12, %v4402_v9  ;;  %v2501_v18 = vmul.f32 %v4631_v8, %v5656_v40  ;;  %v5663_v9 = vstv %s4591_s7  ;;  %v5664_v15 = vstv %s5654_s10  ;;  %s5669_s7 = sld [smem:[#allocation79_spill]]  ;;  %s3229_s16 = smov [#allocation9]  }
 0x59f   :  { %v2492_v46 = vadd.f32 %v2921_v52, %v2486_v45  ;;  %v2547_v36 = vmul.f32 %v4631_v8, %v5664_v15  ;;  %v5665_v20 = vstv %s5655_s5  ;;  %v4965_v5 = vpop.permute.xlu2 %1970  ;;  %v5672_v31 = vstv %s4593_s27  ;;  %s5682_s27 = sld [smem:[#allocation80_spill]]  ;;  %s2706_s10 = sshll.u32 %s3229_s16, 4  ;;  %s2707_s10 = int_to_ptr.vmem [resolvable:$true] %s2706_s10 }
 0x5a0   :  { %2405 = vrot.lane.b32.xlu2 %v2403_v30, %s5631_s23  ;;  %v2531_v30 = vmul.f32 %v4631_v8, %v5660_v53  ;;  %v2507_v55 = vadd.f32 %v2922_v21, %v2501_v18  ;;  %v2577_v32 = vmul.f32 %v4631_v8, %v5665_v20  ;;  %v2561_v52 = vmul.f32 %v4631_v8, %v5672_v31  ;;  %s5677_s23 = smov 44   ;;  %v5686_v18 = vld [vmem:[#allocation58_spill] sm:$0xff]  ;;  %v5696_v31 = vld [vmem:[#allocation90_spill] sm:$0xff] }
 0x5a1   :  { %2390 = vrot.lane.b32.xlu1 %v2388_v2, %s5632_s8  ;;  %v2516_v2 = vmul.f32 %v4631_v8, %v5659_v25  ;;  %v2925_v13 = vrot.slane %v2547_v36, 9  ;;  %v5675_v62 = vstv %s5667_s20  ;;  %v5679_v26 = vstv %s4596_s2  ;;  %s5683_s8 = sld [smem:[#allocation89_spill]] }
 0x5a2   :  { %v2537_v1 = vadd.f32 %v2924_v14, %v2531_v30  ;;  %v2508_v35 = vmul.f32 %v2507_v55, %v4460_v44  ;;  %v2927_v22 = vrot.slane %v2577_v32, 9  ;;  %v2576_v44 = vmul.f32 %v4631_v8, %v5675_v62  ;;  %s5002_s2 = sld [smem:[#allocation8 + $0x30]] }
 0x5a3   :  { %v2522_v58 = vadd.f32 %v2923_v11, %v2516_v2  ;;  %v5668_v24 = vstv %s5657_s6  ;;  %v2607_v59 = vmul.f32 %v4631_v8, %v5679_v26  ;;  %v5680_v39 = vstv %s5670_s14 }
 0x5a4   :  { %v1937_v38 = vmul.f32 %v1935_v49, %v5668_v24  ;;  %v1936_v45 = vmul.f32 %v1935_v49, %v5680_v39  ;;  %v5681_v3 = vstv %s5671_s26  ;;  %v2582_v57 = vadd.f32 %v2927_v22, %v2576_v44 }
 0x5a5   :  { %2375 = vrot.lane.b32.xlu0 %v2373_v60, %s5627_s9  ;;  %v2493_v60 = vmul.f32 %v2492_v46, %v4381_v19  ;;  %v2562_v19 = vmul.f32 %v4631_v8, %v5663_v9  ;;  %v2523_v6 = vmul.f32 %v2522_v58, %v4426_v34  ;;  %s4984_s9 = sld [smem:[#allocation8 + $0x61]]  ;;  %v5678_v34 = vstv %s5669_s7 }
 0x5a6   :  { %v2884_v27 = vrot.slane %v1937_v38, 9  ;;  %v2622_v48 = vmul.f32 %v4631_v8, %v5681_v3  ;;  %v2929_v46 = vrot.slane %v2607_v59, 9  ;;  %v2583_v14 = vmul.f32 %v2582_v57, %v4570_v16 }
 0x5a7   :  { %v2926_v33 = vrot.slane %v2562_v19, 9  ;;  %v4999_v37 = vpop.permute.xlu2 %2015  ;;  %v5687_v2 = vstv %s5682_s27  ;;  %v5691_v19 = vstv %s5684_s24  ;;  %vm5693_vm15 = vcmask 1039360  }
 0x5a8   :  { %2450 = vrot.lane.b32.xlu2 %v2448_v42, %s5647_s0  ;;  %v1942_v47 = vadd.f32 %v2884_v27, %v1936_v45  ;;  %v2591_v53 = vmul.f32 %v4631_v8, %v5687_v2  ;;  %v2637_v55 = vmul.f32 %v4631_v8, %v5691_v19  ;;  %v5695_v58 = vstv %s5694_s12  ;;  %s5701_s0 = smov 30  }
 0x5a9   :  { %2435 = vrot.lane.b32.xlu1 %v2433_v51, %s5648_s13  ;;  %v5674_v51 = vstv %s5666_s19  ;;  %v2567_v63 = vadd.f32 %v2926_v33, %v2561_v52  ;;  %v1972_v38 = vrot.slane %v4965_v5, 2  ;;  %v1753_v22 = vstv %s5002_s2  ;;  %s3228_s13 = smov 26   ;;  %s5742_s19 = smov 128  }
 0x5aa   :  { %v2546_v42 = vmul.f32 %v4631_v8, %v5674_v51  ;;  %v1943_v25 = vmul.f32 %v1942_v47, %v5686_v18  ;;  %v2651_v27 = vmul.f32 %v4631_v8, %v1753_v22  ;;  %v1770_v51 = vrot.slane %v4726_v56, 6 }
 0x5ab   :  { %v2568_v21 = vmul.f32 %v2567_v63, %v4613_v41  ;;  %v5688_v41 = vstv %s5683_s8  ;;  %v1755_v49 = vstv %s4984_s9  ;;  %v1754_v26 = vmul.f32 %v4212_v10, %v1753_v22 }
 0x5ac   :  { %v2552_v43 = vadd.f32 %v2925_v13, %v2546_v42  ;;  %v2621_v30 = vmul.f32 %v4631_v8, %v5688_v41  ;;  %v2652_v16 = vmul.f32 %v4631_v8, %v1755_v49  ;;  %v1756_v24 = vmul.f32 %v4212_v10, %v1755_v49 }
 0x5ad   :  { %2420 = vrot.lane.b32.xlu0 %v2418_v23, %s5643_s29  ;;  %v2538_v23 = vmul.f32 %v2537_v1, %v4549_v28  ;;  %v2592_v28 = vmul.f32 %v4631_v8, %v5678_v34  ;;  %v1944_v1 = vadd.f32 %v1943_v25, %v5695_v58  ;;  %s5697_s29 = smov 29  }
 0x5ae   :  { %v2553_v11 = vmul.f32 %v2552_v43, %v4498_v50  ;;  %v5020_v50 = vpop.permute.xlu0 %1746  ;;  %v2932_v33 = vrot.slane %v2652_v16, 9  ;;  %v2881_v44 = vrot.slane %v1756_v24, 9  ;;  %v2017_v43 = vrot.slane %v4999_v37, 2 }
 0x5af   :  { %v2928_v12 = vrot.slane %v2592_v28, 9  ;;  %v2061_v20 = vpop.permute.xlu2 %2060 }
 0x5b0   :  { %2495 = vrot.lane.b32.xlu2 %v2493_v60, %s5661_s11  ;;  %v5685_v60 = vstv %s4603_s1  ;;  %s5692_s1 = sld [smem:[#allocation82_spill]]  ;;  %v2062_v18 = vrot.slane %v2061_v20, 2 }
 0x5b1   :  { %2480 = vrot.lane.b32.xlu1 %v2478_v54, %s5662_s25  ;;  %v1956_v29 = vpop.permute.xlu1 %1955  ;;  %v2606_v40 = vmul.f32 %v4631_v8, %v5685_v60  ;;  %v2597_v15 = vadd.f32 %v2928_v12, %v2591_v53  ;;  %s5741_s25 = smov 8  }
 0x5b2   :  { %v1957_v54 = vrot.slane %v1956_v29, 2 }
 0x5b3   :  { %v2612_v9 = vadd.f32 %v2929_v46, %v2606_v40  ;;  %v5704_v46 = vld [vmem:[#allocation83_spill] sm:$0xff] }
 0x5b4   :  { %v1958_v32 = vsel %vm5693_vm15, %v1956_v29, %v1957_v54  ;;  %vm1771_vm15 = vcmask 834560  }
 0x5b5   :  { %2465 = vrot.lane.b32.xlu0 %v2463_v17, %s5658_s17  ;;  %v2930_v17 = vrot.slane %v2622_v48, 9  ;;  %v1960_v13 = vadd.f32 %v1958_v32, %v1944_v1  ;;  %v1761_v48 = vadd.f32 %v2881_v44, %v1754_v26  ;;  %s5738_s17 = sld [smem:[#allocation92_spill]] }
 0x5b6   :  { %v5698_v42 = vstv %s5692_s1  ;;  %v1986_v34 = vpop.permute.xlu0 %1985 }
 0x5b7   :  { %v2627_v36 = vadd.f32 %v2930_v17, %v2621_v30  ;;  %v2636_v62 = vmul.f32 %v4631_v8, %v5698_v42  ;;  %v1987_v63 = vrot.slane %v1986_v34, 2  ;;  %v2106_v39 = vpop.permute.xlu2 %2105  ;;  %v1772_v8 = vsel %vm1771_vm15, %v1770_v51, %v4726_v56 }
 0x5b8   :  { %2540 = vrot.lane.b32.xlu2 %v2538_v23, %s5676_s22  ;;  %v2598_v23 = vmul.f32 %v2597_v15, %v4512_v0  ;;  %v2657_v0 = vadd.f32 %v2932_v33, %v2651_v27  ;;  %v1774_v12 = vmul.f32 %v1772_v8, %v1761_v48  ;;  %v2018_v17 = vsel %vm5705_vm1, %v4999_v37, %v2017_v43 }
 0x5b9   :  { %2525 = vrot.lane.b32.xlu1 %v2523_v6, %s5677_s23  ;;  %v2931_v6 = vrot.slane %v2637_v55, 9  ;;  %v2628_v52 = vmul.f32 %v2627_v36, %v5696_v31  ;;  %v2001_v45 = vpop.permute.xlu1 %2000  ;;  %vm5708_vm15 = vcmask 916480   ;;  %v2107_v15 = vrot.slane %v2106_v39, 2 }
 0x5ba   :  { %v2002_v3 = vrot.slane %v2001_v45, 2  ;;  %v2658_v57 = vmul.f32 %v2657_v0, %v1772_v8  ;;  %vm5710_vm1 = vcmask 900096  }
 0x5bb   :  { %v2642_v59 = vadd.f32 %v2931_v6, %v2636_v62  ;;  %s2708_s11 = sshll.u32 %s5738_s17, 4  ;;  %s2709_s11 = int_to_ptr.hbm [resolvable:$true] %s2708_s11 }
 0x5bc   :  { %v2003_v29 = vsel %vm5703_vm5, %v2001_v45, %v2002_v3  ;;  %vm5707_vm5 = vcmask 998400  }
 0x5bd   :  { %2510 = vrot.lane.b32.xlu0 %v2508_v35, %s5673_s21  ;;  %v2613_v35 = vmul.f32 %v2612_v9, %v4621_v7  ;;  %v1973_v7 = vsel %vm5699_vm3, %v4965_v5, %v1972_v38  ;;  %vm5702_vm3 = vcmask 1022976  }
 0x5be   :  { %v1975_v28 = vadd.f32 %v1973_v7, %v1960_v13  ;;  %v1988_v5 = vsel %vm5702_vm3, %v1986_v34, %v1987_v63  ;;  %v2031_v56 = vpop.permute.xlu0 %2030  ;;  %vm5709_vm3 = vcmask 908288  }
 0x5bf   :  { %v2151_v54 = vpop.permute.xlu2 %2150  ;;  %v2063_v30 = vsel %vm5709_vm3, %v2061_v20, %v2062_v18  ;;  %vm5714_vm3 = vcmask 867328  }
 0x5c0   :  { %2585 = vrot.lane.b32.xlu2 %v2583_v14, %s5689_s28  ;;  %v1990_v47 = vadd.f32 %v1988_v5, %v1975_v28  ;;  %v2032_v14 = vrot.slane %v2031_v56, 2  ;;  %v2152_v6 = vrot.slane %v2151_v54, 2 }
 0x5c1   :  { %2555 = vrot.lane.b32.xlu1 %v2553_v11, %s5690_s3  ;;  %v2046_v60 = vpop.permute.xlu1 %2045 }
 0x5c2   :  { %v2005_v10 = vadd.f32 %v2003_v29, %v1990_v47  ;;  %v2047_v40 = vrot.slane %v2046_v60, 2  ;;  %v2033_v25 = vsel %vm5707_vm5, %v2031_v56, %v2032_v14  ;;  %vm5712_vm5 = vcmask 883712  }
 0x5c3   :  { %v2108_v24 = vsel %vm5712_vm5, %v2106_v39, %v2107_v15  ;;  %v2153_v51 = vsel %vm765_vm6, %v2151_v54, %v2152_v6  ;;  %vm5717_vm5 = vcmask 760832   ;;  %vm5718_vm6 = vcmask 752640  }
 0x5c4   :  { %v2020_v11 = vadd.f32 %v2018_v17, %v2005_v10  ;;  %v2048_v53 = vsel %vm5708_vm15, %v2046_v60, %v2047_v40  ;;  %vm5713_vm15 = vcmask 875520  }
 0x5c5   :  { %2570 = vrot.lane.b32.xlu0 %v2568_v21, %s5483_s18  ;;  %v2643_v21 = vmul.f32 %v2642_v59, %v5704_v46 }
 0x5c6   :  { %v2035_v2 = vadd.f32 %v2033_v25, %v2020_v11  ;;  %v2076_v49 = vpop.permute.xlu0 %2075 }
 0x5c7   :  { %v2077_v16 = vrot.slane %v2076_v49, 2  ;;  %v2196_v9 = vpop.permute.xlu2 %2195 }
 0x5c8   :  { %2630 = vrot.lane.b32.xlu2 %v2628_v52, %s5700_s30  ;;  %v2050_v41 = vadd.f32 %v2048_v53, %v2035_v2  ;;  %v2197_v63 = vrot.slane %v2196_v9, 2 }
 0x5c9   :  { %2600 = vrot.lane.b32.xlu1 %v2598_v23, %s5701_s0  ;;  %v2091_v19 = vpop.permute.xlu1 %2090  ;;  %v2078_v36 = vsel %vm5710_vm1, %v2076_v49, %v2077_v16  ;;  %vm5716_vm1 = vcmask 769024  }
 0x5ca   :  { %v2065_v37 = vadd.f32 %v2063_v30, %v2050_v41  ;;  %v2092_v55 = vrot.slane %v2091_v19, 2  ;;  %v2198_v8 = vsel %vm5717_vm5, %v2196_v9, %v2197_v63  ;;  %vm5723_vm5 = vcmask 629760  }
 0x5cc   :  { %v2080_v32 = vadd.f32 %v2078_v36, %v2065_v37  ;;  %v2093_v58 = vsel %vm5711_vm2, %v2091_v19, %v2092_v55  ;;  %vm5715_vm2 = vcmask 777216  }
 0x5cd   :  { %2615 = vrot.lane.b32.xlu0 %v2613_v35, %s5697_s29 }
 0x5ce   :  { %v2095_v1 = vadd.f32 %v2093_v58, %v2080_v32  ;;  %v2121_v38 = vpop.permute.xlu0 %2120 }
 0x5cf   :  { %v2122_v35 = vrot.slane %v2121_v38, 2 }
 0x5d0   :  { %1776 = vrot.lane.b32.xlu2 %v1774_v12, %s3228_s13  ;;  %v2110_v33 = vadd.f32 %v2108_v24, %v2095_v1 }
 0x5d1   :  { %2645 = vrot.lane.b32.xlu1 %v2643_v21, %s5706_s15  ;;  %v2136_v20 = vpop.permute.xlu1 %2135  ;;  %v2123_v23 = vsel %vm5713_vm15, %v2121_v38, %v2122_v35  ;;  %vm5719_vm15 = vcmask 744448  }
 0x5d2   :  { %v2137_v22 = vrot.slane %v2136_v20, 2  ;;  %v2125_v31 = vadd.f32 %v2123_v23, %v2110_v33 }
 0x5d4   :  { %v2138_v52 = vsel %vm5714_vm3, %v2136_v20, %v2137_v22  ;;  %vm5720_vm3 = vcmask 736256  }
 0x5d5   :  { %2660 = vrot.lane.b32.xlu0 %v2658_v57, %s3228_s13  ;;  %v2140_v27 = vadd.f32 %v2138_v52, %v2125_v31 }
 0x5d6   :  { %v2166_v42 = vpop.permute.xlu0 %2165 }
 0x5d7   :  { %v2155_v62 = vadd.f32 %v2153_v51, %v2140_v27  ;;  %v2167_v44 = vrot.slane %v2166_v42, 2 }
 0x5d9   :  { %v2181_v0 = vpop.permute.xlu1 %2180  ;;  %v2168_v28 = vsel %vm5715_vm2, %v2166_v42, %v2167_v44  ;;  %vm5721_vm2 = vcmask 646144  }
 0x5da   :  { %v2182_v34 = vrot.slane %v2181_v0, 2  ;;  %v2170_v26 = vadd.f32 %v2168_v28, %v2155_v62 }
 0x5dc   :  { %v2183_v59 = vsel %vm5716_vm1, %v2181_v0, %v2182_v34  ;;  %vm5722_vm1 = vcmask 637952  }
 0x5dd   :  { %v2185_v39 = vadd.f32 %v2183_v59, %v2170_v26 }
 0x5df   :  { %v2200_v5 = vadd.f32 %v2198_v8, %v2185_v39 }
 0x5e2   :  { %v2256_v13 = vpop.permute.xlu2 %2255 }
 0x5e3   :  { %v2257_v10 = vrot.slane %v2256_v13, 2 }
 0x5e5   :  { %v2258_v40 = vsel %vm975_vm12, %v2256_v13, %v2257_v10  ;;  %vm5724_vm12 = vcmask 613376  }
 0x5ea   :  { %v2301_v7 = vpop.permute.xlu2 %2300 }
 0x5eb   :  { %v2302_v41 = vrot.slane %v2301_v7, 2 }
 0x5ed   :  { %v2303_v55 = vsel %vm5723_vm5, %v2301_v7, %v2302_v41 }
 0x5f2   :  { %v2361_v48 = vpop.permute.xlu2 %2360 }
 0x5f3   :  { %v2226_v43 = vpop.permute.xlu1 %2225  ;;  %v2362_v35 = vrot.slane %v2361_v48, 2 }
 0x5f4   :  { %v2227_v57 = vrot.slane %v2226_v43, 2 }
 0x5f5   :  { %v2363_v23 = vsel %vm1176_vm14, %v2361_v48, %v2362_v35  ;;  %vm5725_vm14 = vcmask 474112  }
 0x5f6   :  { %v2228_v29 = vsel %vm5719_vm15, %v2226_v43, %v2227_v57  ;;  %vm5732_vm15 = vcmask 261120  }
 0x5f7   :  { %v2211_v45 = vpop.permute.xlu0 %2210 }
 0x5f8   :  { %v2212_v3 = vrot.slane %v2211_v45, 2 }
 0x5fa   :  { %v2213_v47 = vsel %vm5718_vm6, %v2211_v45, %v2212_v3  ;;  %v2406_v56 = vpop.permute.xlu2 %2405  ;;  %vm5731_vm6 = vcmask 343040  }
 0x5fb   :  { %v2215_v12 = vadd.f32 %v2213_v47, %v2200_v5  ;;  %v2271_v11 = vpop.permute.xlu1 %2270  ;;  %v2407_v44 = vrot.slane %v2406_v56, 2 }
 0x5fc   :  { %v2272_v14 = vrot.slane %v2271_v11, 2 }
 0x5fd   :  { %v2230_v21 = vadd.f32 %v2228_v29, %v2215_v12  ;;  %v2408_v26 = vsel %vm1273_vm7, %v2406_v56, %v2407_v44  ;;  %v1718_v56 = vrot.slane %v4967_v61, 2  ;;  %vm1779_vm7 = vcmask 211968  }
 0x5fe   :  { %v2273_v18 = vsel %vm5721_vm2, %v2271_v11, %v2272_v14  ;;  %vm5734_vm2 = vcmask 244736  }
 0x5ff   :  { %v2241_v46 = vpop.permute.xlu0 %2240 }
 0x600   :  { %v2242_v17 = vrot.slane %v2241_v46, 2 }
 0x602   :  { %v2243_v54 = vsel %vm5720_vm3, %v2241_v46, %v2242_v17  ;;  %v2451_v49 = vpop.permute.xlu2 %2450  ;;  %vm5733_vm3 = vcmask 252928  }
 0x603   :  { %v2245_v60 = vadd.f32 %v2243_v54, %v2230_v21  ;;  %v2316_v37 = vpop.permute.xlu1 %2315  ;;  %v2452_v48 = vrot.slane %v2451_v49, 2 }
 0x604   :  { %v2317_v16 = vrot.slane %v2316_v37, 2 }
 0x605   :  { %v2260_v25 = vadd.f32 %v2258_v40, %v2245_v60  ;;  %v2453_v29 = vsel %vm5725_vm14, %v2451_v49, %v2452_v48 }
 0x606   :  { %v2318_v15 = vsel %vm1094_vm4, %v2316_v37, %v2317_v16  ;;  %vm1719_vm4 = vcmask 228352  }
 0x607   :  { %v2286_v2 = vpop.permute.xlu0 %2285  ;;  %v2275_v53 = vadd.f32 %v2273_v18, %v2260_v25  ;;  %v1748_v18 = vrot.slane %v5020_v50, 2  ;;  %v1720_v25 = vsel %vm1719_vm4, %v4967_v61, %v1718_v56 }
 0x608   :  { %v2287_v30 = vrot.slane %v2286_v2, 2 }
 0x60a   :  { %v2288_v9 = vsel %vm5722_vm1, %v2286_v2, %v2287_v30  ;;  %v2496_v24 = vpop.permute.xlu2 %2495  ;;  %vm5735_vm1 = vcmask 236544  }
 0x60b   :  { %v2290_v19 = vadd.f32 %v2288_v9, %v2275_v53  ;;  %v2346_v38 = vpop.permute.xlu1 %2345  ;;  %v2497_v54 = vrot.slane %v2496_v24, 2  ;;  %v1722_v53 = vadd.f32 %v1720_v25, %v4795_v4 }
 0x60c   :  { %v2347_v33 = vrot.slane %v2346_v38, 2 }
 0x60d   :  { %v2305_v36 = vadd.f32 %v2303_v55, %v2290_v19 }
 0x60e   :  { %v2348_v22 = vsel %vm1154_vm13, %v2346_v38, %v2347_v33  ;;  %vm5726_vm13 = vcmask 392192  }
 0x60f   :  { %v2331_v32 = vpop.permute.xlu0 %2330  ;;  %v2320_v58 = vadd.f32 %v2318_v15, %v2305_v36 }
 0x610   :  { %v2332_v1 = vrot.slane %v2331_v32, 2 }
 0x612   :  { %v2333_v13 = vsel %vm5724_vm12, %v2331_v32, %v2332_v1  ;;  %v2541_v51 = vpop.permute.xlu2 %2540 }
 0x613   :  { %v2335_v20 = vadd.f32 %v2333_v13, %v2320_v58  ;;  %v2391_v42 = vpop.permute.xlu1 %2390 }
 0x614   :  { %v2392_v62 = vrot.slane %v2391_v42, 2 }
 0x615   :  { %v2350_v6 = vadd.f32 %v2348_v22, %v2335_v20 }
 0x616   :  { %v2393_v34 = vsel %vm1243_vm9, %v2391_v42, %v2392_v62  ;;  %vm5727_vm9 = vcmask 375808  }
 0x617   :  { %v2376_v31 = vpop.permute.xlu0 %2375  ;;  %v2365_v52 = vadd.f32 %v2363_v23, %v2350_v6  ;;  %v2498_v41 = vsel %vm5727_vm9, %v2496_v24, %v2497_v54  ;;  %v2542_v24 = vrot.slane %v2541_v51, 2 }
 0x618   :  { %v2377_v27 = vrot.slane %v2376_v31, 2 }
 0x61a   :  { %v2378_v7 = vsel %vm1213_vm10, %v2376_v31, %v2377_v27  ;;  %v2586_v45 = vpop.permute.xlu2 %2585  ;;  %vm1749_vm10 = vcmask 220160  }
 0x61b   :  { %v2380_v0 = vadd.f32 %v2378_v7, %v2365_v52  ;;  %v2436_v8 = vpop.permute.xlu1 %2435  ;;  %v1750_v19 = vsel %vm1749_vm10, %v5020_v50, %v1748_v18  ;;  %v2587_v52 = vrot.slane %v2586_v45, 2 }
 0x61c   :  { %v2437_v3 = vrot.slane %v2436_v8, 2  ;;  %v1752_v36 = vadd.f32 %v1750_v19, %v1722_v53 }
 0x61d   :  { %v2395_v28 = vadd.f32 %v2393_v34, %v2380_v0  ;;  %v2588_v34 = vsel %vm5733_vm3, %v2586_v45, %v2587_v52 }
 0x61e   :  { %v2438_v57 = vsel %vm1333_vm11, %v2436_v8, %v2437_v3  ;;  %vm5729_vm11 = vcmask 359424  }
 0x61f   :  { %v2421_v59 = vpop.permute.xlu0 %2420  ;;  %v2410_v63 = vadd.f32 %v2408_v26, %v2395_v28 }
 0x620   :  { %v2422_v39 = vrot.slane %v2421_v59, 2 }
 0x622   :  { %v2423_v43 = vsel %vm1303_vm8, %v2421_v59, %v2422_v39  ;;  %v5085_v10 = vpop.permute.xlu2 %2630  ;;  %vm5728_vm8 = vcmask 367616  }
 0x623   :  { %v2425_v5 = vadd.f32 %v2423_v43, %v2410_v63  ;;  %v2481_v17 = vpop.permute.xlu1 %2480  ;;  %v2632_v39 = vrot.slane %v5085_v10, 2 }
 0x624   :  { %v2482_v11 = vrot.slane %v2481_v17, 2 }
 0x625   :  { %v2440_v47 = vadd.f32 %v2438_v57, %v2425_v5 }
 0x626   :  { %v2483_v40 = vsel %vm1421_vm0, %v2481_v17, %v2482_v11  ;;  %vm5730_vm0 = vcmask 351232  }
 0x627   :  { %v2466_v12 = vpop.permute.xlu0 %2465  ;;  %v2455_v46 = vadd.f32 %v2453_v29, %v2440_v47  ;;  %v2543_v20 = vsel %vm5730_vm0, %v2541_v51, %v2542_v24  ;;  %v2633_v47 = vsel %vm1719_vm4, %v5085_v10, %v2632_v39 }
 0x628   :  { %v2467_v21 = vrot.slane %v2466_v12, 2 }
 0x62a   :  { %v2468_v14 = vsel %vm5726_vm13, %v2466_v12, %v2467_v21  ;;  %v1777_v37 = vpop.permute.xlu2 %1776  ;;  %vm5737_vm13 = vcmask 1043456  }
 0x62b   :  { %v2470_v60 = vadd.f32 %v2468_v14, %v2455_v46  ;;  %v2526_v9 = vpop.permute.xlu1 %2525  ;;  %v1778_v55 = vrot.slane %v1777_v37, 2 }
 0x62c   :  { %v2527_v15 = vrot.slane %v2526_v9, 2 }
 0x62d   :  { %v2485_v2 = vadd.f32 %v2483_v40, %v2470_v60  ;;  %v1780_v32 = vsel %vm1779_vm7, %v1777_v37, %v1778_v55 }
 0x62e   :  { %v2528_v4 = vsel %vm5729_vm11, %v2526_v9, %v2527_v15  ;;  %v1782_v58 = vadd.f32 %v1780_v32, %v1752_v36  ;;  %v5736_v9 = vld [vmem:[#allocation13_spill] sm:$0xff]  ;;  %vm5740_vm11 = vmmov %vm5737_vm13 }
 0x62f   :  { %v2511_v30 = vpop.permute.xlu0 %2510  ;;  %v2500_v16 = vadd.f32 %v2498_v41, %v2485_v2 }
 0x630   :  { %v2512_v49 = vrot.slane %v2511_v30, 2  ;;  %v2882_v38 = vmul.f32 -1.442695, %v1782_v58 }
 0x632   :  { %v2513_v61 = vsel %vm5728_vm8, %v2511_v30, %v2512_v49  ;;  %3044 = vpow2.f32 %v2882_v38  ;;  %v1802_v30 = vld [vmem:[#allocation4] sm:$0xff] }
 0x633   :  { %v2515_v1 = vadd.f32 %v2513_v61, %v2500_v16  ;;  %v2556_v13 = vpop.permute.xlu1 %2555  ;;  %v1803_v19 = vmul.f32 %v1802_v30, %v5736_v9 }
 0x634   :  { %v2557_v22 = vrot.slane %v2556_v13, 2 }
 0x635   :  { %v2530_v33 = vadd.f32 %v2528_v4, %v2515_v1 }
 0x636   :  { %v2558_v23 = vsel %vm5731_vm6, %v2556_v13, %v2557_v22 }
 0x637   :  { %v2571_v35 = vpop.permute.xlu0 %2570  ;;  %v2545_v6 = vadd.f32 %v2543_v20, %v2530_v33 }
 0x638   :  { %v2572_v50 = vrot.slane %v2571_v35, 2  ;;  %v3045_v42 = vpop.eup %3044 }
 0x639   :  { %v2560_v31 = vadd.f32 %v2558_v23, %v2545_v6  ;;  %v1786_v44 = vadd.f32 1.0, %v3045_v42  ;;  %v2685_v6 = vld [vmem:[#allocation4 + $0x8] sm:$0xff] }
 0x63a   :  { %v2573_v27 = vsel %vm5732_vm15, %v2571_v35, %v2572_v50 }
 0x63b   :  { %v2575_v62 = vadd.f32 %v2573_v27, %v2560_v31  ;;  %v2601_v0 = vpop.permute.xlu1 %2600  ;;  %3046 = vrcp.f32 %v1786_v44  ;;  %v1798_v17 = vand.u32 2147483648, %v1786_v44  ;;  %v1796_v14 = vand.u32 2147483647, %v1786_v44  ;;  %v5739_v27 = vld [vmem:[#allocation64_spill] sm:$0xff] }
 0x63c   :  { %v2602_v26 = vrot.slane %v2601_v0, 2  ;;  %vm1792_vm12 = vweird.f32 %v1786_v44  ;;  %v2686_v42 = vmul.f32 %v2685_v6, %v5739_v27 }
 0x63d   :  { %v2590_v51 = vadd.f32 %v2588_v34, %v2575_v62  ;;  %v1799_v18 = vor.u32 1.1754944e-38, %v1798_v17  ;;  %vm1797_vm4 = vcmp.eq.f32.partialorder %v1796_v14, 8.507059e+37 }
 0x63e   :  { %v2603_v59 = vsel %vm5734_vm2, %v2601_v0, %v2602_v26 }
 0x63f   :  { %v2616_v7 = vpop.permute.xlu0 %2615  ;;  %v2605_v63 = vadd.f32 %v2603_v59, %v2590_v51 }
 0x640   :  { %v2617_v28 = vrot.slane %v2616_v7, 2 }
 0x641   :  { %v3047_v48 = vpop.eup %3046 }
 0x642   :  { %v2618_v8 = vsel %vm5735_vm1, %v2616_v7, %v2617_v28  ;;  %v1788_v5 = vmul.f32 %v3047_v48, %v1786_v44  ;;  %vm1793_vm5 = vweird.f32 %v3047_v48 }
 0x643   :  { %v2620_v3 = vadd.f32 %v2618_v8, %v2605_v63  ;;  %v2646_v57 = vpop.permute.xlu1 %2645  ;;  %vm1794_vm14 = vmor %vm1792_vm12, %vm1793_vm5 }
 0x644   :  { %v2647_v29 = vrot.slane %v2646_v57, 2  ;;  %v1789_v12 = vsub.f32 1.0, %v1788_v5 }
 0x645   :  { %v2635_v46 = vadd.f32 %v2633_v47, %v2620_v3 }
 0x646   :  { %v2648_v21 = vsel %vm1749_vm10, %v2646_v57, %v2647_v29  ;;  %v1790_v11 = vmul.f32 %v3047_v48, %v1789_v12 }
 0x647   :  { %v2661_v43 = vpop.permute.xlu0 %2660  ;;  %v2650_v56 = vadd.f32 %v2648_v21, %v2635_v46 }
 0x648   :  { %v2662_v45 = vrot.slane %v2661_v43, 2  ;;  %v1791_v40 = vadd.f32 %v3047_v48, %v1790_v11 }
 0x64a   :  { %v2663_v54 = vsel %vm1779_vm7, %v2661_v43, %v2662_v45  ;;  %v1795_v10 = vsel %vm1794_vm14, %v3047_v48, %v1791_v40 }
 0x64b   :  { %v2665_v60 = vadd.f32 %v2663_v54, %v2650_v56  ;;  %v1800_v2 = vsel %vm1797_vm4, %v1799_v18, %v1795_v10 }
 0x64c   :  { %v1805_v53 = vperm.slane %v1800_v2, 0  ;;  %v1806_v41 = vperm.slane %v1800_v2, 2 }
 0x64d   :  { %v2933_v25 = vmul.f32 -1.442695, %v2665_v60 }
 0x64e   :  { %v1810_v49 = vperm.slane %v1806_v41, 0  ;;  %v1809_v37 = vperm.slane %v1805_v53, 0 }
 0x64f   :  { %3048 = vpow2.f32 %v2933_v25 }
 0x650   :  { %v1813_v16 = vrot.slane %v1810_v49, 4 }
 0x652   :  { %v1814_v15 = vsel %vm5737_vm13, %v1809_v37, %v1813_v16 }
 0x653   :  { %v1816_v61 = vmul.f32 %v1814_v15, %v1803_v19 }
 0x655   :  { %v3049_v55 = vpop.eup %3048  ;;  %1817 = vst [vmem:[#allocation9] sm:$0xff] %v1816_v61 }
 0x656   :  { %v2669_v36 = vadd.f32 1.0, %v3049_v55 }
 0x658   :  { %3050 = vrcp.f32 %v2669_v36  ;;  %v2681_v1 = vand.u32 2147483648, %v2669_v36  ;;  %v2679_v38 = vand.u32 2147483647, %v2669_v36  ;;  %vm2675_vm9 = vweird.f32 %v2669_v36 }
 0x65a   :  { %v2682_v35 = vor.u32 1.1754944e-38, %v2681_v1  ;;  %vm2680_vm8 = vcmp.eq.f32.partialorder %v2679_v38, 8.507059e+37 }
 0x65e   :  { %v3051_v32 = vpop.eup %3050 }
 0x65f   :  { %v2671_v4 = vmul.f32 %v3051_v32, %v2669_v36  ;;  %vm2676_vm10 = vweird.f32 %v3051_v32 }
 0x660   :  { %vm2677_vm7 = vmor %vm2675_vm9, %vm2676_vm10 }
 0x661   :  { %v2672_v58 = vsub.f32 1.0, %v2671_v4 }
 0x663   :  { %v2673_v24 = vmul.f32 %v3051_v32, %v2672_v58 }
 0x665   :  { %v2674_v33 = vadd.f32 %v3051_v32, %v2673_v24 }
 0x667   :  { %v2678_v13 = vsel %vm2677_vm7, %v3051_v32, %v2674_v33 }
 0x668   :  { %v2683_v20 = vsel %vm2680_vm8, %v2682_v35, %v2678_v13 }
 0x669   :  { %v2688_v50 = vperm.slane %v2683_v20, 0  ;;  %v2689_v22 = vperm.slane %v2683_v20, 2 }
 0x66b   :  { %v2693_v23 = vperm.slane %v2689_v22, 0  ;;  %v2692_v31 = vperm.slane %v2688_v50, 0 }
 0x66d   :  { %v2696_v52 = vrot.slane %v2693_v23, 4 }
 0x66f   :  { %v2697_v62 = vsel %vm5740_vm11, %v2692_v31, %v2696_v52 }
 0x670   :  { %v2699_v44 = vmul.f32 %v2697_v62, %v2686_v42 }
 0x672   :  { %2701 = vst [vmem:[#allocation9 + $0x8] sm:$0xff] %v2699_v44 }
 0x673   :  { %2714 = dma.vmem_to_hbm [thread:$0]  %s2707_s10, 256, %s2709_s11, [#allocation6], %s5742_s19, %s5742_s19, %s5741_s25  }
 0x674   :  { %3128 = dma.done.wait [#allocation6], 256  }
 0x675   :  { %3129 = vsyncadd [#allocation6], 4294967040 }
 0x676   :  { %2719 = vsyncpa [#allocation5], 1 }
 0x677   :  { %2720 = vsyncpa [#allocation6], 1 }
 0x678   :  { %2721 = vsyncpa [#allocation7], 1 }

</bundles_post_ra>
